<compile_context>
chip_gen: v7x
topology: tpu7x:2x2x1
jax: 0.10.0
libtpu: 0.0.40
codegen_flags: <defaults>
</compile_context>

<pallas_src>
import jax
import jax.numpy as jnp
from jax.experimental import pallas as pl
from jax.experimental.pallas import tpu as pltpu


def _round_up(n, m):
    return ((n + m - 1) // m) * m


def _pick_strip_rows(H, W, target_flat_rows=512):
    """Largest divisor hs of H with hs*W <= target (falls back to 1)."""
    best = 1
    for hs in range(1, H + 1):
        if H % hs == 0 and hs * W <= target_flat_rows:
            best = hs
    return best


def _vmem_bytes(H, W, Hs, Cin_p, Cout_p, nbuf):
    bf16, f32 = 2, 4
    x_block = 2 * H * W * Cin_p * bf16            # double-buffered input block
    o_block = 2 * H * W * Cout_p * bf16           # double-buffered output block
    slab = nbuf * (Hs + 2) * W * 3 * Cin_p * bf16
    weights = (9 * Cin_p * Cout_p * bf16 + Cout_p * Cout_p * bf16
               + 4 * Cout_p * f32)
    acc = 2 * Hs * W * Cout_p * f32               # strip accumulator / feat temps
    return x_block + o_block + slab + weights + acc


def _make_arm_kernel(H, W, Hs, Cin_p, Cout_p, nbuf):
    nstrips = H // Hs
    K3 = 3 * Cin_p
    HW = H * W

    def kernel(x_ref, w1_ref, s1_ref, b1_ref, wa_ref, s2_ref, b2_ref,
               o_ref, slab_ref):
        # x_ref  : (1, H, W, Cin_p)           bf16  per-batch blocked input
        # w1_ref : (9*Cin_p, Cout_p)          bf16  VMEM-resident, rows = (dy,dx,cin)
        # s1/b1  : (1, Cout_p)                f32   folded BN1 scale / bias
        # wa_ref : (Cout_p, Cout_p)           bf16  1x1 attention weight (in, out)
        # s2/b2  : (1, Cout_p)                f32   folded BN2 scale / bias
        # o_ref  : (1, H*W, Cout_p)           bf16  lane-dense flat output
        # slab   : (nbuf, Hs+2, W, 3*Cin_p)   bf16  per-strip 3-tap slab

        # Left/right halo columns are never written by the strip loop -> zero
        # them once per grid step (cheap; per-core safe under megacore split).
        zcol = jnp.zeros((nbuf, Hs + 2, 1, Cin_p), jnp.bfloat16)
        slab_ref[:, :, 0:1, 0:Cin_p] = zcol
        slab_ref[:, :, W - 1:W, 2 * Cin_p:3 * Cin_p] = zcol

        s1 = s1_ref[...]
        b1 = b1_ref[...]
        pooled = jnp.zeros((1, Cout_p), jnp.float32)

        # ---- pass 1: conv3x3 + folded BN1 per row strip, fused GAP sums ----
        for s in range(nstrips):
            slot = s % nbuf
            r0 = s * Hs                        # first output row of this strip
            a = max(r0 - 1, 0)                 # x rows needed: [r0-1, r0+Hs]
            b = min(r0 + Hs + 1, H)            # clipped to [0, H)
            ds0 = a - (r0 - 1)                 # destination row inside the slab
            n = b - a
            chunk = x_ref[0, a:b, :, :]        # (n, W, Cin_p) bf16

            # dx = 1 (centre), dx = 0 (left), dx = 2 (right) taps.
            slab_ref[slot, ds0:ds0 + n, :, Cin_p:2 * Cin_p] = chunk
            slab_ref[slot, ds0:ds0 + n, 1:W, 0:Cin_p] = chunk[:, 0:W - 1, :]
            slab_ref[slot, ds0:ds0 + n, 0:W - 1, 2 * Cin_p:3 * Cin_p] = \
                chunk[:, 1:W, :]
            if s == 0:                         # top image halo row
                slab_ref[slot, 0, :, :] = jnp.zeros((W, K3), jnp.bfloat16)
            if s == nstrips - 1:               # bottom image halo row
                slab_ref[slot, Hs + 1, :, :] = jnp.zeros((W, K3), jnp.bfloat16)

            # 3 accumulating MXU dots, one per dy tap (K = 3*Cin, f32 acc).
            acc = jnp.dot(
                slab_ref[slot, 0:Hs, :, :].reshape(Hs * W, K3),
                w1_ref[0:K3, :], preferred_element_type=jnp.float32)
            acc = acc + jnp.dot(
                slab_ref[slot, 1:Hs + 1, :, :].reshape(Hs * W, K3),
                w1_ref[K3:2 * K3, :], preferred_element_type=jnp.float32)
            acc = acc + jnp.dot(
                slab_ref[slot, 2:Hs + 2, :, :].reshape(Hs * W, K3),
                w1_ref[2 * K3:3 * K3, :], preferred_element_type=jnp.float32)

            feat = acc * s1 + b1                               # folded BN1, f32
            o_ref[0, r0 * W:(r0 + Hs) * W, :] = feat.astype(jnp.bfloat16)
            pooled = pooled + jnp.sum(feat, axis=0, keepdims=True)

        # ---- attention: 1x1 conv on the global average + BN2 + sigmoid ----
        pooled = pooled * (1.0 / float(HW))
        att = jnp.dot(pooled.astype(jnp.bfloat16), wa_ref[...],
                      preferred_element_type=jnp.float32)
        att = jax.nn.sigmoid(att * s2_ref[...] + b2_ref[...])  # (1, Cout_p) f32

        # ---- pass 2: rescale feat in place (strip-sized elementwise pass) ----
        for s in range(nstrips):
            lo = s * Hs * W
            hi = (s + 1) * Hs * W
            o_ref[0, lo:hi, :] = (
                o_ref[0, lo:hi, :].astype(jnp.float32) * att
            ).astype(jnp.bfloat16)

    return kernel


def attention_refinement(x_nhwc, w1_oihw, bn1, wa_oi, bn2, *, strip_rows=None):
    """BiSeNet AttentionRefinementModule forward (eval-mode BatchNorm).

    x_nhwc : (N, H, W, Cin) float32, NHWC.
    w1_oihw: (Cout, Cin, 3, 3) PyTorch OIHW 3x3 conv weight (no bias).
    bn1    : (gamma, beta, running_mean, running_var), each (Cout,).
    wa_oi  : (Cout, Cout) PyTorch (out, in) 1x1 conv weight (no bias).
    bn2    : like bn1.
    Returns (N, H, W, Cout) bfloat16.
    """
    N, H, W, Cin = x_nhwc.shape
    Cout = w1_oihw.shape[0]
    eps = 1e-5
    assert W % 8 == 0, "W must be a multiple of 8 (sublane tiling)"

    if strip_rows is None:
        strip_rows = _pick_strip_rows(H, W)
    assert H % strip_rows == 0, "strip_rows must divide H"
    Hs = strip_rows
    nstrips = H // Hs
    nbuf = 2 if nstrips > 1 else 1

    # Lane-dense channel padding (multiples of 128).  Production ARM channel
    # counts already satisfy this; the toy test gets zero-padded.
    Cin_p = _round_up(Cin, 128)
    Cout_p = _round_up(Cout, 128)

    # Fold eval-mode BatchNorm into per-channel scale / bias (f32).
    def fold(bn):
        g, be, m, v = bn
        s = g / jnp.sqrt(v + eps)
        return s, be - m * s

    s1, b1 = fold(bn1)
    s2, b2 = fold(bn2)

    def pad_vec(v):
        return jnp.pad(v, (0, Cout_p - Cout)).reshape(1, Cout_p).astype(jnp.float32)

    # bf16 MXU operands; weight re-layout from PyTorch conventions.
    xp = jnp.pad(x_nhwc, ((0, 0), (0, 0), (0, 0), (0, Cin_p - Cin))
                 ).astype(jnp.bfloat16)
    w1_hwio = jnp.transpose(w1_oihw, (2, 3, 1, 0))           # (3,3,Cin,Cout)
    w1p = jnp.pad(w1_hwio, ((0, 0), (0, 0), (0, Cin_p - Cin),
                            (0, Cout_p - Cout)))
    w1p = w1p.reshape(9 * Cin_p, Cout_p).astype(jnp.bfloat16)  # rows = (dy,dx,cin)
    wa_io = jnp.transpose(wa_oi)                              # (in, out)
    wap = jnp.pad(wa_io, ((0, Cout_p - Cout), (0, Cout_p - Cout))
                  ).astype(jnp.bfloat16)
    s1p, b1p, s2p, b2p = pad_vec(s1), pad_vec(b1), pad_vec(s2), pad_vec(b2)

    kernel = _make_arm_kernel(H, W, Hs, Cin_p, Cout_p, nbuf)

    # Grid-invariant operands: whole-array VMEM residents (single-buffered).
    vmem_spec = pl.BlockSpec(memory_space=pltpu.MemorySpace.VMEM)

    est = _vmem_bytes(H, W, Hs, Cin_p, Cout_p, nbuf)
    vmem_limit = int(min(max(32 * 2 ** 20, int(1.5 * est)), 100 * 2 ** 20))

    out_flat = pl.pallas_call(
        kernel,
        out_shape=jax.ShapeDtypeStruct((N, H * W, Cout_p), jnp.bfloat16),
        grid_spec=pltpu.PrefetchScalarGridSpec(
            num_scalar_prefetch=0,
            grid=(N,),
            in_specs=[
                pl.BlockSpec((1, H, W, Cin_p), lambda n: (n, 0, 0, 0)),
                vmem_spec,   # w1 (im2col-ordered 3x3 weight)
                vmem_spec,   # BN1 scale
                vmem_spec,   # BN1 bias
                vmem_spec,   # 1x1 attention weight
                vmem_spec,   # BN2 scale
                vmem_spec,   # BN2 bias
            ],
            out_specs=pl.BlockSpec((1, H * W, Cout_p), lambda n: (n, 0, 0)),
            scratch_shapes=[
                pltpu.VMEM((nbuf, Hs + 2, W, 3 * Cin_p), jnp.bfloat16),
            ],
        ),
        compiler_params=pltpu.CompilerParams(
            dimension_semantics=("parallel",),
            vmem_limit_bytes=vmem_limit),
    )(xp, w1p, s1p, b1p, wap, s2p, b2p)

    # Metadata reshape + strip channel padding.
    return out_flat.reshape(N, H, W, Cout_p)[..., :Cout]


def reference(x_nhwc, w1_oihw, bn1, wa_oi, bn2):
    eps = 1e-5
    w1_hwio = jnp.transpose(w1_oihw, (2, 3, 1, 0))
    feat = jax.lax.conv_general_dilated(
        x_nhwc, w1_hwio, window_strides=(1, 1), padding="SAME",
        dimension_numbers=("NHWC", "HWIO", "NHWC"))
    g1, be1, m1, v1 = bn1
    feat = (feat - m1) / jnp.sqrt(v1 + eps) * g1 + be1
    pooled = jnp.mean(feat, axis=(1, 2))                     # (N, Cout) GAP
    att = pooled @ jnp.transpose(wa_oi)                      # 1x1 conv, (out,in) weight
    g2, be2, m2, v2 = bn2
    att = (att - m2) / jnp.sqrt(v2 + eps) * g2 + be2
    att = jax.nn.sigmoid(att)[:, None, None, :]
    return feat * att


if __name__ == "__main__":
    key = jax.random.PRNGKey(0)
    N, H, W, Cin, Cout = 2, 16, 16, 4, 8
    ks = jax.random.split(key, 12)

    x = jax.random.normal(ks[0], (N, H, W, Cin), jnp.float32)
    # kaiming_normal_(a=1): gain = 1, std = 1/sqrt(fan_in)
    w1 = jax.random.normal(ks[1], (Cout, Cin, 3, 3), jnp.float32) / jnp.sqrt(
        9.0 * Cin)
    wa = jax.random.normal(ks[2], (Cout, Cout), jnp.float32) / jnp.sqrt(
        float(Cout))
    # Non-trivial eval-mode BatchNorm stats to exercise the folded-BN path.
    bn1 = (1.0 + 0.3 * jax.random.normal(ks[3], (Cout,)),
           0.2 * jax.random.normal(ks[4], (Cout,)),
           0.2 * jax.random.normal(ks[5], (Cout,)),
           0.5 + jax.random.uniform(ks[6], (Cout,)))
    bn2 = (1.0 + 0.3 * jax.random.normal(ks[7], (Cout,)),
           0.2 * jax.random.normal(ks[8], (Cout,)),
           0.2 * jax.random.normal(ks[9], (Cout,)),
           0.5 + jax.random.uniform(ks[10], (Cout,)))

    ref = reference(x, w1, bn1, wa, bn2)

    # Multi-strip path (4 row strips, double-buffered slab).
    out = attention_refinement(x, w1, bn1, wa, bn2, strip_rows=4)
    out = jax.block_until_ready(out)
    assert out.shape == (N, H, W, Cout)
    assert jnp.allclose(out.astype(jnp.float32), ref, atol=4e-2, rtol=4e-2), \
        "mismatch vs reference (strip_rows=4)"

    # Auto strip selection (single strip at this shape).
    out2 = attention_refinement(x, w1, bn1, wa, bn2)
    out2 = jax.block_until_ready(out2)
    assert jnp.allclose(out2.astype(jnp.float32), ref, atol=4e-2, rtol=4e-2), \
        "mismatch vs reference (auto strips)"

    print("KERNEL_OK")
</pallas_src>

<mosaic_0001>
module attributes {stable_mosaic.version = 11 : i64} {
  func.func @kernel(%arg0: i32, %arg1: memref<1x16x16x128xbf16, #tpu.memory_space<vmem>>, %arg2: memref<1152x128xbf16, #tpu.memory_space<vmem>>, %arg3: memref<1x128xf32, #tpu.memory_space<vmem>>, %arg4: memref<1x128xf32, #tpu.memory_space<vmem>>, %arg5: memref<128x128xbf16, #tpu.memory_space<vmem>>, %arg6: memref<1x128xf32, #tpu.memory_space<vmem>>, %arg7: memref<1x128xf32, #tpu.memory_space<vmem>>, %arg8: memref<1x256x128xbf16, #tpu.memory_space<vmem>>, %arg9: memref<2x6x16x384xbf16, #tpu.memory_space<vmem>>) attributes {dimension_semantics = [#tpu.dimension_semantics<parallel>], iteration_bounds = array<i64: 2>, scalar_prefetch = 0 : i64, scratch_operands = 1 : i64, tpu.core_type = #tpu.core_type<tc>, window_params = [{transform_indices = @transform_0, window_bounds = array<i64: 1, 16, 16, 128>}, {pipeline_mode = #tpu.pipeline_mode<synchronous>, transform_indices = @transform_1, window_bounds = array<i64: 1152, 128>}, {pipeline_mode = #tpu.pipeline_mode<synchronous>, transform_indices = @transform_2, window_bounds = array<i64: 1, 128>}, {pipeline_mode = #tpu.pipeline_mode<synchronous>, transform_indices = @transform_3, window_bounds = array<i64: 1, 128>}, {pipeline_mode = #tpu.pipeline_mode<synchronous>, transform_indices = @transform_4, window_bounds = array<i64: 128, 128>}, {pipeline_mode = #tpu.pipeline_mode<synchronous>, transform_indices = @transform_5, window_bounds = array<i64: 1, 128>}, {pipeline_mode = #tpu.pipeline_mode<synchronous>, transform_indices = @transform_6, window_bounds = array<i64: 1, 128>}, {transform_indices = @transform_7, window_bounds = array<i64: 1, 256, 128>}]} {
    %cst = arith.constant 0.000000e+00 : bf16
    %0 = vector.broadcast %cst : bf16 to vector<2x6x1x128xbf16>
    %c0 = arith.constant 0 : index
    %c0_0 = arith.constant 0 : index
    %c0_1 = arith.constant 0 : index
    %c0_2 = arith.constant 0 : index
    %1 = vector.load %arg9[%c0, %c0_0, %c0_1, %c0_2] : memref<2x6x16x384xbf16, #tpu.memory_space<vmem>>, vector<2x6x1x128xbf16>
    tpu.vector_store %arg9[%c0, %c0_0, %c0_1, %c0_2], %0 {strides = array<i32>} : memref<2x6x16x384xbf16, #tpu.memory_space<vmem>>, vector<2x6x1x128xbf16>,
    %c0_3 = arith.constant 0 : index
    %c0_4 = arith.constant 0 : index
    %c15 = arith.constant 15 : index
    %c256 = arith.constant 256 : index
    %2 = vector.load %arg9[%c0_3, %c0_4, %c15, %c256] : memref<2x6x16x384xbf16, #tpu.memory_space<vmem>>, vector<2x6x1x128xbf16>
    tpu.vector_store %arg9[%c0_3, %c0_4, %c15, %c256], %0 {strides = array<i32>} : memref<2x6x16x384xbf16, #tpu.memory_space<vmem>>, vector<2x6x1x128xbf16>,
    %c0_5 = arith.constant 0 : index
    %c0_6 = arith.constant 0 : index
    %3 = vector.load %arg3[%c0_5, %c0_6] : memref<1x128xf32, #tpu.memory_space<vmem>>, vector<1x128xf32>
    %c0_7 = arith.constant 0 : index
    %c0_8 = arith.constant 0 : index
    %4 = vector.load %arg4[%c0_7, %c0_8] : memref<1x128xf32, #tpu.memory_space<vmem>>, vector<1x128xf32>
    %cst_9 = arith.constant 0.000000e+00 : f32
    %5 = vector.broadcast %cst_9 : f32 to vector<1x128xf32>
    %c0_10 = arith.constant 0 : index
    %c0_11 = arith.constant 0 : index
    %c0_12 = arith.constant 0 : index
    %c0_13 = arith.constant 0 : index
    %6 = vector.load %arg1[%c0_10, %c0_11, %c0_12, %c0_13] : memref<1x16x16x128xbf16, #tpu.memory_space<vmem>>, vector<1x5x16x128xbf16>
    %7 = vector.shape_cast %6 : vector<1x5x16x128xbf16> to vector<5x16x128xbf16>
    %c0_14 = arith.constant 0 : index
    %c1 = arith.constant 1 : index
    %c0_15 = arith.constant 0 : index
    %c128 = arith.constant 128 : index
    %8 = vector.load %arg9[%c0_14, %c1, %c0_15, %c128] : memref<2x6x16x384xbf16, #tpu.memory_space<vmem>>, vector<1x5x16x128xbf16>
    %9 = vector.shape_cast %8 : vector<1x5x16x128xbf16> to vector<5x16x128xbf16>
    %10 = vector.shape_cast %7 : vector<5x16x128xbf16> to vector<1x5x16x128xbf16>
    tpu.vector_store %arg9[%c0_14, %c1, %c0_15, %c128], %10 {strides = array<i32>} : memref<2x6x16x384xbf16, #tpu.memory_space<vmem>>, vector<1x5x16x128xbf16>,
    %11 = vector.extract_strided_slice %7 {offsets = [0, 0, 0], sizes = [5, 15, 128], strides = [1, 1, 1]} : vector<5x16x128xbf16> to vector<5x15x128xbf16>
    %c0_16 = arith.constant 0 : index
    %c1_17 = arith.constant 1 : index
    %c1_18 = arith.constant 1 : index
    %c0_19 = arith.constant 0 : index
    %12 = vector.load %arg9[%c0_16, %c1_17, %c1_18, %c0_19] : memref<2x6x16x384xbf16, #tpu.memory_space<vmem>>, vector<1x5x15x128xbf16>
    %13 = vector.shape_cast %12 : vector<1x5x15x128xbf16> to vector<5x15x128xbf16>
    %14 = vector.shape_cast %11 : vector<5x15x128xbf16> to vector<1x5x15x128xbf16>
    tpu.vector_store %arg9[%c0_16, %c1_17, %c1_18, %c0_19], %14 {strides = array<i32>} : memref<2x6x16x384xbf16, #tpu.memory_space<vmem>>, vector<1x5x15x128xbf16>,
    %15 = vector.extract_strided_slice %7 {offsets = [0, 1, 0], sizes = [5, 15, 128], strides = [1, 1, 1]} : vector<5x16x128xbf16> to vector<5x15x128xbf16>
    %c0_20 = arith.constant 0 : index
    %c1_21 = arith.constant 1 : index
    %c0_22 = arith.constant 0 : index
    %c256_23 = arith.constant 256 : index
    %16 = vector.load %arg9[%c0_20, %c1_21, %c0_22, %c256_23] : memref<2x6x16x384xbf16, #tpu.memory_space<vmem>>, vector<1x5x15x128xbf16>
    %17 = vector.shape_cast %16 : vector<1x5x15x128xbf16> to vector<5x15x128xbf16>
    %18 = vector.shape_cast %15 : vector<5x15x128xbf16> to vector<1x5x15x128xbf16>
    tpu.vector_store %arg9[%c0_20, %c1_21, %c0_22, %c256_23], %18 {strides = array<i32>} : memref<2x6x16x384xbf16, #tpu.memory_space<vmem>>, vector<1x5x15x128xbf16>,
    %cst_24 = arith.constant 0.000000e+00 : bf16
    %19 = vector.broadcast %cst_24 : bf16 to vector<16x384xbf16>
    %c0_25 = arith.constant 0 : index
    %c0_26 = arith.constant 0 : index
    %c0_27 = arith.constant 0 : index
    %c0_28 = arith.constant 0 : index
    %20 = vector.load %arg9[%c0_25, %c0_26, %c0_27, %c0_28] : memref<2x6x16x384xbf16, #tpu.memory_space<vmem>>, vector<1x1x16x384xbf16>
    %21 = vector.shape_cast %20 : vector<1x1x16x384xbf16> to vector<16x384xbf16>
    %22 = vector.shape_cast %19 : vector<16x384xbf16> to vector<1x1x16x384xbf16>
    tpu.vector_store %arg9[%c0_25, %c0_26, %c0_27, %c0_28], %22 {strides = array<i32>} : memref<2x6x16x384xbf16, #tpu.memory_space<vmem>>, vector<1x1x16x384xbf16>,
    %c0_29 = arith.constant 0 : index
    %c0_30 = arith.constant 0 : index
    %c0_31 = arith.constant 0 : index
    %c0_32 = arith.constant 0 : index
    %23 = vector.load %arg9[%c0_29, %c0_30, %c0_31, %c0_32] : memref<2x6x16x384xbf16, #tpu.memory_space<vmem>>, vector<1x4x16x384xbf16>
    %24 = vector.shape_cast %23 : vector<1x4x16x384xbf16> to vector<4x16x384xbf16>
    %25 = vector.shape_cast %24 : vector<4x16x384xbf16> to vector<64x384xbf16>
    %c0_33 = arith.constant 0 : index
    %c0_34 = arith.constant 0 : index
    %26 = vector.load %arg2[%c0_33, %c0_34] : memref<1152x128xbf16, #tpu.memory_space<vmem>>, vector<384x128xbf16>
    %cst_35 = arith.constant dense<0.000000e+00> : vector<64x128xf32>
    %27 = tpu.matmul %25, %26, %cst_35 {dimension_numbers = #tpu.dot_dimension_numbers<[1], [0], [0], [1], [0, 0, 1, 1], [], []>} : vector<64x384xbf16>, vector<384x128xbf16>, vector<64x128xf32> -> vector<64x128xf32>
    %c0_36 = arith.constant 0 : index
    %c1_37 = arith.constant 1 : index
    %c0_38 = arith.constant 0 : index
    %c0_39 = arith.constant 0 : index
    %28 = vector.load %arg9[%c0_36, %c1_37, %c0_38, %c0_39] : memref<2x6x16x384xbf16, #tpu.memory_space<vmem>>, vector<1x4x16x384xbf16>
    %29 = vector.shape_cast %28 : vector<1x4x16x384xbf16> to vector<4x16x384xbf16>
    %30 = vector.shape_cast %29 : vector<4x16x384xbf16> to vector<64x384xbf16>
    %c384 = arith.constant 384 : index
    %c0_40 = arith.constant 0 : index
    %31 = vector.load %arg2[%c384, %c0_40] : memref<1152x128xbf16, #tpu.memory_space<vmem>>, vector<384x128xbf16>
    %cst_41 = arith.constant dense<0.000000e+00> : vector<64x128xf32>
    %32 = tpu.matmul %30, %31, %cst_41 {dimension_numbers = #tpu.dot_dimension_numbers<[1], [0], [0], [1], [0, 0, 1, 1], [], []>} : vector<64x384xbf16>, vector<384x128xbf16>, vector<64x128xf32> -> vector<64x128xf32>
    %33 = arith.addf %27, %32 : vector<64x128xf32>
    %c0_42 = arith.constant 0 : index
    %c2 = arith.constant 2 : index
    %c0_43 = arith.constant 0 : index
    %c0_44 = arith.constant 0 : index
    %34 = vector.load %arg9[%c0_42, %c2, %c0_43, %c0_44] : memref<2x6x16x384xbf16, #tpu.memory_space<vmem>>, vector<1x4x16x384xbf16>
    %35 = vector.shape_cast %34 : vector<1x4x16x384xbf16> to vector<4x16x384xbf16>
    %36 = vector.shape_cast %35 : vector<4x16x384xbf16> to vector<64x384xbf16>
    %c768 = arith.constant 768 : index
    %c0_45 = arith.constant 0 : index
    %37 = vector.load %arg2[%c768, %c0_45] : memref<1152x128xbf16, #tpu.memory_space<vmem>>, vector<384x128xbf16>
    %cst_46 = arith.constant dense<0.000000e+00> : vector<64x128xf32>
    %38 = tpu.matmul %36, %37, %cst_46 {dimension_numbers = #tpu.dot_dimension_numbers<[1], [0], [0], [1], [0, 0, 1, 1], [], []>} : vector<64x384xbf16>, vector<384x128xbf16>, vector<64x128xf32> -> vector<64x128xf32>
    %39 = arith.addf %33, %38 : vector<64x128xf32>
    %40 = vector.broadcast %3 : vector<1x128xf32> to vector<64x128xf32>
    %41 = arith.mulf %39, %40 : vector<64x128xf32>
    %42 = vector.broadcast %4 : vector<1x128xf32> to vector<64x128xf32>
    %43 = arith.addf %41, %42 : vector<64x128xf32>
    %44 = arith.truncf %43 : vector<64x128xf32> to vector<64x128xbf16>
    %c0_47 = arith.constant 0 : index
    %c0_48 = arith.constant 0 : index
    %c0_49 = arith.constant 0 : index
    %45 = vector.load %arg8[%c0_47, %c0_48, %c0_49] : memref<1x256x128xbf16, #tpu.memory_space<vmem>>, vector<1x64x128xbf16>
    %46 = vector.shape_cast %45 : vector<1x64x128xbf16> to vector<64x128xbf16>
    %47 = vector.shape_cast %44 : vector<64x128xbf16> to vector<1x64x128xbf16>
    tpu.vector_store %arg8[%c0_47, %c0_48, %c0_49], %47 {strides = array<i32>} : memref<1x256x128xbf16, #tpu.memory_space<vmem>>, vector<1x64x128xbf16>,
    %cst_50 = arith.constant dense<0.000000e+00> : vector<128xf32>
    %48 = vector.multi_reduction <add>, %43, %cst_50 [0] : vector<64x128xf32> to vector<128xf32>
    %49 = vector.shape_cast %48 : vector<128xf32> to vector<1x128xf32>
    %50 = arith.addf %5, %49 : vector<1x128xf32>
    %c0_51 = arith.constant 0 : index
    %c3 = arith.constant 3 : index
    %c0_52 = arith.constant 0 : index
    %c0_53 = arith.constant 0 : index
    %51 = vector.load %arg1[%c0_51, %c3, %c0_52, %c0_53] : memref<1x16x16x128xbf16, #tpu.memory_space<vmem>>, vector<1x6x16x128xbf16>
    %52 = vector.shape_cast %51 : vector<1x6x16x128xbf16> to vector<6x16x128xbf16>
    %c1_54 = arith.constant 1 : index
    %c0_55 = arith.constant 0 : index
    %c0_56 = arith.constant 0 : index
    %c128_57 = arith.constant 128 : index
    %53 = vector.load %arg9[%c1_54, %c0_55, %c0_56, %c128_57] : memref<2x6x16x384xbf16, #tpu.memory_space<vmem>>, vector<1x6x16x128xbf16>
    %54 = vector.shape_cast %53 : vector<1x6x16x128xbf16> to vector<6x16x128xbf16>
    %55 = vector.shape_cast %52 : vector<6x16x128xbf16> to vector<1x6x16x128xbf16>
    tpu.vector_store %arg9[%c1_54, %c0_55, %c0_56, %c128_57], %55 {strides = array<i32>} : memref<2x6x16x384xbf16, #tpu.memory_space<vmem>>, vector<1x6x16x128xbf16>,
    %56 = vector.extract_strided_slice %52 {offsets = [0, 0, 0], sizes = [6, 15, 128], strides = [1, 1, 1]} : vector<6x16x128xbf16> to vector<6x15x128xbf16>
    %c1_58 = arith.constant 1 : index
    %c0_59 = arith.constant 0 : index
    %c1_60 = arith.constant 1 : index
    %c0_61 = arith.constant 0 : index
    %57 = vector.load %arg9[%c1_58, %c0_59, %c1_60, %c0_61] : memref<2x6x16x384xbf16, #tpu.memory_space<vmem>>, vector<1x6x15x128xbf16>
    %58 = vector.shape_cast %57 : vector<1x6x15x128xbf16> to vector<6x15x128xbf16>
    %59 = vector.shape_cast %56 : vector<6x15x128xbf16> to vector<1x6x15x128xbf16>
    tpu.vector_store %arg9[%c1_58, %c0_59, %c1_60, %c0_61], %59 {strides = array<i32>} : memref<2x6x16x384xbf16, #tpu.memory_space<vmem>>, vector<1x6x15x128xbf16>,
    %60 = vector.extract_strided_slice %52 {offsets = [0, 1, 0], sizes = [6, 15, 128], strides = [1, 1, 1]} : vector<6x16x128xbf16> to vector<6x15x128xbf16>
    %c1_62 = arith.constant 1 : index
    %c0_63 = arith.constant 0 : index
    %c0_64 = arith.constant 0 : index
    %c256_65 = arith.constant 256 : index
    %61 = vector.load %arg9[%c1_62, %c0_63, %c0_64, %c256_65] : memref<2x6x16x384xbf16, #tpu.memory_space<vmem>>, vector<1x6x15x128xbf16>
    %62 = vector.shape_cast %61 : vector<1x6x15x128xbf16> to vector<6x15x128xbf16>
    %63 = vector.shape_cast %60 : vector<6x15x128xbf16> to vector<1x6x15x128xbf16>
    tpu.vector_store %arg9[%c1_62, %c0_63, %c0_64, %c256_65], %63 {strides = array<i32>} : memref<2x6x16x384xbf16, #tpu.memory_space<vmem>>, vector<1x6x15x128xbf16>,
    %c1_66 = arith.constant 1 : index
    %c0_67 = arith.constant 0 : index
    %c0_68 = arith.constant 0 : index
    %c0_69 = arith.constant 0 : index
    %64 = vector.load %arg9[%c1_66, %c0_67, %c0_68, %c0_69] : memref<2x6x16x384xbf16, #tpu.memory_space<vmem>>, vector<1x4x16x384xbf16>
    %65 = vector.shape_cast %64 : vector<1x4x16x384xbf16> to vector<4x16x384xbf16>
    %66 = vector.shape_cast %65 : vector<4x16x384xbf16> to vector<64x384xbf16>
    %c0_70 = arith.constant 0 : index
    %c0_71 = arith.constant 0 : index
    %67 = vector.load %arg2[%c0_70, %c0_71] : memref<1152x128xbf16, #tpu.memory_space<vmem>>, vector<384x128xbf16>
    %cst_72 = arith.constant dense<0.000000e+00> : vector<64x128xf32>
    %68 = tpu.matmul %66, %67, %cst_72 {dimension_numbers = #tpu.dot_dimension_numbers<[1], [0], [0], [1], [0, 0, 1, 1], [], []>} : vector<64x384xbf16>, vector<384x128xbf16>, vector<64x128xf32> -> vector<64x128xf32>
    %c1_73 = arith.constant 1 : index
    %c1_74 = arith.constant 1 : index
    %c0_75 = arith.constant 0 : index
    %c0_76 = arith.constant 0 : index
    %69 = vector.load %arg9[%c1_73, %c1_74, %c0_75, %c0_76] : memref<2x6x16x384xbf16, #tpu.memory_space<vmem>>, vector<1x4x16x384xbf16>
    %70 = vector.shape_cast %69 : vector<1x4x16x384xbf16> to vector<4x16x384xbf16>
    %71 = vector.shape_cast %70 : vector<4x16x384xbf16> to vector<64x384xbf16>
    %c384_77 = arith.constant 384 : index
    %c0_78 = arith.constant 0 : index
    %72 = vector.load %arg2[%c384_77, %c0_78] : memref<1152x128xbf16, #tpu.memory_space<vmem>>, vector<384x128xbf16>
    %cst_79 = arith.constant dense<0.000000e+00> : vector<64x128xf32>
    %73 = tpu.matmul %71, %72, %cst_79 {dimension_numbers = #tpu.dot_dimension_numbers<[1], [0], [0], [1], [0, 0, 1, 1], [], []>} : vector<64x384xbf16>, vector<384x128xbf16>, vector<64x128xf32> -> vector<64x128xf32>
    %74 = arith.addf %68, %73 : vector<64x128xf32>
    %c1_80 = arith.constant 1 : index
    %c2_81 = arith.constant 2 : index
    %c0_82 = arith.constant 0 : index
    %c0_83 = arith.constant 0 : index
    %75 = vector.load %arg9[%c1_80, %c2_81, %c0_82, %c0_83] : memref<2x6x16x384xbf16, #tpu.memory_space<vmem>>, vector<1x4x16x384xbf16>
    %76 = vector.shape_cast %75 : vector<1x4x16x384xbf16> to vector<4x16x384xbf16>
    %77 = vector.shape_cast %76 : vector<4x16x384xbf16> to vector<64x384xbf16>
    %c768_84 = arith.constant 768 : index
    %c0_85 = arith.constant 0 : index
    %78 = vector.load %arg2[%c768_84, %c0_85] : memref<1152x128xbf16, #tpu.memory_space<vmem>>, vector<384x128xbf16>
    %cst_86 = arith.constant dense<0.000000e+00> : vector<64x128xf32>
    %79 = tpu.matmul %77, %78, %cst_86 {dimension_numbers = #tpu.dot_dimension_numbers<[1], [0], [0], [1], [0, 0, 1, 1], [], []>} : vector<64x384xbf16>, vector<384x128xbf16>, vector<64x128xf32> -> vector<64x128xf32>
    %80 = arith.addf %74, %79 : vector<64x128xf32>
    %81 = vector.broadcast %3 : vector<1x128xf32> to vector<64x128xf32>
    %82 = arith.mulf %80, %81 : vector<64x128xf32>
    %83 = vector.broadcast %4 : vector<1x128xf32> to vector<64x128xf32>
    %84 = arith.addf %82, %83 : vector<64x128xf32>
    %85 = arith.truncf %84 : vector<64x128xf32> to vector<64x128xbf16>
    %c0_87 = arith.constant 0 : index
    %c64 = arith.constant 64 : index
    %c0_88 = arith.constant 0 : index
    %86 = vector.load %arg8[%c0_87, %c64, %c0_88] : memref<1x256x128xbf16, #tpu.memory_space<vmem>>, vector<1x64x128xbf16>
    %87 = vector.shape_cast %86 : vector<1x64x128xbf16> to vector<64x128xbf16>
    %88 = vector.shape_cast %85 : vector<64x128xbf16> to vector<1x64x128xbf16>
    tpu.vector_store %arg8[%c0_87, %c64, %c0_88], %88 {strides = array<i32>} : memref<1x256x128xbf16, #tpu.memory_space<vmem>>, vector<1x64x128xbf16>,
    %cst_89 = arith.constant dense<0.000000e+00> : vector<128xf32>
    %89 = vector.multi_reduction <add>, %84, %cst_89 [0] : vector<64x128xf32> to vector<128xf32>
    %90 = vector.shape_cast %89 : vector<128xf32> to vector<1x128xf32>
    %91 = arith.addf %50, %90 : vector<1x128xf32>
    %c0_90 = arith.constant 0 : index
    %c7 = arith.constant 7 : index
    %c0_91 = arith.constant 0 : index
    %c0_92 = arith.constant 0 : index
    %92 = vector.load %arg1[%c0_90, %c7, %c0_91, %c0_92] : memref<1x16x16x128xbf16, #tpu.memory_space<vmem>>, vector<1x6x16x128xbf16>
    %93 = vector.shape_cast %92 : vector<1x6x16x128xbf16> to vector<6x16x128xbf16>
    %c0_93 = arith.constant 0 : index
    %c0_94 = arith.constant 0 : index
    %c0_95 = arith.constant 0 : index
    %c128_96 = arith.constant 128 : index
    %94 = vector.load %arg9[%c0_93, %c0_94, %c0_95, %c128_96] : memref<2x6x16x384xbf16, #tpu.memory_space<vmem>>, vector<1x6x16x128xbf16>
    %95 = vector.shape_cast %94 : vector<1x6x16x128xbf16> to vector<6x16x128xbf16>
    %96 = vector.shape_cast %93 : vector<6x16x128xbf16> to vector<1x6x16x128xbf16>
    tpu.vector_store %arg9[%c0_93, %c0_94, %c0_95, %c128_96], %96 {strides = array<i32>} : memref<2x6x16x384xbf16, #tpu.memory_space<vmem>>, vector<1x6x16x128xbf16>,
    %97 = vector.extract_strided_slice %93 {offsets = [0, 0, 0], sizes = [6, 15, 128], strides = [1, 1, 1]} : vector<6x16x128xbf16> to vector<6x15x128xbf16>
    %c0_97 = arith.constant 0 : index
    %c0_98 = arith.constant 0 : index
    %c1_99 = arith.constant 1 : index
    %c0_100 = arith.constant 0 : index
    %98 = vector.load %arg9[%c0_97, %c0_98, %c1_99, %c0_100] : memref<2x6x16x384xbf16, #tpu.memory_space<vmem>>, vector<1x6x15x128xbf16>
    %99 = vector.shape_cast %98 : vector<1x6x15x128xbf16> to vector<6x15x128xbf16>
    %100 = vector.shape_cast %97 : vector<6x15x128xbf16> to vector<1x6x15x128xbf16>
    tpu.vector_store %arg9[%c0_97, %c0_98, %c1_99, %c0_100], %100 {strides = array<i32>} : memref<2x6x16x384xbf16, #tpu.memory_space<vmem>>, vector<1x6x15x128xbf16>,
    %101 = vector.extract_strided_slice %93 {offsets = [0, 1, 0], sizes = [6, 15, 128], strides = [1, 1, 1]} : vector<6x16x128xbf16> to vector<6x15x128xbf16>
    %c0_101 = arith.constant 0 : index
    %c0_102 = arith.constant 0 : index
    %c0_103 = arith.constant 0 : index
    %c256_104 = arith.constant 256 : index
    %102 = vector.load %arg9[%c0_101, %c0_102, %c0_103, %c256_104] : memref<2x6x16x384xbf16, #tpu.memory_space<vmem>>, vector<1x6x15x128xbf16>
    %103 = vector.shape_cast %102 : vector<1x6x15x128xbf16> to vector<6x15x128xbf16>
    %104 = vector.shape_cast %101 : vector<6x15x128xbf16> to vector<1x6x15x128xbf16>
    tpu.vector_store %arg9[%c0_101, %c0_102, %c0_103, %c256_104], %104 {strides = array<i32>} : memref<2x6x16x384xbf16, #tpu.memory_space<vmem>>, vector<1x6x15x128xbf16>,
    %c0_105 = arith.constant 0 : index
    %c0_106 = arith.constant 0 : index
    %c0_107 = arith.constant 0 : index
    %c0_108 = arith.constant 0 : index
    %105 = vector.load %arg9[%c0_105, %c0_106, %c0_107, %c0_108] : memref<2x6x16x384xbf16, #tpu.memory_space<vmem>>, vector<1x4x16x384xbf16>
    %106 = vector.shape_cast %105 : vector<1x4x16x384xbf16> to vector<4x16x384xbf16>
    %107 = vector.shape_cast %106 : vector<4x16x384xbf16> to vector<64x384xbf16>
    %c0_109 = arith.constant 0 : index
    %c0_110 = arith.constant 0 : index
    %108 = vector.load %arg2[%c0_109, %c0_110] : memref<1152x128xbf16, #tpu.memory_space<vmem>>, vector<384x128xbf16>
    %cst_111 = arith.constant dense<0.000000e+00> : vector<64x128xf32>
    %109 = tpu.matmul %107, %108, %cst_111 {dimension_numbers = #tpu.dot_dimension_numbers<[1], [0], [0], [1], [0, 0, 1, 1], [], []>} : vector<64x384xbf16>, vector<384x128xbf16>, vector<64x128xf32> -> vector<64x128xf32>
    %c0_112 = arith.constant 0 : index
    %c1_113 = arith.constant 1 : index
    %c0_114 = arith.constant 0 : index
    %c0_115 = arith.constant 0 : index
    %110 = vector.load %arg9[%c0_112, %c1_113, %c0_114, %c0_115] : memref<2x6x16x384xbf16, #tpu.memory_space<vmem>>, vector<1x4x16x384xbf16>
    %111 = vector.shape_cast %110 : vector<1x4x16x384xbf16> to vector<4x16x384xbf16>
    %112 = vector.shape_cast %111 : vector<4x16x384xbf16> to vector<64x384xbf16>
    %c384_116 = arith.constant 384 : index
    %c0_117 = arith.constant 0 : index
    %113 = vector.load %arg2[%c384_116, %c0_117] : memref<1152x128xbf16, #tpu.memory_space<vmem>>, vector<384x128xbf16>
    %cst_118 = arith.constant dense<0.000000e+00> : vector<64x128xf32>
    %114 = tpu.matmul %112, %113, %cst_118 {dimension_numbers = #tpu.dot_dimension_numbers<[1], [0], [0], [1], [0, 0, 1, 1], [], []>} : vector<64x384xbf16>, vector<384x128xbf16>, vector<64x128xf32> -> vector<64x128xf32>
    %115 = arith.addf %109, %114 : vector<64x128xf32>
    %c0_119 = arith.constant 0 : index
    %c2_120 = arith.constant 2 : index
    %c0_121 = arith.constant 0 : index
    %c0_122 = arith.constant 0 : index
    %116 = vector.load %arg9[%c0_119, %c2_120, %c0_121, %c0_122] : memref<2x6x16x384xbf16, #tpu.memory_space<vmem>>, vector<1x4x16x384xbf16>
    %117 = vector.shape_cast %116 : vector<1x4x16x384xbf16> to vector<4x16x384xbf16>
    %118 = vector.shape_cast %117 : vector<4x16x384xbf16> to vector<64x384xbf16>
    %c768_123 = arith.constant 768 : index
    %c0_124 = arith.constant 0 : index
    %119 = vector.load %arg2[%c768_123, %c0_124] : memref<1152x128xbf16, #tpu.memory_space<vmem>>, vector<384x128xbf16>
    %cst_125 = arith.constant dense<0.000000e+00> : vector<64x128xf32>
    %120 = tpu.matmul %118, %119, %cst_125 {dimension_numbers = #tpu.dot_dimension_numbers<[1], [0], [0], [1], [0, 0, 1, 1], [], []>} : vector<64x384xbf16>, vector<384x128xbf16>, vector<64x128xf32> -> vector<64x128xf32>
    %121 = arith.addf %115, %120 : vector<64x128xf32>
    %122 = vector.broadcast %3 : vector<1x128xf32> to vector<64x128xf32>
    %123 = arith.mulf %121, %122 : vector<64x128xf32>
    %124 = vector.broadcast %4 : vector<1x128xf32> to vector<64x128xf32>
    %125 = arith.addf %123, %124 : vector<64x128xf32>
    %126 = arith.truncf %125 : vector<64x128xf32> to vector<64x128xbf16>
    %c0_126 = arith.constant 0 : index
    %c128_127 = arith.constant 128 : index
    %c0_128 = arith.constant 0 : index
    %127 = vector.load %arg8[%c0_126, %c128_127, %c0_128] : memref<1x256x128xbf16, #tpu.memory_space<vmem>>, vector<1x64x128xbf16>
    %128 = vector.shape_cast %127 : vector<1x64x128xbf16> to vector<64x128xbf16>
    %129 = vector.shape_cast %126 : vector<64x128xbf16> to vector<1x64x128xbf16>
    tpu.vector_store %arg8[%c0_126, %c128_127, %c0_128], %129 {strides = array<i32>} : memref<1x256x128xbf16, #tpu.memory_space<vmem>>, vector<1x64x128xbf16>,
    %cst_129 = arith.constant dense<0.000000e+00> : vector<128xf32>
    %130 = vector.multi_reduction <add>, %125, %cst_129 [0] : vector<64x128xf32> to vector<128xf32>
    %131 = vector.shape_cast %130 : vector<128xf32> to vector<1x128xf32>
    %132 = arith.addf %91, %131 : vector<1x128xf32>
    %c0_130 = arith.constant 0 : index
    %c11 = arith.constant 11 : index
    %c0_131 = arith.constant 0 : index
    %c0_132 = arith.constant 0 : index
    %133 = vector.load %arg1[%c0_130, %c11, %c0_131, %c0_132] : memref<1x16x16x128xbf16, #tpu.memory_space<vmem>>, vector<1x5x16x128xbf16>
    %134 = vector.shape_cast %133 : vector<1x5x16x128xbf16> to vector<5x16x128xbf16>
    %c1_133 = arith.constant 1 : index
    %c0_134 = arith.constant 0 : index
    %c0_135 = arith.constant 0 : index
    %c128_136 = arith.constant 128 : index
    %135 = vector.load %arg9[%c1_133, %c0_134, %c0_135, %c128_136] : memref<2x6x16x384xbf16, #tpu.memory_space<vmem>>, vector<1x5x16x128xbf16>
    %136 = vector.shape_cast %135 : vector<1x5x16x128xbf16> to vector<5x16x128xbf16>
    %137 = vector.shape_cast %134 : vector<5x16x128xbf16> to vector<1x5x16x128xbf16>
    tpu.vector_store %arg9[%c1_133, %c0_134, %c0_135, %c128_136], %137 {strides = array<i32>} : memref<2x6x16x384xbf16, #tpu.memory_space<vmem>>, vector<1x5x16x128xbf16>,
    %138 = vector.extract_strided_slice %134 {offsets = [0, 0, 0], sizes = [5, 15, 128], strides = [1, 1, 1]} : vector<5x16x128xbf16> to vector<5x15x128xbf16>
    %c1_137 = arith.constant 1 : index
    %c0_138 = arith.constant 0 : index
    %c1_139 = arith.constant 1 : index
    %c0_140 = arith.constant 0 : index
    %139 = vector.load %arg9[%c1_137, %c0_138, %c1_139, %c0_140] : memref<2x6x16x384xbf16, #tpu.memory_space<vmem>>, vector<1x5x15x128xbf16>
    %140 = vector.shape_cast %139 : vector<1x5x15x128xbf16> to vector<5x15x128xbf16>
    %141 = vector.shape_cast %138 : vector<5x15x128xbf16> to vector<1x5x15x128xbf16>
    tpu.vector_store %arg9[%c1_137, %c0_138, %c1_139, %c0_140], %141 {strides = array<i32>} : memref<2x6x16x384xbf16, #tpu.memory_space<vmem>>, vector<1x5x15x128xbf16>,
    %142 = vector.extract_strided_slice %134 {offsets = [0, 1, 0], sizes = [5, 15, 128], strides = [1, 1, 1]} : vector<5x16x128xbf16> to vector<5x15x128xbf16>
    %c1_141 = arith.constant 1 : index
    %c0_142 = arith.constant 0 : index
    %c0_143 = arith.constant 0 : index
    %c256_144 = arith.constant 256 : index
    %143 = vector.load %arg9[%c1_141, %c0_142, %c0_143, %c256_144] : memref<2x6x16x384xbf16, #tpu.memory_space<vmem>>, vector<1x5x15x128xbf16>
    %144 = vector.shape_cast %143 : vector<1x5x15x128xbf16> to vector<5x15x128xbf16>
    %145 = vector.shape_cast %142 : vector<5x15x128xbf16> to vector<1x5x15x128xbf16>
    tpu.vector_store %arg9[%c1_141, %c0_142, %c0_143, %c256_144], %145 {strides = array<i32>} : memref<2x6x16x384xbf16, #tpu.memory_space<vmem>>, vector<1x5x15x128xbf16>,
    %cst_145 = arith.constant 0.000000e+00 : bf16
    %146 = vector.broadcast %cst_145 : bf16 to vector<16x384xbf16>
    %c1_146 = arith.constant 1 : index
    %c5 = arith.constant 5 : index
    %c0_147 = arith.constant 0 : index
    %c0_148 = arith.constant 0 : index
    %147 = vector.load %arg9[%c1_146, %c5, %c0_147, %c0_148] : memref<2x6x16x384xbf16, #tpu.memory_space<vmem>>, vector<1x1x16x384xbf16>
    %148 = vector.shape_cast %147 : vector<1x1x16x384xbf16> to vector<16x384xbf16>
    %149 = vector.shape_cast %146 : vector<16x384xbf16> to vector<1x1x16x384xbf16>
    tpu.vector_store %arg9[%c1_146, %c5, %c0_147, %c0_148], %149 {strides = array<i32>} : memref<2x6x16x384xbf16, #tpu.memory_space<vmem>>, vector<1x1x16x384xbf16>,
    %c1_149 = arith.constant 1 : index
    %c0_150 = arith.constant 0 : index
    %c0_151 = arith.constant 0 : index
    %c0_152 = arith.constant 0 : index
    %150 = vector.load %arg9[%c1_149, %c0_150, %c0_151, %c0_152] : memref<2x6x16x384xbf16, #tpu.memory_space<vmem>>, vector<1x4x16x384xbf16>
    %151 = vector.shape_cast %150 : vector<1x4x16x384xbf16> to vector<4x16x384xbf16>
    %152 = vector.shape_cast %151 : vector<4x16x384xbf16> to vector<64x384xbf16>
    %c0_153 = arith.constant 0 : index
    %c0_154 = arith.constant 0 : index
    %153 = vector.load %arg2[%c0_153, %c0_154] : memref<1152x128xbf16, #tpu.memory_space<vmem>>, vector<384x128xbf16>
    %cst_155 = arith.constant dense<0.000000e+00> : vector<64x128xf32>
    %154 = tpu.matmul %152, %153, %cst_155 {dimension_numbers = #tpu.dot_dimension_numbers<[1], [0], [0], [1], [0, 0, 1, 1], [], []>} : vector<64x384xbf16>, vector<384x128xbf16>, vector<64x128xf32> -> vector<64x128xf32>
    %c1_156 = arith.constant 1 : index
    %c1_157 = arith.constant 1 : index
    %c0_158 = arith.constant 0 : index
    %c0_159 = arith.constant 0 : index
    %155 = vector.load %arg9[%c1_156, %c1_157, %c0_158, %c0_159] : memref<2x6x16x384xbf16, #tpu.memory_space<vmem>>, vector<1x4x16x384xbf16>
    %156 = vector.shape_cast %155 : vector<1x4x16x384xbf16> to vector<4x16x384xbf16>
    %157 = vector.shape_cast %156 : vector<4x16x384xbf16> to vector<64x384xbf16>
    %c384_160 = arith.constant 384 : index
    %c0_161 = arith.constant 0 : index
    %158 = vector.load %arg2[%c384_160, %c0_161] : memref<1152x128xbf16, #tpu.memory_space<vmem>>, vector<384x128xbf16>
    %cst_162 = arith.constant dense<0.000000e+00> : vector<64x128xf32>
    %159 = tpu.matmul %157, %158, %cst_162 {dimension_numbers = #tpu.dot_dimension_numbers<[1], [0], [0], [1], [0, 0, 1, 1], [], []>} : vector<64x384xbf16>, vector<384x128xbf16>, vector<64x128xf32> -> vector<64x128xf32>
    %160 = arith.addf %154, %159 : vector<64x128xf32>
    %c1_163 = arith.constant 1 : index
    %c2_164 = arith.constant 2 : index
    %c0_165 = arith.constant 0 : index
    %c0_166 = arith.constant 0 : index
    %161 = vector.load %arg9[%c1_163, %c2_164, %c0_165, %c0_166] : memref<2x6x16x384xbf16, #tpu.memory_space<vmem>>, vector<1x4x16x384xbf16>
    %162 = vector.shape_cast %161 : vector<1x4x16x384xbf16> to vector<4x16x384xbf16>
    %163 = vector.shape_cast %162 : vector<4x16x384xbf16> to vector<64x384xbf16>
    %c768_167 = arith.constant 768 : index
    %c0_168 = arith.constant 0 : index
    %164 = vector.load %arg2[%c768_167, %c0_168] : memref<1152x128xbf16, #tpu.memory_space<vmem>>, vector<384x128xbf16>
    %cst_169 = arith.constant dense<0.000000e+00> : vector<64x128xf32>
    %165 = tpu.matmul %163, %164, %cst_169 {dimension_numbers = #tpu.dot_dimension_numbers<[1], [0], [0], [1], [0, 0, 1, 1], [], []>} : vector<64x384xbf16>, vector<384x128xbf16>, vector<64x128xf32> -> vector<64x128xf32>
    %166 = arith.addf %160, %165 : vector<64x128xf32>
    %167 = vector.broadcast %3 : vector<1x128xf32> to vector<64x128xf32>
    %168 = arith.mulf %166, %167 : vector<64x128xf32>
    %169 = vector.broadcast %4 : vector<1x128xf32> to vector<64x128xf32>
    %170 = arith.addf %168, %169 : vector<64x128xf32>
    %171 = arith.truncf %170 : vector<64x128xf32> to vector<64x128xbf16>
    %c0_170 = arith.constant 0 : index
    %c192 = arith.constant 192 : index
    %c0_171 = arith.constant 0 : index
    %172 = vector.load %arg8[%c0_170, %c192, %c0_171] : memref<1x256x128xbf16, #tpu.memory_space<vmem>>, vector<1x64x128xbf16>
    %173 = vector.shape_cast %172 : vector<1x64x128xbf16> to vector<64x128xbf16>
    %174 = vector.shape_cast %171 : vector<64x128xbf16> to vector<1x64x128xbf16>
    tpu.vector_store %arg8[%c0_170, %c192, %c0_171], %174 {strides = array<i32>} : memref<1x256x128xbf16, #tpu.memory_space<vmem>>, vector<1x64x128xbf16>,
    %cst_172 = arith.constant dense<0.000000e+00> : vector<128xf32>
    %175 = vector.multi_reduction <add>, %170, %cst_172 [0] : vector<64x128xf32> to vector<128xf32>
    %176 = vector.shape_cast %175 : vector<128xf32> to vector<1x128xf32>
    %177 = arith.addf %132, %176 : vector<1x128xf32>
    %cst_173 = arith.constant 3.906250e-03 : f32
    %178 = vector.broadcast %cst_173 : f32 to vector<1x128xf32>
    %179 = arith.mulf %177, %178 : vector<1x128xf32>
    %180 = arith.truncf %179 : vector<1x128xf32> to vector<1x128xbf16>
    %c0_174 = arith.constant 0 : index
    %c0_175 = arith.constant 0 : index
    %181 = vector.load %arg5[%c0_174, %c0_175] : memref<128x128xbf16, #tpu.memory_space<vmem>>, vector<128x128xbf16>
    %cst_176 = arith.constant dense<0.000000e+00> : vector<1x128xf32>
    %182 = tpu.matmul %180, %181, %cst_176 {dimension_numbers = #tpu.dot_dimension_numbers<[1], [0], [0], [1], [0, 0, 1, 1], [], []>} : vector<1x128xbf16>, vector<128x128xbf16>, vector<1x128xf32> -> vector<1x128xf32>
    %c0_177 = arith.constant 0 : index
    %c0_178 = arith.constant 0 : index
    %183 = vector.load %arg6[%c0_177, %c0_178] : memref<1x128xf32, #tpu.memory_space<vmem>>, vector<1x128xf32>
    %184 = arith.mulf %182, %183 : vector<1x128xf32>
    %c0_179 = arith.constant 0 : index
    %c0_180 = arith.constant 0 : index
    %185 = vector.load %arg7[%c0_179, %c0_180] : memref<1x128xf32, #tpu.memory_space<vmem>>, vector<1x128xf32>
    %186 = arith.addf %184, %185 : vector<1x128xf32>
    %187 = arith.negf %186 : vector<1x128xf32>
    %188 = math.exp %187 : vector<1x128xf32>
    %cst_181 = arith.constant 1.000000e+00 : f32
    %189 = vector.broadcast %cst_181 : f32 to vector<1x128xf32>
    %190 = arith.addf %189, %188 : vector<1x128xf32>
    %191 = arith.divf %189, %190 : vector<1x128xf32>
    %c0_182 = arith.constant 0 : index
    %c0_183 = arith.constant 0 : index
    %c0_184 = arith.constant 0 : index
    %192 = vector.load %arg8[%c0_182, %c0_183, %c0_184] : memref<1x256x128xbf16, #tpu.memory_space<vmem>>, vector<1x64x128xbf16>
    %193 = vector.shape_cast %192 : vector<1x64x128xbf16> to vector<64x128xbf16>
    %194 = arith.extf %193 : vector<64x128xbf16> to vector<64x128xf32>
    %195 = vector.broadcast %191 : vector<1x128xf32> to vector<64x128xf32>
    %196 = arith.mulf %194, %195 : vector<64x128xf32>
    %197 = arith.truncf %196 : vector<64x128xf32> to vector<64x128xbf16>
    %c0_185 = arith.constant 0 : index
    %c0_186 = arith.constant 0 : index
    %c0_187 = arith.constant 0 : index
    %198 = vector.load %arg8[%c0_185, %c0_186, %c0_187] : memref<1x256x128xbf16, #tpu.memory_space<vmem>>, vector<1x64x128xbf16>
    %199 = vector.shape_cast %198 : vector<1x64x128xbf16> to vector<64x128xbf16>
    %200 = vector.shape_cast %197 : vector<64x128xbf16> to vector<1x64x128xbf16>
    tpu.vector_store %arg8[%c0_185, %c0_186, %c0_187], %200 {strides = array<i32>} : memref<1x256x128xbf16, #tpu.memory_space<vmem>>, vector<1x64x128xbf16>,
    %c0_188 = arith.constant 0 : index
    %c64_189 = arith.constant 64 : index
    %c0_190 = arith.constant 0 : index
    %201 = vector.load %arg8[%c0_188, %c64_189, %c0_190] : memref<1x256x128xbf16, #tpu.memory_space<vmem>>, vector<1x64x128xbf16>
    %202 = vector.shape_cast %201 : vector<1x64x128xbf16> to vector<64x128xbf16>
    %203 = arith.extf %202 : vector<64x128xbf16> to vector<64x128xf32>
    %204 = vector.broadcast %191 : vector<1x128xf32> to vector<64x128xf32>
    %205 = arith.mulf %203, %204 : vector<64x128xf32>
    %206 = arith.truncf %205 : vector<64x128xf32> to vector<64x128xbf16>
    %c0_191 = arith.constant 0 : index
    %c64_192 = arith.constant 64 : index
    %c0_193 = arith.constant 0 : index
    %207 = vector.load %arg8[%c0_191, %c64_192, %c0_193] : memref<1x256x128xbf16, #tpu.memory_space<vmem>>, vector<1x64x128xbf16>
    %208 = vector.shape_cast %207 : vector<1x64x128xbf16> to vector<64x128xbf16>
    %209 = vector.shape_cast %206 : vector<64x128xbf16> to vector<1x64x128xbf16>
    tpu.vector_store %arg8[%c0_191, %c64_192, %c0_193], %209 {strides = array<i32>} : memref<1x256x128xbf16, #tpu.memory_space<vmem>>, vector<1x64x128xbf16>,
    %c0_194 = arith.constant 0 : index
    %c128_195 = arith.constant 128 : index
    %c0_196 = arith.constant 0 : index
    %210 = vector.load %arg8[%c0_194, %c128_195, %c0_196] : memref<1x256x128xbf16, #tpu.memory_space<vmem>>, vector<1x64x128xbf16>
    %211 = vector.shape_cast %210 : vector<1x64x128xbf16> to vector<64x128xbf16>
    %212 = arith.extf %211 : vector<64x128xbf16> to vector<64x128xf32>
    %213 = vector.broadcast %191 : vector<1x128xf32> to vector<64x128xf32>
    %214 = arith.mulf %212, %213 : vector<64x128xf32>
    %215 = arith.truncf %214 : vector<64x128xf32> to vector<64x128xbf16>
    %c0_197 = arith.constant 0 : index
    %c128_198 = arith.constant 128 : index
    %c0_199 = arith.constant 0 : index
    %216 = vector.load %arg8[%c0_197, %c128_198, %c0_199] : memref<1x256x128xbf16, #tpu.memory_space<vmem>>, vector<1x64x128xbf16>
    %217 = vector.shape_cast %216 : vector<1x64x128xbf16> to vector<64x128xbf16>
    %218 = vector.shape_cast %215 : vector<64x128xbf16> to vector<1x64x128xbf16>
    tpu.vector_store %arg8[%c0_197, %c128_198, %c0_199], %218 {strides = array<i32>} : memref<1x256x128xbf16, #tpu.memory_space<vmem>>, vector<1x64x128xbf16>,
    %c0_200 = arith.constant 0 : index
    %c192_201 = arith.constant 192 : index
    %c0_202 = arith.constant 0 : index
    %219 = vector.load %arg8[%c0_200, %c192_201, %c0_202] : memref<1x256x128xbf16, #tpu.memory_space<vmem>>, vector<1x64x128xbf16>
    %220 = vector.shape_cast %219 : vector<1x64x128xbf16> to vector<64x128xbf16>
    %221 = arith.extf %220 : vector<64x128xbf16> to vector<64x128xf32>
    %222 = vector.broadcast %191 : vector<1x128xf32> to vector<64x128xf32>
    %223 = arith.mulf %221, %222 : vector<64x128xf32>
    %224 = arith.truncf %223 : vector<64x128xf32> to vector<64x128xbf16>
    %c0_203 = arith.constant 0 : index
    %c192_204 = arith.constant 192 : index
    %c0_205 = arith.constant 0 : index
    %225 = vector.load %arg8[%c0_203, %c192_204, %c0_205] : memref<1x256x128xbf16, #tpu.memory_space<vmem>>, vector<1x64x128xbf16>
    %226 = vector.shape_cast %225 : vector<1x64x128xbf16> to vector<64x128xbf16>
    %227 = vector.shape_cast %224 : vector<64x128xbf16> to vector<1x64x128xbf16>
    tpu.vector_store %arg8[%c0_203, %c192_204, %c0_205], %227 {strides = array<i32>} : memref<1x256x128xbf16, #tpu.memory_space<vmem>>, vector<1x64x128xbf16>,
    return
  }
  func.func @transform_0(%arg0: i32) -> (i32, i32, i32, i32) {
    %c0_i32 = arith.constant 0 : i32
    %c0_i32_0 = arith.constant 0 : i32
    %c0_i32_1 = arith.constant 0 : i32
    %c0_i32_2 = arith.constant 0 : i32
    return %arg0, %c0_i32, %c0_i32_0, %c0_i32_1 : i32, i32, i32, i32
  }
  func.func @transform_1(%arg0: i32) -> (i32, i32) {
    %c0_i32 = arith.constant 0 : i32
    %c0_i32_0 = arith.constant 0 : i32
    %c0_i32_1 = arith.constant 0 : i32
    return %c0_i32, %c0_i32_0 : i32, i32
  }
  func.func @transform_2(%arg0: i32) -> (i32, i32) {
    %c0_i32 = arith.constant 0 : i32
    %c0_i32_0 = arith.constant 0 : i32
    %c0_i32_1 = arith.constant 0 : i32
    return %c0_i32, %c0_i32_0 : i32, i32
  }
  func.func @transform_3(%arg0: i32) -> (i32, i32) {
    %c0_i32 = arith.constant 0 : i32
    %c0_i32_0 = arith.constant 0 : i32
    %c0_i32_1 = arith.constant 0 : i32
    return %c0_i32, %c0_i32_0 : i32, i32
  }
  func.func @transform_4(%arg0: i32) -> (i32, i32) {
    %c0_i32 = arith.constant 0 : i32
    %c0_i32_0 = arith.constant 0 : i32
    %c0_i32_1 = arith.constant 0 : i32
    return %c0_i32, %c0_i32_0 : i32, i32
  }
  func.func @transform_5(%arg0: i32) -> (i32, i32) {
    %c0_i32 = arith.constant 0 : i32
    %c0_i32_0 = arith.constant 0 : i32
    %c0_i32_1 = arith.constant 0 : i32
    return %c0_i32, %c0_i32_0 : i32, i32
  }
  func.func @transform_6(%arg0: i32) -> (i32, i32) {
    %c0_i32 = arith.constant 0 : i32
    %c0_i32_0 = arith.constant 0 : i32
    %c0_i32_1 = arith.constant 0 : i32
    return %c0_i32, %c0_i32_0 : i32, i32
  }
  func.func @transform_7(%arg0: i32) -> (i32, i32, i32) {
    %c0_i32 = arith.constant 0 : i32
    %c0_i32_0 = arith.constant 0 : i32
    %c0_i32_1 = arith.constant 0 : i32
    return %arg0, %c0_i32, %c0_i32_0 : i32, i32, i32
  }
}

</mosaic_0001>

<bundles_post_ra>
// kernel: tpu_custom_call.1
= control target key start
LH: loop header
LB: loop body
LE: loop exit
PB: predicated region body
PF: predicated region fallthrough
CT: control target
= control target key end

     0   :  { %12 = vsyncpa [#allocation4], 0  ;;  %s9302_s0 = inlined_call_operand.hbm [shape: bf16[2,16,16,128], index: 0, kind: input, shape index: {}]   ;;  %s9303_s1 = inlined_call_operand.hbm [shape: bf16[1152,128], index: 1, kind: input, shape index: {}]   ;;  %s9304_s2 = inlined_call_operand.vmem [shape: f32[1,128], index: 2, kind: input, shape index: {}]   ;;  %s9305_s3 = inlined_call_operand.vmem [shape: f32[1,128], index: 3, kind: input, shape index: {}]   ;;  %s9306_s4 = inlined_call_operand.hbm [shape: bf16[128,128], index: 4, kind: input, shape index: {}]   ;;  %s9307_s5 = inlined_call_operand.vmem [shape: f32[1,128], index: 5, kind: input, shape index: {}]   ;;  %s9308_s6 = inlined_call_operand.vmem [shape: f32[1,128], index: 6, kind: input, shape index: {}]   ;;  %s9309_s7 = inlined_call_operand.hbm [shape: bf16[2,256,128], index: 7, kind: output, shape index: {}]  }
   0x1   :  { %14 = vsyncpa [#allocation4 + $0x1], 0 }
   0x2   :  { %15 = vsyncpa [#allocation7], 0 }
   0x3   :  { %16 = vsyncpa [#allocation5], 0 }
   0x4   :  { %18 = vsyncpa [#allocation5 + $0x1], 0  ;;  %s8295_s24 = smov 0   ;;  %s8297_s25 = smov 0  }
   0x5   :  { %s8299_s26 = smov 0   ;;  %s8301_s27 = smov 0  }
   0x6 LB: > { %s8316_s28 = sadd.s32 4294967295, %s8242_s27   ;;  %s5813_s29 = sadd.s32 4294967294, %s8242_s27   ;;  %s8242_s27 = sphi %s8301_s27, %s9339_s27   ;;  %s8238_s26 = sphi %s8299_s26, %s9338_s26   ;;  %s8234_s25 = sphi %s8297_s25, %s9337_s25   ;;  %s8230_s24 = sphi %s8295_s24, %s9336_s24  }
   0x7   : > { %p44_p0 = scmp.ne.s32.totalorder %s8234_s25, %s8230_s24  ;;  %p9310_p1 = scmp.eq.s32.totalorder %s8316_s28, 0 }
   0x8   : > { %p200_p3 = scmp.eq.s32.totalorder %s5813_s29, 1  ;;  %p5814_p5 = scmp.ge.s32.totalorder %s8242_s27, 1 }
   0x9   : > { %p8325_p4 = por %p9310_p1, %p44_p0  ;;  %p207_p7 = scmp.lt.s32.totalorder %s8242_s27, 3 }
   0xa   : > { %p8330_p6 = por %p200_p3, %p44_p0  ;;  %s8244_s10 = smov [#allocation6]  }
   0xb   : > { %s9314_s30 = scalar_select %p8325_p4, 1, 0 }
   0xc   : > { %s9315_s8 = scalar_select %p8330_p6, 1, 0 }
   0xd   : > { %p8335_p8 = pnand %p5814_p5, %p207_p7  ;;  %s219_s11 = sshll.u32 %s8244_s10, 4  ;;  %s8339_s11 = int_to_ptr.vmem [resolvable:$true] %s219_s11 }
   0xe   : > { %s8245_s13 = smov [#allocation8]   ;;  %s8086_s17 = scalar_lea.hbm %s9303_s1, 9216 }
   0xf   : > { %p7698_p9 = pneg %p8335_p8  ;;  %s238_s14 = sshll.u32 %s8245_s13, 4  ;;  %s8350_s14 = int_to_ptr.vmem [resolvable:$true] %s238_s14 }
  0x10   : > { %p8087_p12 = scmp.ne.s32.totalorder %s9303_s1, %s8086_s17  ;;  %p8093_p5 = scmp.lt.u32.totalorder %s8086_s17, %s9303_s1 }
  0x11   : > { %p8346_p11 = pnand %p7698_p9, %p9310_p1 }
  0x13   : > { %p8088_p13 = pneg %p8346_p11 }
  0x15   : > { %p8089_p0 = pnand %p8088_p13, %p8087_p12 }
  0x17   : > { %p8090_p3 = pneg %p8089_p0 }
  0x19   : > { %p8095_p7 = pnand %p8093_p5, %p8090_p3 }
  0x1b   : > { %8098 = shalt.err (!%p8095_p7)
}
  0x1c   : > { %s8099_s22 = scalar_lea.vmem %s8339_s11, 9216  ;;  %p8107_p2 = scmp.lt.s32.totalorder %s8339_s11, %s8339_s11 }
  0x1d   : > { %p8100_p9 = scmp.ne.s32.totalorder %s8339_s11, %s8099_s22  ;;  %p8108_p12 = scmp.lt.s32.totalorder %s8099_s22, %s8099_s22 }
  0x1f   : > { %p8102_p10 = pnand %p8100_p9, %p8088_p13  ;;  %p8109_p0 = por %p8108_p12, %p8107_p2 }
  0x21   : > { %p8103_p1 = pneg %p8102_p10 }
  0x23   : > { %p8110_p6 = pnand %p8109_p0, %p8103_p1 }
  0x25   : > { %8113 = shalt.err (!%p8110_p6)
}
  0x26   : > { %s9311_s23 = smov 64   ;;  %s8247_s29 = smov 4  }
  0x27   : > { %7701 = dma.hbm_to_vmem [thread:$0]  (!%p8346_p11), %s9303_s1, 9216, %s8339_s11, [#allocation7], %s9311_s23, %s9311_s23, %s8247_s29  }
  0x28   : > { %s8114_s17 = scalar_lea.hbm %s9306_s4, 1024 }
  0x29   : > { %p8115_p1 = scmp.ne.s32.totalorder %s9306_s4, %s8114_s17  ;;  %p8121_p10 = scmp.lt.u32.totalorder %s8114_s17, %s9306_s4 }
  0x2b   : > { %p8117_p2 = pnand %p8115_p1, %p8088_p13 }
  0x2d   : > { %p8118_p6 = pneg %p8117_p2 }
  0x2f   : > { %p8123_p3 = pnand %p8121_p10, %p8118_p6 }
  0x31   : > { %8126 = shalt.err (!%p8123_p3)
}
  0x32   : > { %s8127_s11 = scalar_lea.vmem %s8350_s14, 1024  ;;  %p8135_p12 = scmp.lt.s32.totalorder %s8350_s14, %s8350_s14 }
  0x33   : > { %p8128_p5 = scmp.ne.s32.totalorder %s8350_s14, %s8127_s11  ;;  %p8136_p0 = scmp.lt.s32.totalorder %s8127_s11, %s8127_s11 }
  0x35   : > { %p8130_p7 = pnand %p8128_p5, %p8088_p13  ;;  %p8137_p1 = por %p8136_p0, %p8135_p12 }
  0x37   : > { %p8131_p9 = pneg %p8130_p7 }
  0x39   : > { %p8138_p2 = pnand %p8137_p1, %p8131_p9 }
  0x3b   : > { %8141 = shalt.err (!%p8138_p2)
}
  0x3c   : > { %7704 = dma.hbm_to_vmem [thread:$0]  (!%p8346_p11), %s9306_s4, 1024, %s8350_s14, [#allocation7], %s9311_s23, %s9311_s23, %s8247_s29  }
  0x3d   : > { %s8411_s12 = sadd.s32 1, %s8242_s27   ;;  %s31_s13 = sadd.s32 1, %s8238_s26 }
  0x3e   : > { %s28_s15 = ssub.s32 %s8242_s27, %s8411_s12  ;;  %p38_p13 = scmp.ne.s32.totalorder %s8238_s26, %s8234_s25 }
  0x3f   : > { %p29_p6 = scmp.eq.s32.totalorder %s28_s15, 0  ;;  %p39_p10 = scmp.eq.s32.totalorder %s8242_s27, 0 }
  0x40   : > { %p9318_p3 = scmp.eq.s32.totalorder %s8316_s28, 1  ;;  %p7715_p7 = scmp.lt.s32.totalorder %s8242_s27, 2 }
  0x41   : > { %s8427_s17 = scalar_select %p29_p6, %s8238_s26, %s31_s13  }
  0x42   : > { %p8421_p5 = por %p9318_p3, %p38_p13  ;;  %p40_p9 = por %p39_p10, %p38_p13 }
  0x43   : > { %s258_s18 = sand.u32 1, %s8238_s26   ;;  %s6250_s14 = sshll.u32 %s8242_s27, 11 }
  0x44   : > { %s9319_s16 = scalar_select %p8421_p5, 1, 0 }
  0x45   : > { %s5818_s19 = sshll.u32 %s258_s18, 7  ;;  %s8434_s11 = scalar_lea.hbm %s9302_s0, %s6250_s14 }
  0x46   : > { %s262_s22 = scalar_lea.vmem [#allocation3], %s5818_s19  ;;  %p8438_p11 = pnand %p7715_p7, %p40_p9 }
  0x47   : > { %s269_s10 = sshll.u32 %s262_s22, 4  ;;  %s8442_s15 = scalar_lea.sflag [#allocation4], %s258_s18  ;;  %s8436_s10 = int_to_ptr.vmem [resolvable:$true] %s269_s10 }
  0x48   : > { %s8142_s23 = scalar_lea.hbm %s8434_s11, 2048  ;;  %p8144_p0 = pneg %p8438_p11 }
  0x49   : > { %p8143_p12 = scmp.ne.s32.totalorder %s8434_s11, %s8142_s23  ;;  %s8147_s20 = scalar_lea.hbm %s9302_s0, 4096 }
  0x4a   : > { %p8148_p13 = scmp.lt.u32.totalorder %s8434_s11, %s9302_s0  ;;  %p8149_p6 = scmp.lt.u32.totalorder %s8147_s20, %s8142_s23 }
  0x4b   : > { %p8145_p1 = pnand %p8144_p0, %p8143_p12  ;;  %p8151_p3 = scmp.lt.u32.totalorder %s8142_s23, %s8434_s11 }
  0x4c   : > { %p8150_p10 = por %p8149_p6, %p8148_p13 }
  0x4d   : > { %p8146_p2 = pneg %p8145_p1 }
  0x4e   : > { %p8152_p7 = por %p8151_p3, %p8150_p10 }
  0x50   : > { %p8153_p9 = pnand %p8152_p7, %p8146_p2 }
  0x52   : > { %8156 = shalt.err (!%p8153_p9)
}
  0x53   : > { %s8157_s18 = scalar_lea.vmem %s8436_s10, 2048  ;;  %s8248_s19 = smov [#allocation3]  }
  0x54   : > { %p8158_p12 = scmp.ne.s32.totalorder %s8436_s10, %s8157_s18  ;;  %s8162_s14 = sshll.u32 %s8248_s19, 4  ;;  %s8163_s14 = int_to_ptr.vmem [resolvable:$false] %s8162_s14 }
  0x55   : > { %s8164_s21 = scalar_lea.vmem %s8163_s14, 4096  ;;  %p8165_p4 = scmp.lt.s32.totalorder %s8436_s10, %s8163_s14 }
  0x56   : > { %p8160_p1 = pnand %p8158_p12, %p8144_p0  ;;  %p8166_p13 = scmp.lt.s32.totalorder %s8164_s21, %s8157_s18 }
  0x58   : > { %p8161_p5 = pneg %p8160_p1  ;;  %p8167_p6 = por %p8166_p13, %p8165_p4 }
  0x5a   : > { %p8168_p10 = pnand %p8167_p6, %p8161_p5 }
  0x5c   : > { %8171 = shalt.err (!%p8168_p10)
}
  0x5d   : > { %s9321_s23 = smov 64   ;;  %281 = sbr.rel (%p8335_p8) target bundleno = 1036 (0x40c), region = 48 }
  0x5e   : > { %7708 = dma.hbm_to_vmem [thread:$0]  (!%p8438_p11), %s8434_s11, 2048, %s8436_s10, %s8442_s15, %s9321_s23, %s9321_s23, %s8247_s29  }
  0x5f   : > { %s8476_s20 = sand.u32 (!%p8335_p8), 1, %s8234_s25   ;;  %p9322_p4 = scmp.ne.s32.totalorder (!%p8335_p8), %s9314_s30, 0 }
  0x60   : > { %s5822_s22 = sshll.u32 (!%p8335_p8), %s8476_s20, 7  ;;  %s284_s18 = scalar_lea.sflag (!%p8335_p8), [#allocation4], %s8476_s20 }
  0x61   : > { %s8482_s13 = scalar_lea.vmem (!%p8335_p8), [#allocation3], %s5822_s22 }
  0x64   : > { %8217 = dma.done.wait (%p9322_p4), %s284_s18, 2048  }
  0x65   : > { %8219 = vsyncadd (%p9322_p4), %s284_s18, 4294965248  ;;  %p9323_p5 = scmp.eq.s32.totalorder %s8316_s28, 0 }
  0x67   : > { %8221 = dma.done.wait (%p9323_p5), [#allocation7], 10240   ;;  %p9324_p8 = pmov %p9323_p5 }
  0x68   : > { %v8249_v0 = vmov 0   ;;  %v7760_v1 = vld [vmem:[#allocation6 + $0x100] sm:$0xff]   ;;  %v7763_v4 = vld [vmem:[#allocation6 + $0x108] sm:$0xff]   ;;  %vm328_vm0 = vsmask.f32 256  ;;  %v7766_v7 = vld [vmem:[#allocation6 + $0x110] sm:$0xff]  }
  0x69   : > { %8223 = vsyncadd (%p9324_p8), [#allocation7], 4294957056  ;;  %4249 = vst [vmem:[#allocation2 + $0x110] sm:$0xff] %v8249_v0  ;;  %v7761_v2 = vld [vmem:[#allocation6 + $0x140] sm:$0xff]   ;;  %6585 = vmatprep.subr.bf16.mxu0 %v7760_v1  ;;  %v7764_v5 = vld [vmem:[#allocation6 + $0x148] sm:$0xff]   ;;  %vm327_vm1 = vcmask 1040384  }
  0x6a   : > { %v7762_v3 = vld [vmem:[#allocation6 + $0xc0] sm:$0xff]   ;;  %7218 = vmatprep.subr.bf16.mxu1 %v7761_v2  ;;  %v7765_v6 = vld [vmem:[#allocation6 + $0xc8] sm:$0xff]   ;;  %v7767_v8 = vld [vmem:[#allocation6 + $0x150] sm:$0xff]   ;;  %vm367_vm2 = vsmask.f32 7966  ;;  %vm366_vm4 = vcmask 1047559  }
  0x6b   : > { %6586 = vmatpush3.bf16.msra.mxu0 %v7762_v3  ;;  %7219 = vmatpush3.bf16.msra.mxu1 %v7761_v2  ;;  %v7768_v9 = vld [vmem:[#allocation6 + $0xd0] sm:$0xff]   ;;  %v7769_v10 = vld [vmem:[#allocation6 + $0x118] sm:$0xff]   ;;  %v7772_v13 = vld [vmem:[#allocation6 + $0x120] sm:$0xff]   ;;  %vm494_vm6 = vsmask.f32 7938  ;;  %vm493_vm8 = vcmask 1047552  }
  0x6c   : > { %6587 = vmatprep.subr.bf16.mxu0 %v7763_v4  ;;  %7220 = vmatprep.subr.bf16.mxu1 %v7764_v5  ;;  %v7770_v11 = vld [vmem:[#allocation6 + $0x158] sm:$0xff]   ;;  %v7773_v14 = vld [vmem:[#allocation6 + $0x160] sm:$0xff]   ;;  %vm8494_vm3 = vmand %vm327_vm1, %vm328_vm0  ;;  %vm526_vm7 = vsmask.f32 7424  ;;  %vm8251_vm11 = vmmov 0   ;;  %s6315_s30 = sshll.u32 %s8316_s28, 11 }
  0x6d   : > { %v7771_v12 = vld [vmem:[#allocation6 + $0xd8] sm:$0xff]   ;;  %v7774_v15 = vld [vmem:[#allocation6 + $0xe0] sm:$0xff]   ;;  %v7775_v17 = vld [vmem:[#allocation6 + $0x128] sm:$0xff]   ;;  %s9234_s9 = scalar_lea.vmem [#allocation9], %s5822_s22  ;;  %s9244_s11 = scalar_lea.hbm %s9309_s7, %s6315_s30 }
  0x6e   : > { %v7776_v18 = vld [vmem:[#allocation6 + $0x168] sm:$0xff]   ;;  %vm8498_vm5 = vmand %vm366_vm4, %vm367_vm2  ;;  %v7778_v21 = vld [vmem:[#allocation6 + $0x130] sm:$0xff]   ;;  %s5721_s29 = sshll.u32 %s9234_s9, 4  ;;  %s5708_s10 = scalar_lea.sflag [#allocation5], %s8476_s20  ;;  %s9246_s29 = int_to_ptr.vmem [resolvable:$true] %s5721_s29 }
  0x6f   : > { %6588 = vmatpush3.bf16.msra.mxu0 %v7765_v6  ;;  %7221 = vmatpush3.bf16.msra.mxu1 %v7764_v5  ;;  %v7777_v20 = vld [vmem:[#allocation6 + $0xe8] sm:$0xff]   ;;  %v7779_v22 = vld [vmem:[#allocation6 + $0x170] sm:$0xff]   ;;  %v7781_v24 = vld [vmem:[#allocation6 + $0x138] sm:$0xff]   ;;  %s8172_s15 = scalar_lea.vmem %s9246_s29, 2048  ;;  %p9333_p0 = scmp.ne.s32.totalorder %s9319_s16, 0 }
  0x70   : > { %6589 = vmatprep.subr.bf16.mxu0 %v7766_v7  ;;  %7222 = vmatprep.subr.bf16.mxu1 %v7767_v8  ;;  %v7780_v23 = vld [vmem:[#allocation6 + $0xf0] sm:$0xff]   ;;  %v7782_v25 = vld [vmem:[#allocation6 + $0x178] sm:$0xff]   ;;  %v8503_v26 = vld [vmem:[%s8482_s13] sm:$0xff]   ;;  %p8173_p11 = scmp.ne.s32.totalorder %s9246_s29, %s8172_s15  ;;  %s8252_s19 = smov [#allocation9]  }
  0x71   : > { %v333_v27 = vld [vmem:[#allocation2 + $0x18] sm:$0x1]  ;;  %v372_v28 = vld [vmem:[#allocation2 + $0x28] sm:$0x80]  ;;  %v454_v29 = vshrl.u32 %v8503_v26, 16  ;;  %v457_v30 = vshll.u32 %v8503_v26, 16  ;;  %842 = vmatprep.mubr.bf16.mxu0 %v8503_v26  ;;  %vm8519_vm9 = vmand %vm493_vm8, %vm494_vm6 }
  0x72   : > { %v334_v31 = vsel %vm8494_vm3, 0, %v333_v27  ;;  %v373_v32 = vsel %vm8498_vm5, 0, %v372_v28  ;;  %v7783_v33 = vld [vmem:[#allocation6 + $0xf8] sm:$0xff]   ;;  %v7785_v36 = vld [vmem:[#allocation6 + $0x40] sm:$0xff]   ;;  %v8513_v38 = vld [vmem:[%s8482_s13 + $0x8] sm:$0xff]   ;;  %p8174_p2 = pnand %p8173_p11, %p9333_p0  ;;  %s8176_s14 = sshll.u32 %s8252_s19, 4  ;;  %s8177_s14 = int_to_ptr.vmem [resolvable:$false] %s8176_s14 }
  0x73   : > { %6590 = vmatpush3.bf16.msra.mxu0 %v7768_v9  ;;  %7223 = vmatpush3.bf16.msra.mxu1 %v7767_v8  ;;  %335 = vst [vmem:[#allocation2 + $0x18] sm:$0x1] %v334_v31  ;;  %374 = vst [vmem:[#allocation2 + $0x28] sm:$0x80] %v373_v32  ;;  %v456_v34 = vrot.slane %v454_v29, 7  ;;  %v511_v35 = vrot.slane %v457_v30, 1  ;;  %p8179_p7 = scmp.lt.s32.totalorder %s9246_s29, %s8177_s14 }
  0x74   : > { %6591 = vmatprep.subr.bf16.mxu0 %v7769_v10  ;;  %7224 = vmatprep.subr.bf16.mxu1 %v7770_v11  ;;  %v375_v37 = vld [vmem:[#allocation2 + $0x40] sm:$0x80]  ;;  %v461_v42 = vshrl.u32 %v8513_v38, 16  ;;  %v464_v43 = vshll.u32 %v8513_v38, 16  ;;  %vm8527_vm10 = vmand %vm493_vm8, %vm526_vm7  ;;  %v7789_v49 = vld [vmem:[#allocation6 + $0x48] sm:$0xff]   ;;  %p8175_p3 = pneg %p8174_p2  ;;  %s8178_s21 = scalar_lea.vmem %s8177_s14, 4096 }
  0x75   : > { %v7786_v39 = vld [vmem:[#allocation6 + $0x80] sm:$0xff]   ;;  %v376_v40 = vsel %vm8498_vm5, 0, %v375_v37  ;;  %v459_v44 = vor.u32 %v457_v30, %v456_v34  ;;  %v512_v45 = vor.u32 %v511_v35, %v454_v29  ;;  %v336_v53 = vld [vmem:[#allocation2 + $0x30] sm:$0x1]  ;;  %v7790_v56 = vld [vmem:[#allocation6 + $0x88] sm:$0xff]   ;;  %p8180_p9 = scmp.lt.s32.totalorder %s8178_s21, %s8172_s15 }
  0x76   : > { %377 = vst [vmem:[#allocation2 + $0x40] sm:$0x80] %v376_v40  ;;  %v513_v47 = vrot.slane %v464_v43, 1  ;;  %v7788_v48 = vld [vmem:[#allocation6] sm:$0xff]   ;;  %v337_v57 = vsel %vm8494_vm3, 0, %v336_v53  ;;  %v7791_v58 = vld [vmem:[#allocation6 + $0x8] sm:$0xff]  }
  0x77   : > { %6592 = vmatpush3.bf16.msra.mxu0 %v7771_v12  ;;  %7225 = vmatpush3.bf16.msra.mxu1 %v7770_v11  ;;  %338 = vst [vmem:[#allocation2 + $0x30] sm:$0x1] %v337_v57  ;;  %v463_v59 = vrot.slane %v461_v42, 7  ;;  %v7792_v62 = vld [vmem:[#allocation6 + $0x50] sm:$0xff]   ;;  %v339_v4 = vld [vmem:[#allocation2 + $0x48] sm:$0x1]  ;;  %p8181_p12 = por %p8180_p9, %p8179_p7 }
  0x78   : > { %6593 = vmatprep.subr.bf16.mxu0 %v7772_v13  ;;  %7226 = vmatprep.subr.bf16.mxu1 %v7773_v14  ;;  %v514_v52 = vor.u32 %v513_v47, %v461_v42  ;;  %v7793_v1 = vld [vmem:[#allocation6 + $0x90] sm:$0xff]   ;;  %v7795_v6 = vld [vmem:[#allocation6 + $0x58] sm:$0xff]   ;;  %v340_v7 = vsel %vm8494_vm3, 0, %v339_v4  ;;  %v7803_v27 = vld [vmem:[#allocation6 + $0xa8] sm:$0xff]  }
  0x79   : > { %v466_v63 = vor.u32 %v464_v43, %v463_v59  ;;  %v7794_v2 = vld [vmem:[#allocation6 + $0x10] sm:$0xff]   ;;  %341 = vst [vmem:[#allocation2 + $0x48] sm:$0x1] %v340_v7  ;;  %v7796_v11 = vld [vmem:[#allocation6 + $0x98] sm:$0xff]   ;;  %v7815_v7 = vld [vmem:[%s8482_s13 + $0x40] sm:$0xff]   ;;  %p8182_p1 = pnand %p8181_p12, %p8175_p3 }
  0x7a   : > { %v496_v50 = vld [vmem:[#allocation2 + $0x18] sm:$0xff]  ;;  %v528_v51 = vld [vmem:[#allocation2 + $0x28] sm:$0xff]  ;;  %v8550_v3 = vld [vmem:[%s8482_s13 + $0x10] sm:$0xff]   ;;  %2929 = vst [vmem:[#allocation2 + $0x20] sm:$0xff] %v7815_v7 }
  0x7b   : > { %6594 = vmatpush3.bf16.msra.mxu0 %v7774_v15  ;;  %7227 = vmatpush3.bf16.msra.mxu1 %v7773_v14  ;;  %v8533_v54 = vsel %vm8519_vm9, %v459_v44, %v496_v50  ;;  %v8537_v55 = vsel %vm8527_vm10, %v512_v45, %v528_v51  ;;  %v468_v9 = vshrl.u32 %v8550_v3, 16  ;;  %v471_v10 = vshll.u32 %v8550_v3, 16  ;;  %v7797_v12 = vld [vmem:[#allocation6 + $0x18] sm:$0xff]   ;;  %v7799_v14 = vld [vmem:[#allocation6 + $0x60] sm:$0xff]   ;;  %v381_v34 = vld [vmem:[#allocation2 + $0x70] sm:$0x80] }
  0x7c   : > { %6595 = vmatprep.subr.bf16.mxu0 %v7775_v17  ;;  %7228 = vmatprep.subr.bf16.mxu1 %v7776_v18  ;;  %v7800_v15 = vld [vmem:[#allocation6 + $0xa0] sm:$0xff]   ;;  %v7806_v37 = vld [vmem:[#allocation6 + $0x70] sm:$0xff]   ;;  %v7809_v45 = vld [vmem:[#allocation6 + $0x78] sm:$0xff]  }
  0x7d   : > { %7234 = vmatprep.mubr.bf16.mxu1 %v8537_v55  ;;  %v531_v60 = vld [vmem:[#allocation2 + $0x40] sm:$0xff]  ;;  %v470_v13 = vrot.slane %v468_v9, 7  ;;  %v7807_v43 = vld [vmem:[#allocation6 + $0xb0] sm:$0xff]   ;;  %v7812_v50 = vld [vmem:[%s8482_s13 + $0x38] sm:$0xff]  }
  0x7e   : > { %v8546_v61 = vsel %vm8527_vm10, %v514_v52, %v531_v60  ;;  %v499_v5 = vld [vmem:[#allocation2 + $0x30] sm:$0xff]  ;;  %v7810_v53 = vld [vmem:[#allocation6 + $0xb8] sm:$0xff]   ;;  %2928 = vst [vmem:[#allocation2 + $0x8] sm:$0xff] %v7812_v50  ;;  %v2938_v59 = vshll.u32 %v7812_v50, 16  ;;  %v7939_v46 = vld [vmem:[#allocation6 + $0x160] sm:$0xff]  }
  0x7f   : > { %6596 = vmatpush3.bf16.msra.mxu0 %v7777_v20  ;;  %7229 = vmatpush3.bf16.msra.mxu1 %v7776_v18  ;;  %v8556_v8 = vsel %vm8519_vm9, %v466_v63, %v499_v5  ;;  %v473_v17 = vor.u32 %v471_v10, %v470_v13  ;;  %v7801_v18 = vld [vmem:[#allocation6 + $0x20] sm:$0xff]   ;;  %v7802_v20 = vld [vmem:[#allocation6 + $0x68] sm:$0xff]   ;;  %v7808_v44 = vld [vmem:[#allocation6 + $0x30] sm:$0xff]   ;;  %v2945_v13 = vshll.u32 %v7815_v7, 16 }
  0x80   : > { %6597 = vmatprep.subr.bf16.mxu0 %v7778_v21  ;;  %7230 = vmatprep.subr.bf16.mxu1 %v7779_v22  ;;  %v515_v21 = vrot.slane %v471_v10, 1  ;;  %v369_v57 = vld [vmem:[#allocation2 + $0x10] sm:$0x80]  ;;  %v3000_v5 = vrot.slane %v2938_v59, 1  ;;  %v7943_v16 = vld [vmem:[#allocation6 + $0xe8] sm:$0xff]  }
  0x82   : > { %v516_v42 = vor.u32 %v515_v21, %v468_v9 }
  0x83   : > { %6598 = vmatpush3.bf16.msra.mxu0 %v7780_v23  ;;  %7231 = vmatpush3.bf16.msra.mxu1 %v7779_v22  ;;  %v8563_v22 = vld [vmem:[%s8482_s13 + $0x18] sm:$0xff]   ;;  %v342_v23 = vld [vmem:[#allocation2 + $0x60] sm:$0x1] }
  0x84   : > { %6599 = vmatprep.subr.bf16.mxu0 %v7781_v24  ;;  %7232 = vmatprep.subr.bf16.mxu1 %v7782_v25  ;;  %v378_v24 = vld [vmem:[#allocation2 + $0x58] sm:$0x80]  ;;  %v343_v28 = vsel %vm8494_vm3, 0, %v342_v23  ;;  %v475_v31 = vshrl.u32 %v8563_v22, 16  ;;  %v478_v32 = vshll.u32 %v8563_v22, 16 }
  0x85   : > { %v379_v29 = vsel %vm8498_vm5, 0, %v378_v24  ;;  %344 = vst [vmem:[#allocation2 + $0x60] sm:$0x1] %v343_v28  ;;  %v7818_v24 = vld [vmem:[#allocation6 + $0x208] sm:$0xff]  }
  0x86   : > { %380 = vst [vmem:[#allocation2 + $0x58] sm:$0x80] %v379_v29  ;;  %v477_v35 = vrot.slane %v475_v31, 7  ;;  %v7820_v29 = vld [vmem:[#allocation6 + $0x1d0] sm:$0xff]  }
  0x87   : > { %6600 = vmatpush3.bf16.msra.mxu0 %v7783_v33  ;;  %7233 = vmatpush3.bf16.msra.mxu1 %v7782_v25  ;;  %v502_v25 = vld [vmem:[#allocation2 + $0x48] sm:$0xff] }
  0x88   : > { %6637 = vmatprep.subr.bf16.mxu0 %v7785_v36  ;;  %7242 = vmatprep.subr.bf16.mxu1 %v7786_v39  ;;  %v8571_v30 = vsel %vm8519_vm9, %v473_v17, %v502_v25  ;;  %v7804_v33 = vld [vmem:[#allocation6 + $0x28] sm:$0xff]   ;;  %v517_v36 = vrot.slane %v478_v32, 1  ;;  %v480_v40 = vor.u32 %v478_v32, %v477_v35  ;;  %v7822_v32 = vld [vmem:[#allocation6 + $0x190] sm:$0xff]   ;;  %v7827_v35 = vld [vmem:[#allocation6 + $0x220] sm:$0xff]  }
  0x89   : > { %v7819_v25 = vld [vmem:[#allocation6 + $0x188] sm:$0xff]  }
  0x8a   : > { %843 = vmatmul.mubr.bf16.vlgmr.msra.gmra.mrb[0].mxu0 %v8533_v54  ;;  %7235 = vmatmul.mubr.bf16.vlgmr.msra.gmra.mrb[0].mxu1 %v8546_v61 }
  0x8b   : > { %6638 = vmatpush3.bf16.msra.mxu0 %v7788_v48  ;;  %850 = vmatprep.mubr.bf16.mxu0 %v8513_v38 }
  0x8c   : > { %6639 = vmatprep.subr.bf16.mxu0 %v7789_v49  ;;  %7243 = vmatpush3.bf16.msra.mxu1 %v7786_v39  ;;  %v382_v39 = vsel %vm8498_vm5, 0, %v381_v34  ;;  %v505_v47 = vld [vmem:[#allocation2 + $0x60] sm:$0xff]  ;;  %v518_v49 = vor.u32 %v517_v36, %v475_v31  ;;  %v7821_v31 = vld [vmem:[#allocation6 + $0x210] sm:$0xff]  }
  0x8d   : > { %7244 = vmatprep.subr.bf16.mxu1 %v7790_v56  ;;  %383 = vst [vmem:[#allocation2 + $0x70] sm:$0x80] %v382_v39  ;;  %v534_v48 = vld [vmem:[#allocation2 + $0x58] sm:$0xff]  ;;  %v8582_v51 = vsel %vm8519_vm9, %v480_v40, %v505_v47  ;;  %v7826_v34 = vld [vmem:[#allocation6 + $0x1e0] sm:$0xff]   ;;  %v7831_v39 = vld [vmem:[#allocation6 + $0x1a8] sm:$0xff]  }
  0x8e   : > { %v8586_v52 = vsel %vm8527_vm10, %v516_v42, %v534_v48  ;;  %v7828_v36 = vld [vmem:[#allocation6 + $0x1a0] sm:$0xff]   ;;  %v7832_v40 = vld [vmem:[#allocation6 + $0x1f0] sm:$0xff]   ;;  %v7838_v42 = vld [vmem:[%s8482_s13 + $0x48] sm:$0xff]  }
  0x8f   : > { %6640 = vmatpush3.bf16.msra.mxu0 %v7791_v58  ;;  %7238 = vmatprep.mubr.bf16.mxu1 %v8586_v52  ;;  %v2935_v58 = vshrl.u32 %v7812_v50, 16  ;;  %v7835_v47 = vld [vmem:[#allocation6 + $0x1f8] sm:$0xff]   ;;  %2930 = vst [vmem:[#allocation2 + $0x38] sm:$0xff] %v7838_v42  ;;  %v2949_v48 = vshrl.u32 %v7838_v42, 16 }
  0x90   : > { %6641 = vmatprep.subr.bf16.mxu0 %v7792_v62  ;;  %7245 = vmatpush3.bf16.msra.mxu1 %v7790_v56  ;;  %v330_v56 = vld [vmem:[#allocation2] sm:$0x1]  ;;  %v370_v62 = vsel %vm8498_vm5, 0, %v369_v57 }
  0x91   : > { %7246 = vmatprep.subr.bf16.mxu1 %v7793_v1  ;;  %v331_v60 = vsel %vm8494_vm3, 0, %v330_v56  ;;  %371 = vst [vmem:[#allocation2 + $0x10] sm:$0x80] %v370_v62  ;;  %v2937_v4 = vrot.slane %v2935_v58, 7  ;;  %v3001_v10 = vor.u32 %v3000_v5, %v2935_v58  ;;  %v2951_v56 = vrot.slane %v2949_v48, 7 }
  0x92   : > { %851 = vmatmul.mubr.bf16.gmra.mrb[4].mxu0 %v8556_v8  ;;  %332 = vst [vmem:[#allocation2] sm:$0x1] %v331_v60 }
  0x93   : > { %6642 = vmatpush3.bf16.msra.mxu0 %v7794_v2  ;;  %858 = vmatprep.mubr.bf16.mxu0 %v8550_v3  ;;  %v2940_v9 = vor.u32 %v2938_v59, %v2937_v4  ;;  %v3019_v17 = vsel %vm8527_vm10, %v3001_v10, 0  ;;  %v7836_v59 = vld [vmem:[#allocation6 + $0x238] sm:$0xff]  }
  0x94   : > { %6643 = vmatprep.subr.bf16.mxu0 %v7795_v6  ;;  %7247 = vmatpush3.bf16.msra.mxu1 %v7793_v1  ;;  %v537_v63 = vld [vmem:[#allocation2 + $0x70] sm:$0xff]  ;;  %v7811_v1 = vld [vmem:[#allocation6 + $0x38] sm:$0xff]   ;;  %v7813_v6 = vld [vmem:[#allocation6 + $0x1c0] sm:$0xff]   ;;  %3020 = vst [vmem:[#allocation2 + $0x10] sm:$0xff] %v3019_v17 }
  0x95   : > { %7248 = vmatprep.subr.bf16.mxu1 %v7796_v11  ;;  %v8596_v2 = vsel %vm8527_vm10, %v518_v49, %v537_v63  ;;  %v2952_v49 = vshll.u32 %v7838_v42, 16  ;;  %v7843_v17 = vld [vmem:[#allocation6 + $0x108] sm:$0xff]   ;;  %v7853_v42 = vld [vmem:[#allocation6 + $0x158] sm:$0xff]  }
  0x96   : > { %7239 = vmatmul.mubr.bf16.gmra.mrb[4].mxu1 %v8596_v2 }
  0x97   : > { %6644 = vmatpush3.bf16.msra.mxu0 %v7797_v12  ;;  %7258 = vmatprep.mubr.bf16.mxu1 %v8249_v0  ;;  %v2942_v12 = vshrl.u32 %v7815_v7, 16  ;;  %v3004_v57 = vrot.slane %v2952_v49, 1  ;;  %v2954_v62 = vor.u32 %v2952_v49, %v2951_v56  ;;  %v7840_v7 = vld [vmem:[#allocation6 + $0x100] sm:$0xff]   ;;  %v7859_v56 = vld [vmem:[#allocation6 + $0x168] sm:$0xff]  }
  0x98   : > { %6645 = vmatprep.subr.bf16.mxu0 %v7799_v14  ;;  %7249 = vmatpush3.bf16.msra.mxu1 %v7796_v11  ;;  %v7814_v11 = vld [vmem:[#allocation6 + $0x200] sm:$0xff]  }
  0x99   : > { %7250 = vmatprep.subr.bf16.mxu1 %v7800_v15  ;;  %v7816_v14 = vld [vmem:[#allocation6 + $0x180] sm:$0xff]   ;;  %v2944_v21 = vrot.slane %v2942_v12, 7  ;;  %v3005_v60 = vor.u32 %v3004_v57, %v2949_v48  ;;  %v7860_v57 = vld [vmem:[#allocation6 + $0xe8] sm:$0xff]  }
  0x9a   : > { %859 = vmatmul.mubr.bf16.gmra.mrb[8].mxu0 %v8571_v30  ;;  %v7856_v48 = vld [vmem:[#allocation6 + $0x160] sm:$0xff]  }
  0x9b   : > { %6646 = vmatpush3.bf16.msra.mxu0 %v7801_v18  ;;  %866 = vmatprep.mubr.bf16.mxu0 %v8563_v22  ;;  %v3002_v18 = vrot.slane %v2945_v13, 1  ;;  %v3025_v5 = vsel %vm8527_vm10, %v3005_v60, %v8546_v61  ;;  %v8680_v60 = vld [vmem:[%s8482_s13 + $0x20] sm:$0xff]  }
  0x9c   : > { %6647 = vmatprep.subr.bf16.mxu0 %v7802_v20  ;;  %7251 = vmatpush3.bf16.msra.mxu1 %v7800_v15  ;;  %v2983_v15 = vsel %vm8519_vm9, %v2940_v9, 0  ;;  %v7817_v20 = vld [vmem:[#allocation6 + $0x1c8] sm:$0xff]   ;;  %3026 = vst [vmem:[#allocation2 + $0x40] sm:$0xff] %v3025_v5  ;;  %v1706_v5 = vshll.u32 %v8680_v60, 16 }
  0x9d   : > { %7252 = vmatprep.subr.bf16.mxu1 %v7803_v27  ;;  %2984 = vst [vmem:[#allocation2] sm:$0xff] %v2983_v15  ;;  %v3003_v23 = vor.u32 %v3002_v18, %v2942_v12  ;;  %v7846_v12 = vld [vmem:[%s8482_s13 + $0x58] sm:$0xff]   ;;  %v8642_v15 = vld [vmem:[%s8482_s13 + $0x20] sm:$0xff]  }
  0x9e   : > { %v2966_v18 = vshll.u32 %v7846_v12, 16  ;;  %2932 = vst [vmem:[#allocation2 + $0x68] sm:$0xff] %v7846_v12 }
  0x9f   : > { %6648 = vmatpush3.bf16.msra.mxu0 %v7804_v33  ;;  %v3022_v28 = vsel %vm8527_vm10, %v3003_v23, %v8537_v55  ;;  %v7823_v33 = vld [vmem:[#allocation6 + $0x1d8] sm:$0xff]   ;;  %v485_v23 = vshll.u32 %v8642_v15, 16 }
  0xa0   : > { %6649 = vmatprep.subr.bf16.mxu0 %v7806_v37  ;;  %7253 = vmatpush3.bf16.msra.mxu1 %v7803_v27  ;;  %v2947_v27 = vor.u32 %v2945_v13, %v2944_v21  ;;  %3023 = vst [vmem:[#allocation2 + $0x28] sm:$0xff] %v3022_v28  ;;  %v7830_v37 = vld [vmem:[#allocation6 + $0x228] sm:$0xff]   ;;  %v482_v21 = vshrl.u32 %v8642_v15, 16 }
  0xa1   : > { %7254 = vmatprep.subr.bf16.mxu1 %v7807_v43  ;;  %v384_v13 = vld [vmem:[#allocation2 + $0x88] sm:$0x80] }
  0xa2   : > { %867 = vmatmul.mubr.bf16.gmra.mrb[12].mxu0 %v8582_v51  ;;  %v484_v49 = vrot.slane %v482_v21, 7 }
  0xa3   : > { %6650 = vmatpush3.bf16.msra.mxu0 %v7808_v44  ;;  %1116 = vmatprep.mubr.bf16.mxu0 %v8249_v0  ;;  %v7839_v44 = vld [vmem:[%s8482_s13 + $0x50] sm:$0xff]  }
  0xa4   : > { %6651 = vmatprep.subr.bf16.mxu0 %v7809_v45  ;;  %7255 = vmatpush3.bf16.msra.mxu1 %v7807_v43  ;;  %v7833_v43 = vld [vmem:[#allocation6 + $0x230] sm:$0xff]   ;;  %v2956_v50 = vshrl.u32 %v7839_v44, 16  ;;  %2931 = vst [vmem:[#allocation2 + $0x50] sm:$0xff] %v7839_v44 }
  0xa5   : > { %7256 = vmatprep.subr.bf16.mxu1 %v7810_v53  ;;  %v7834_v45 = vld [vmem:[#allocation6 + $0x1b0] sm:$0xff]  }
  0xa6   : > { %v2958_v63 = vrot.slane %v2956_v50, 7 }
  0xa7   : > { %6652 = vmatpush3.bf16.msra.mxu0 %v7811_v1  ;;  %v7837_v1 = vld [vmem:[#allocation6 + $0x1b8] sm:$0xff]  }
  0xa8   : > { %6689 = vmatprep.subr.bf16.mxu0 %v7813_v6  ;;  %7257 = vmatpush3.bf16.msra.mxu1 %v7810_v53  ;;  %v2959_v53 = vshll.u32 %v7839_v44, 16  ;;  %v2989_v6 = vsel %vm8519_vm9, %v2954_v62, %v8556_v8  ;;  %v7855_v44 = vld [vmem:[#allocation6 + $0x120] sm:$0xff]   ;;  %v351_v62 = vld [vmem:[#allocation2 + $0xa8] sm:$0x1] }
  0xa9   : > { %7266 = vmatprep.subr.bf16.mxu1 %v7814_v11  ;;  %2990 = vst [vmem:[#allocation2 + $0x30] sm:$0xff] %v2989_v6  ;;  %v352_v6 = vsel %vm8494_vm3, 0, %v351_v62  ;;  %v8733_v62 = vld [vmem:[%s8482_s13 + $0x38] sm:$0xff]  }
  0xaa   : > { %1117 = vmatmul.mubr.bf16.vlgmr.msra.gmra.mrb[16].mxu0 %v8249_v0  ;;  %v2986_v0 = vsel %vm8519_vm9, %v2947_v27, %v8533_v54  ;;  %v3006_v58 = vrot.slane %v2959_v53, 1  ;;  %v2961_v9 = vor.u32 %v2959_v53, %v2958_v63  ;;  %v3008_v27 = vrot.slane %v2966_v18, 1  ;;  %v7858_v53 = vld [vmem:[#allocation6 + $0x128] sm:$0xff]   ;;  %v390_v63 = vld [vmem:[#allocation2 + $0xb8] sm:$0x80] }
  0xab   : > { %6690 = vmatpush3.bf16.msra.mxu0 %v7816_v14  ;;  %1124 = vmatprep.mubr.bf16.mxu0 %v8503_v26  ;;  %2987 = vst [vmem:[#allocation2 + $0x18] sm:$0xff] %v2986_v0  ;;  %v7824_v26 = vld [vmem:[#allocation6 + $0x218] sm:$0xff]   ;;  %v385_v14 = vsel %vm8498_vm5, 0, %v384_v13  ;;  %v7845_v0 = vld [vmem:[#allocation6 + $0xc8] sm:$0xff]   ;;  %353 = vst [vmem:[#allocation2 + $0xa8] sm:$0x1] %v352_v6 }
  0xac   : > { %6691 = vmatprep.subr.bf16.mxu0 %v7817_v20  ;;  %7259 = vmatmul.mubr.bf16.vlgmr.msra.gmra.mrb[0].mxu1 %v8537_v55  ;;  %v7825_v55 = vld [vmem:[#allocation6 + $0x198] sm:$0xff]   ;;  %v3007_v4 = vor.u32 %v3006_v58, %v2956_v50  ;;  %386 = vst [vmem:[#allocation2 + $0x88] sm:$0x80] %v385_v14  ;;  %v8645_v20 = vld [vmem:[%s8482_s13 + $0x60] sm:$0xff]   ;;  %v7861_v58 = vld [vmem:[#allocation6 + $0x130] sm:$0xff]  }
  0xad   : > { %7267 = vmatpush3.bf16.msra.mxu1 %v7814_v11  ;;  %7262 = vmatprep.mubr.bf16.mxu1 %v8546_v61  ;;  %v7841_v11 = vld [vmem:[#allocation6 + $0x140] sm:$0xff]   ;;  %v2970_v28 = vshrl.u32 %v8645_v20, 16  ;;  %2933 = vst [vmem:[#allocation2 + $0x80] sm:$0xff] %v8645_v20  ;;  %v393_v13 = vld [vmem:[#allocation2 + $0xd0] sm:$0x80]  ;;  %v7864_v14 = vld [vmem:[#allocation6 + $0x138] sm:$0xff]  }
  0xae   : > { %7268 = vmatprep.subr.bf16.mxu1 %v7818_v24  ;;  %v3028_v10 = vsel %vm8527_vm10, %v3007_v4, %v8586_v52  ;;  %v7862_v4 = vld [vmem:[#allocation6 + $0x170] sm:$0xff]  }
  0xaf   : > { %6692 = vmatpush3.bf16.msra.mxu0 %v7819_v25  ;;  %3029 = vst [vmem:[#allocation2 + $0x58] sm:$0xff] %v3028_v10  ;;  %v2963_v25 = vshrl.u32 %v7846_v12, 16  ;;  %v2972_v50 = vrot.slane %v2970_v28, 7  ;;  %v1763_v12 = vrot.slane %v1706_v5, 1 }
  0xb0   : > { %6693 = vmatprep.subr.bf16.mxu0 %v7820_v29  ;;  %v2973_v29 = vshll.u32 %v8645_v20, 16 }
  0xb1   : > { %7269 = vmatpush3.bf16.msra.mxu1 %v7818_v24  ;;  %v7844_v24 = vld [vmem:[#allocation6 + $0x148] sm:$0xff]  }
  0xb2   : > { %1125 = vmatmul.mubr.bf16.gmra.mrb[20].mxu0 %v8533_v54  ;;  %7270 = vmatprep.subr.bf16.mxu1 %v7821_v31  ;;  %v7829_v54 = vld [vmem:[#allocation6 + $0x1e8] sm:$0xff]   ;;  %v8848_v41 = vld [vmem:[#allocation2 + $0x18] sm:$0xff] }
  0xb3   : > { %6694 = vmatpush3.bf16.msra.mxu0 %v7822_v32  ;;  %1132 = vmatprep.mubr.bf16.mxu0 %v8513_v38  ;;  %v3009_v32 = vor.u32 %v3008_v27, %v2963_v25  ;;  %v7868_v27 = vld [vmem:[#allocation6 + $0x40] sm:$0xff]  }
  0xb4   : > { %6695 = vmatprep.subr.bf16.mxu0 %v7823_v33  ;;  %7263 = vmatmul.mubr.bf16.gmra.mrb[4].mxu1 %v8586_v52  ;;  %v3010_v33 = vrot.slane %v2973_v29, 1 }
  0xb5   : > { %7271 = vmatpush3.bf16.msra.mxu1 %v7821_v31  ;;  %7282 = vmatprep.mubr.bf16.mxu1 %v8546_v61  ;;  %v2992_v61 = vsel %vm8519_vm9, %v2961_v9, %v8571_v30  ;;  %v519_v31 = vrot.slane %v485_v23, 1 }
  0xb6   : > { %7272 = vmatprep.subr.bf16.mxu1 %v7824_v26  ;;  %2993 = vst [vmem:[#allocation2 + $0x48] sm:$0xff] %v2992_v61  ;;  %v8694_v61 = vld [vmem:[%s8482_s13 + $0x28] sm:$0xff]  }
  0xb7   : > { %6696 = vmatpush3.bf16.msra.mxu0 %v7825_v55  ;;  %v520_v55 = vor.u32 %v519_v31, %v482_v21  ;;  %v1710_v21 = vshrl.u32 %v8694_v61, 16  ;;  %v354_v31 = vld [vmem:[#allocation2 + $0xc0] sm:$0x1] }
  0xb8   : > { %6697 = vmatprep.subr.bf16.mxu0 %v7826_v34  ;;  %v3011_v34 = vor.u32 %v3010_v33, %v2970_v28  ;;  %v1746_v28 = vld [vmem:[#allocation2 + $0xa8] sm:$0xff] }
  0xb9   : > { %7273 = vmatpush3.bf16.msra.mxu1 %v7824_v26  ;;  %v7849_v26 = vld [vmem:[#allocation6 + $0x110] sm:$0xff]  }
  0xba   : > { %1133 = vmatmul.mubr.bf16.gmra.mrb[24].mxu0 %v8556_v8  ;;  %7274 = vmatprep.subr.bf16.mxu1 %v7827_v35 }
  0xbb   : > { %6698 = vmatpush3.bf16.msra.mxu0 %v7828_v36  ;;  %1140 = vmatprep.mubr.bf16.mxu0 %v8550_v3  ;;  %v540_v36 = vld [vmem:[#allocation2 + $0x88] sm:$0xff] }
  0xbc   : > { %6699 = vmatprep.subr.bf16.mxu0 %v7829_v54  ;;  %v7850_v54 = vld [vmem:[#allocation6 + $0x150] sm:$0xff]  }
  0xbd   : > { %7275 = vmatpush3.bf16.msra.mxu1 %v7827_v35  ;;  %v2965_v35 = vrot.slane %v2963_v25, 7 }
  0xbe   : > { %7276 = vmatprep.subr.bf16.mxu1 %v7830_v37 }
  0xbf   : > { %6700 = vmatpush3.bf16.msra.mxu0 %v7831_v39  ;;  %v2968_v39 = vor.u32 %v2966_v18, %v2965_v35  ;;  %v7865_v18 = vld [vmem:[#allocation6 + $0x178] sm:$0xff]   ;;  %v1712_v35 = vrot.slane %v1710_v21, 7 }
  0xc0   : > { %6701 = vmatprep.subr.bf16.mxu0 %v7832_v40  ;;  %v7852_v40 = vld [vmem:[#allocation6 + $0x118] sm:$0xff]  }
  0xc1   : > { %7277 = vmatpush3.bf16.msra.mxu1 %v7830_v37  ;;  %v7851_v37 = vld [vmem:[#allocation6 + $0xd0] sm:$0xff]  }
  0xc2   : > { %1141 = vmatmul.mubr.bf16.gmra.mrb[28].mxu0 %v8571_v30  ;;  %7278 = vmatprep.subr.bf16.mxu1 %v7833_v43 }
  0xc3   : > { %6702 = vmatpush3.bf16.msra.mxu0 %v7834_v45  ;;  %1451 = vmatprep.mubr.bf16.mxu0 %v8513_v38  ;;  %v7842_v38 = vld [vmem:[#allocation6 + $0xc0] sm:$0xff]   ;;  %v345_v45 = vld [vmem:[#allocation2 + $0x78] sm:$0x1] }
  0xc4   : > { %6703 = vmatprep.subr.bf16.mxu0 %v7835_v47  ;;  %v346_v47 = vsel %vm8494_vm3, 0, %v345_v45 }
  0xc5   : > { %7279 = vmatpush3.bf16.msra.mxu1 %v7833_v43  ;;  %v7854_v43 = vld [vmem:[#allocation6 + $0xd8] sm:$0xff]   ;;  %347 = vst [vmem:[#allocation2 + $0x78] sm:$0x1] %v346_v47 }
  0xc6   : > { %7280 = vmatprep.subr.bf16.mxu1 %v7836_v59 }
  0xc7   : > { %6704 = vmatpush3.bf16.msra.mxu0 %v7837_v1 }
  0xc8   : > { %6741 = vmatprep.subr.bf16.mxu0 %v7840_v7  ;;  %v391_v7 = vsel %vm8498_vm5, 0, %v390_v63  ;;  %v360_v63 = vld [vmem:[#allocation2 + $0xf0] sm:$0x1] }
  0xc9   : > { %7281 = vmatpush3.bf16.msra.mxu1 %v7836_v59  ;;  %v2975_v59 = vor.u32 %v2973_v29, %v2972_v50  ;;  %392 = vst [vmem:[#allocation2 + $0xb8] sm:$0x80] %v391_v7  ;;  %v7879_v50 = vld [vmem:[#allocation6 + $0x98] sm:$0xff]  }
  0xca   : > { %1452 = vmatmul.mubr.bf16.vlgmr.msra.gmra.mrb[32].mxu0 %v8556_v8  ;;  %7290 = vmatprep.subr.bf16.mxu1 %v7841_v11  ;;  %v3031_v8 = vsel %vm8527_vm10, %v3009_v32, %v8596_v2 }
  0xcb   : > { %6742 = vmatpush3.bf16.msra.mxu0 %v7842_v38  ;;  %1459 = vmatprep.mubr.bf16.mxu0 %v8550_v3  ;;  %3032 = vst [vmem:[#allocation2 + $0x70] sm:$0xff] %v3031_v8  ;;  %v541_v3 = vsel %vm8527_vm10, %v520_v55, %v540_v36  ;;  %v355_v55 = vsel %vm8494_vm3, 0, %v354_v31 }
  0xcc   : > { %6743 = vmatprep.subr.bf16.mxu0 %v7843_v17  ;;  %7283 = vmatmul.mubr.bf16.vlgmr.msra.gmra.mrb[0].mxu1 %v8586_v52  ;;  %v3034_v52 = vsel %vm8527_vm10, %v3011_v34, %v541_v3  ;;  %v508_v1 = vld [vmem:[#allocation2 + $0x78] sm:$0xff]  ;;  %v1713_v17 = vshll.u32 %v8694_v61, 16  ;;  %v7872_v34 = vld [vmem:[#allocation6 + $0x48] sm:$0xff]   ;;  %356 = vst [vmem:[#allocation2 + $0xc0] sm:$0x1] %v355_v55 }
  0xcd   : > { %7291 = vmatpush3.bf16.msra.mxu1 %v7841_v11  ;;  %7286 = vmatprep.mubr.bf16.mxu1 %v8596_v2  ;;  %3035 = vst [vmem:[#allocation2 + $0x88] sm:$0xff] %v3034_v52  ;;  %v2995_v2 = vsel %vm8519_vm9, %v2968_v39, %v8582_v51  ;;  %v7863_v11 = vld [vmem:[#allocation6 + $0xf0] sm:$0xff]  }
  0xce   : > { %7292 = vmatprep.subr.bf16.mxu1 %v7844_v24  ;;  %2996 = vst [vmem:[#allocation2 + $0x60] sm:$0xff] %v2995_v2  ;;  %v1765_v25 = vrot.slane %v1713_v17, 1  ;;  %v1715_v39 = vor.u32 %v1713_v17, %v1712_v35  ;;  %v7875_v52 = vld [vmem:[#allocation6 + $0x50] sm:$0xff]   ;;  %v7887_v17 = vld [vmem:[#allocation6 + $0x28] sm:$0xff]  }
  0xcf   : > { %6744 = vmatpush3.bf16.msra.mxu0 %v7845_v0  ;;  %v7869_v0 = vld [vmem:[#allocation6 + $0x80] sm:$0xff]   ;;  %v8720_v2 = vld [vmem:[%s8482_s13 + $0x30] sm:$0xff]  }
  0xd0   : > { %6745 = vmatprep.subr.bf16.mxu0 %v7849_v26  ;;  %v1782_v29 = vld [vmem:[#allocation2 + $0xb8] sm:$0xff]  ;;  %v1766_v33 = vor.u32 %v1765_v25, %v1710_v21  ;;  %v7871_v26 = vld [vmem:[#allocation6] sm:$0xff]   ;;  %v7889_v21 = vld [vmem:[#allocation6 + $0x70] sm:$0xff]  }
  0xd1   : > { %7293 = vmatpush3.bf16.msra.mxu1 %v7844_v24  ;;  %v348_v35 = vld [vmem:[#allocation2 + $0x90] sm:$0x1] }
  0xd2   : > { %1460 = vmatmul.mubr.bf16.gmra.mrb[36].mxu0 %v8571_v30  ;;  %7294 = vmatprep.subr.bf16.mxu1 %v7850_v54  ;;  %v7857_v30 = vld [vmem:[#allocation6 + $0xe0] sm:$0xff]  }
  0xd3   : > { %6746 = vmatpush3.bf16.msra.mxu0 %v7851_v37  ;;  %1467 = vmatprep.mubr.bf16.mxu0 %v8563_v22  ;;  %v487_v22 = vor.u32 %v485_v23, %v484_v49  ;;  %v7866_v23 = vld [vmem:[#allocation6 + $0xf8] sm:$0xff]   ;;  %v7874_v37 = vld [vmem:[#allocation6 + $0x8] sm:$0xff]   ;;  %v1720_v49 = vshll.u32 %v8720_v2, 16 }
  0xd4   : > { %6747 = vmatprep.subr.bf16.mxu0 %v7852_v40  ;;  %7287 = vmatmul.mubr.bf16.gmra.mrb[4].mxu1 %v541_v3  ;;  %v7873_v3 = vld [vmem:[#allocation6 + $0x88] sm:$0xff]   ;;  %v7876_v40 = vld [vmem:[#allocation6 + $0x90] sm:$0xff]  }
  0xd5   : > { %7295 = vmatpush3.bf16.msra.mxu1 %v7850_v54  ;;  %v509_v9 = vsel %vm8519_vm9, %v487_v22, %v508_v1  ;;  %v7882_v22 = vld [vmem:[#allocation6 + $0x60] sm:$0xff]   ;;  %v396_v1 = vld [vmem:[#allocation2 + $0xe8] sm:$0x80] }
  0xd6   : > { %7296 = vmatprep.subr.bf16.mxu1 %v7853_v42  ;;  %v2998_v10 = vsel %vm8519_vm9, %v2975_v59, %v509_v9  ;;  %v7883_v59 = vld [vmem:[#allocation6 + $0xa0] sm:$0xff]   ;;  %v397_v6 = vsel %vm8498_vm5, 0, %v396_v1 }
  0xd7   : > { %6748 = vmatpush3.bf16.msra.mxu0 %v7854_v43  ;;  %2999 = vst [vmem:[#allocation2 + $0x78] sm:$0xff] %v2998_v10  ;;  %v1749_v43 = vld [vmem:[#allocation2 + $0xc0] sm:$0xff]  ;;  %v1727_v10 = vshll.u32 %v8733_v62, 16  ;;  %398 = vst [vmem:[#allocation2 + $0xe8] sm:$0x80] %v397_v6 }
  0xd8   : > { %6749 = vmatprep.subr.bf16.mxu0 %v7855_v44  ;;  %v7877_v44 = vld [vmem:[#allocation6 + $0x10] sm:$0xff]   ;;  %v8726_v47 = vsel %vm8519_vm9, %v1715_v39, %v1749_v43 }
  0xd9   : > { %7297 = vmatpush3.bf16.msra.mxu1 %v7853_v42  ;;  %v357_v42 = vld [vmem:[#allocation2 + $0xd8] sm:$0x1] }
  0xda   : > { %1468 = vmatmul.mubr.bf16.gmra.mrb[40].mxu0 %v8582_v51  ;;  %7298 = vmatprep.subr.bf16.mxu1 %v7856_v48  ;;  %v1703_v51 = vshrl.u32 %v8680_v60, 16  ;;  %v358_v45 = vsel %vm8494_vm3, 0, %v357_v42 }
  0xdb   : > { %6750 = vmatpush3.bf16.msra.mxu0 %v7857_v30  ;;  %1475 = vmatprep.mubr.bf16.mxu0 %v8642_v15  ;;  %v394_v15 = vsel %vm8498_vm5, 0, %v393_v13  ;;  %359 = vst [vmem:[#allocation2 + $0xd8] sm:$0x1] %v358_v45  ;;  %v7878_v30 = vld [vmem:[#allocation6 + $0x58] sm:$0xff]  }
  0xdc   : > { %6751 = vmatprep.subr.bf16.mxu0 %v7858_v53  ;;  %v1705_v38 = vrot.slane %v1703_v51, 7  ;;  %395 = vst [vmem:[#allocation2 + $0xd0] sm:$0x80] %v394_v15  ;;  %v1764_v20 = vor.u32 %v1763_v12, %v1703_v51  ;;  %v7884_v51 = vld [vmem:[#allocation6 + $0x20] sm:$0xff]   ;;  %v7886_v12 = vld [vmem:[#allocation6 + $0xa8] sm:$0xff]  }
  0xdd   : > { %7299 = vmatpush3.bf16.msra.mxu1 %v7856_v48  ;;  %v1717_v48 = vshrl.u32 %v8720_v2, 16 }
  0xde   : > { %7300 = vmatprep.subr.bf16.mxu1 %v7859_v56  ;;  %v1708_v24 = vor.u32 %v1706_v5, %v1705_v38  ;;  %v8703_v32 = vsel %vm8527_vm10, %v1764_v20, %v1782_v29  ;;  %v361_v5 = vsel %vm8494_vm3, 0, %v360_v63  ;;  %v399_v38 = vld [vmem:[#allocation2 + $0x100] sm:$0x80]  ;;  %v1788_v25 = vld [vmem:[#allocation2 + $0xe8] sm:$0xff]  ;;  %v7895_v29 = vld [vmem:[%s8482_s13 + $0x18] sm:$0xff]  }
  0xdf   : > { %6752 = vmatpush3.bf16.msra.mxu0 %v7860_v57  ;;  %7306 = vmatprep.mubr.bf16.mxu1 %v8703_v32  ;;  %v1719_v53 = vrot.slane %v1717_v48, 7  ;;  %362 = vst [vmem:[#allocation2 + $0xf0] sm:$0x1] %v361_v5  ;;  %v400_v15 = vsel %vm8498_vm5, 0, %v399_v38  ;;  %v1696_v55 = vshrl.u32 %v7895_v29, 16 }
  0xe0   : > { %6753 = vmatprep.subr.bf16.mxu0 %v7861_v58  ;;  %v8709_v8 = vsel %vm8519_vm9, %v1708_v24, %v1746_v28  ;;  %v1767_v58 = vrot.slane %v1720_v49, 1  ;;  %401 = vst [vmem:[#allocation2 + $0x100] sm:$0x80] %v400_v15  ;;  %v7891_v28 = vld [vmem:[#allocation6 + $0x30] sm:$0xff]   ;;  %v7902_v15 = vld [vmem:[#allocation6 + $0x208] sm:$0xff]  }
  0xe1   : > { %7301 = vmatpush3.bf16.msra.mxu1 %v7859_v56  ;;  %v7880_v56 = vld [vmem:[#allocation6 + $0x18] sm:$0xff]   ;;  %v1722_v57 = vor.u32 %v1720_v49, %v1719_v53  ;;  %v1698_v45 = vrot.slane %v1696_v55, 7  ;;  %v7899_v53 = vld [vmem:[%s8482_s13 + $0x60] sm:$0xff]  }
  0xe2   : > { %1476 = vmatmul.mubr.bf16.gmra.mrb[44].mxu0 %v509_v9  ;;  %7302 = vmatprep.subr.bf16.mxu1 %v7862_v4  ;;  %v1724_v9 = vshrl.u32 %v8733_v62, 16  ;;  %v1768_v20 = vor.u32 %v1767_v58, %v1717_v48  ;;  %v4170_v63 = vshrl.u32 %v7899_v53, 16  ;;  %v4173_v1 = vshll.u32 %v7899_v53, 16  ;;  %4158 = vst [vmem:[#allocation2 + $0xb0] sm:$0xff] %v7899_v53 }
  0xe3   : > { %6754 = vmatpush3.bf16.msra.mxu0 %v7863_v11  ;;  %2094 = vmatprep.mubr.bf16.mxu0 %v8680_v60  ;;  %v1785_v36 = vld [vmem:[#allocation2 + $0xd0] sm:$0xff]  ;;  %v7885_v11 = vld [vmem:[#allocation6 + $0x68] sm:$0xff]  }
  0xe4   : > { %6755 = vmatprep.subr.bf16.mxu0 %v7864_v14  ;;  %v8715_v54 = vsel %vm8527_vm10, %v1766_v33, %v1785_v36  ;;  %v1726_v13 = vrot.slane %v1724_v9, 7  ;;  %v1769_v14 = vrot.slane %v1727_v10, 1  ;;  %v8756_v31 = vsel %vm8527_vm10, %v1768_v20, %v1788_v25  ;;  %v7892_v33 = vld [vmem:[#allocation6 + $0x78] sm:$0xff]   ;;  %v387_v36 = vld [vmem:[#allocation2 + $0xa0] sm:$0x80]  ;;  %v7906_v25 = vld [vmem:[#allocation6 + $0x190] sm:$0xff]  }
  0xe5   : > { %7303 = vmatpush3.bf16.msra.mxu1 %v7862_v4  ;;  %v1752_v4 = vld [vmem:[#allocation2 + $0xd8] sm:$0xff]  ;;  %v388_v42 = vsel %vm8498_vm5, 0, %v387_v36  ;;  %v4219_v6 = vrot.slane %v4173_v1, 1  ;;  %v7923_v36 = vld [vmem:[%s8482_s13 + $0x70] sm:$0xff]  }
  0xe6   : > { %7304 = vmatprep.subr.bf16.mxu1 %v7865_v18  ;;  %v8741_v7 = vsel %vm8519_vm9, %v1722_v57, %v1752_v4  ;;  %v1755_v24 = vld [vmem:[#allocation2 + $0xf0] sm:$0xff]  ;;  %389 = vst [vmem:[#allocation2 + $0xa0] sm:$0x80] %v388_v42  ;;  %v7900_v4 = vld [vmem:[#allocation6 + $0x180] sm:$0xff]   ;;  %v4187_v42 = vshll.u32 %v7923_v36, 16  ;;  %4160 = vst [vmem:[#allocation2 + $0xe0] sm:$0xff] %v7923_v36 }
  0xe7   : > { %6756 = vmatpush3.bf16.msra.mxu0 %v7866_v23  ;;  %v7890_v23 = vld [vmem:[#allocation6 + $0xb0] sm:$0xff]  }
  0xe8   : > { %6793 = vmatprep.subr.bf16.mxu0 %v7868_v27  ;;  %v1770_v27 = vor.u32 %v1769_v14, %v1724_v9  ;;  %v7901_v9 = vld [vmem:[#allocation6 + $0x1c8] sm:$0xff]   ;;  %v4220_v14 = vor.u32 %v4219_v6, %v4170_v63  ;;  %v8814_v6 = vld [vmem:[%s8482_s13 + $0x40] sm:$0xff]  }
  0xe9   : > { %7305 = vmatpush3.bf16.msra.mxu1 %v7865_v18  ;;  %v1729_v18 = vor.u32 %v1727_v10, %v1726_v13  ;;  %v4172_v10 = vrot.slane %v4170_v63, 7  ;;  %v7924_v63 = vld [vmem:[#allocation6 + $0x100] sm:$0xff]   ;;  %v1731_v19 = vshrl.u32 %v8814_v6, 16 }
  0xea   : > { %2095 = vmatmul.mubr.bf16.vlgmr.msra.gmra.mrb[48].mxu0 %v8709_v8  ;;  %7314 = vmatprep.subr.bf16.mxu1 %v7869_v0  ;;  %v4236_v20 = vsel %vm8527_vm10, %v4220_v14, %v8703_v32  ;;  %v7928_v14 = vld [vmem:[#allocation6 + $0x148] sm:$0xff]  }
  0xeb   : > { %6794 = vmatpush3.bf16.msra.mxu0 %v7871_v26  ;;  %2102 = vmatprep.mubr.bf16.mxu0 %v8694_v61  ;;  %v7896_v26 = vld [vmem:[%s8482_s13 + $0x58] sm:$0xff]   ;;  %4237 = vst [vmem:[#allocation2 + $0xb8] sm:$0xff] %v4236_v20  ;;  %v7929_v20 = vld [vmem:[#allocation6 + $0xc8] sm:$0xff]  }
  0xec   : > { %6795 = vmatprep.subr.bf16.mxu0 %v7872_v34  ;;  %7307 = vmatmul.mubr.bf16.vlgmr.msra.gmra.mrb[8].mxu1 %v8715_v54  ;;  %v1699_v34 = vshll.u32 %v7895_v29, 16  ;;  %4157 = vst [vmem:[#allocation2 + $0x98] sm:$0xff] %v7896_v26  ;;  %v4163_v39 = vshrl.u32 %v7896_v26, 16 }
  0xed   : > { %7315 = vmatpush3.bf16.msra.mxu1 %v7869_v0  ;;  %v8752_v0 = vsel %vm8519_vm9, %v1729_v18, %v1755_v24  ;;  %7310 = vmatprep.mubr.bf16.mxu1 %v8756_v31  ;;  %v1779_v5 = vld [vmem:[#allocation2 + $0xa0] sm:$0xff]  ;;  %v4175_v18 = vor.u32 %v4173_v1, %v4172_v10  ;;  %v7905_v24 = vld [vmem:[#allocation6 + $0x210] sm:$0xff]  }
  0xee   : > { %7316 = vmatprep.subr.bf16.mxu1 %v7873_v3  ;;  %v1761_v48 = vrot.slane %v1699_v34, 1  ;;  %v4165_v49 = vrot.slane %v4163_v39, 7 }
  0xef   : > { %6796 = vmatpush3.bf16.msra.mxu0 %v7874_v37  ;;  %v7893_v37 = vld [vmem:[#allocation6 + $0xb8] sm:$0xff]  }
  0xf0   : > { %6797 = vmatprep.subr.bf16.mxu0 %v7875_v52  ;;  %v4166_v52 = vshll.u32 %v7896_v26, 16  ;;  %v1762_v57 = vor.u32 %v1761_v48, %v1696_v55  ;;  %v7914_v26 = vld [vmem:[#allocation6 + $0x228] sm:$0xff]   ;;  %v7919_v48 = vld [vmem:[#allocation6 + $0x1f8] sm:$0xff]  }
  0xf1   : > { %7317 = vmatpush3.bf16.msra.mxu1 %v7873_v3  ;;  %v1791_v3 = vld [vmem:[#allocation2 + $0x100] sm:$0xff]  ;;  %v7915_v55 = vld [vmem:[#allocation6 + $0x1a8] sm:$0xff]  }
  0xf2   : > { %2103 = vmatmul.mubr.bf16.gmra.mrb[52].mxu0 %v8726_v47  ;;  %7318 = vmatprep.subr.bf16.mxu1 %v7876_v40  ;;  %v8767_v43 = vsel %vm8527_vm10, %v1770_v27, %v1791_v3  ;;  %v1780_v38 = vsel %vm8527_vm10, %v1762_v57, %v1779_v5  ;;  %v7907_v27 = vld [vmem:[#allocation6 + $0x1d8] sm:$0xff]  }
  0xf3   : > { %6798 = vmatpush3.bf16.msra.mxu0 %v7877_v44  ;;  %2110 = vmatprep.mubr.bf16.mxu0 %v8720_v2  ;;  %v7894_v44 = vld [vmem:[#allocation6 + $0x38] sm:$0xff]  }
  0xf4   : > { %6799 = vmatprep.subr.bf16.mxu0 %v7878_v30  ;;  %7311 = vmatmul.mubr.bf16.gmra.mrb[12].mxu1 %v8767_v43  ;;  %v4217_v30 = vrot.slane %v4166_v52, 1  ;;  %v7921_v57 = vld [vmem:[#allocation6 + $0x1b8] sm:$0xff]  }
  0xf5   : > { %7319 = vmatpush3.bf16.msra.mxu1 %v7876_v40  ;;  %v349_v40 = vsel %vm8494_vm3, 0, %v348_v35  ;;  %7330 = vmatprep.mubr.bf16.mxu1 %v1780_v38  ;;  %v7922_v35 = vld [vmem:[%s8482_s13 + $0x68] sm:$0xff]   ;;  %v402_v5 = vld [vmem:[#allocation2 + $0x118] sm:$0x80] }
  0xf6   : > { %7320 = vmatprep.subr.bf16.mxu1 %v7879_v50  ;;  %350 = vst [vmem:[#allocation2 + $0x90] sm:$0x1] %v349_v40  ;;  %v4218_v58 = vor.u32 %v4217_v30, %v4163_v39  ;;  %4159 = vst [vmem:[#allocation2 + $0xc8] sm:$0xff] %v7922_v35  ;;  %v4177_v3 = vshrl.u32 %v7922_v35, 16  ;;  %v7917_v39 = vld [vmem:[#allocation6 + $0x230] sm:$0xff]   ;;  %v4184_v40 = vshrl.u32 %v7923_v36, 16 }
  0xf7   : > { %6800 = vmatpush3.bf16.msra.mxu0 %v7880_v56  ;;  %v1701_v56 = vor.u32 %v1699_v34, %v1698_v45  ;;  %v7916_v34 = vld [vmem:[#allocation6 + $0x1f0] sm:$0xff]   ;;  %v7920_v30 = vld [vmem:[#allocation6 + $0x238] sm:$0xff]   ;;  %v7942_v36 = vld [vmem:[#allocation6 + $0x168] sm:$0xff]  }
  0xf8   : > { %6801 = vmatprep.subr.bf16.mxu0 %v7882_v22  ;;  %v4168_v22 = vor.u32 %v4166_v52, %v4165_v49  ;;  %v4233_v13 = vsel %vm8527_vm10, %v4218_v58, %v1780_v38  ;;  %v7918_v52 = vld [vmem:[#allocation6 + $0x1b0] sm:$0xff]   ;;  %v4223_v49 = vrot.slane %v4187_v42, 1  ;;  %v7927_v38 = vld [vmem:[#allocation6 + $0x108] sm:$0xff]  }
  0xf9   : > { %7321 = vmatpush3.bf16.msra.mxu1 %v7879_v50  ;;  %v7897_v50 = vld [vmem:[#allocation6 + $0x1c0] sm:$0xff]   ;;  %4234 = vst [vmem:[#allocation2 + $0xa0] sm:$0xff] %v4233_v13  ;;  %v1734_v13 = vshll.u32 %v8814_v6, 16 }
  0xfa   : > { %2111 = vmatmul.mubr.bf16.gmra.mrb[56].mxu0 %v8741_v7  ;;  %7322 = vmatprep.subr.bf16.mxu1 %v7883_v59 }
  0xfb   : > { %6802 = vmatpush3.bf16.msra.mxu0 %v7884_v51  ;;  %2118 = vmatprep.mubr.bf16.mxu0 %v8733_v62 }
  0xfc   : > { %6803 = vmatprep.subr.bf16.mxu0 %v7885_v11 }
  0xfd   : > { %7323 = vmatpush3.bf16.msra.mxu1 %v7883_v59  ;;  %v7898_v59 = vld [vmem:[#allocation6 + $0x200] sm:$0xff]   ;;  %v1743_v51 = vld [vmem:[#allocation2 + $0x90] sm:$0xff] }
  0xfe   : > { %7324 = vmatprep.subr.bf16.mxu1 %v7886_v12  ;;  %v1744_v11 = vsel %vm8519_vm9, %v1701_v56, %v1743_v51  ;;  %v4186_v56 = vrot.slane %v4184_v40, 7  ;;  %v7930_v51 = vld [vmem:[%s8482_s13 + $0x78] sm:$0xff]  }
  0xff   : > { %6804 = vmatpush3.bf16.msra.mxu0 %v7887_v17  ;;  %v7903_v17 = vld [vmem:[#allocation6 + $0x188] sm:$0xff]   ;;  %v4194_v10 = vshll.u32 %v7930_v51, 16  ;;  %4161 = vst [vmem:[#allocation2 + $0xf8] sm:$0xff] %v7930_v51 }
 0x100   : > { %6805 = vmatprep.subr.bf16.mxu0 %v7889_v21  ;;  %v7904_v21 = vld [vmem:[#allocation6 + $0x1d0] sm:$0xff]   ;;  %v4189_v1 = vor.u32 %v4187_v42, %v4186_v56  ;;  %v7947_v42 = vld [vmem:[#allocation6 + $0x138] sm:$0xff]  }
 0x101   : > { %7325 = vmatpush3.bf16.msra.mxu1 %v7886_v12  ;;  %v4203_v12 = vsel %vm8519_vm9, %v4168_v22, %v1744_v11  ;;  %v4224_v22 = vor.u32 %v4223_v49, %v4184_v40  ;;  %v7946_v40 = vld [vmem:[#allocation6 + $0xf0] sm:$0xff]   ;;  %v7950_v49 = vld [vmem:[#allocation6 + $0x40] sm:$0xff]   ;;  %v8850_v56 = vld [vmem:[#allocation2 + $0x38] sm:$0xff] }
 0x102   : > { %2119 = vmatmul.mubr.bf16.gmra.mrb[60].mxu0 %v8752_v0  ;;  %7326 = vmatprep.subr.bf16.mxu1 %v7890_v23  ;;  %4204 = vst [vmem:[#allocation2 + $0x90] sm:$0xff] %v4203_v12  ;;  %v4191_v12 = vshrl.u32 %v7930_v51, 16  ;;  %v8859_v51 = vld [vmem:[#allocation2 + $0x58] sm:$0xff] }
 0x103   : > { %6806 = vmatpush3.bf16.msra.mxu0 %v7891_v28  ;;  %2368 = vmatprep.mubr.bf16.mxu0 %v7895_v29  ;;  %v7910_v28 = vld [vmem:[#allocation6 + $0x1e0] sm:$0xff]  }
 0x104   : > { %6807 = vmatprep.subr.bf16.mxu0 %v7892_v33  ;;  %v7911_v29 = vld [vmem:[#allocation6 + $0x220] sm:$0xff]  }
 0x105   : > { %7327 = vmatpush3.bf16.msra.mxu1 %v7890_v23  ;;  %v4206_v23 = vsel %vm8519_vm9, %v4175_v18, %v8709_v8  ;;  %v7912_v33 = vld [vmem:[#allocation6 + $0x1a0] sm:$0xff]  }
 0x106   : > { %7328 = vmatprep.subr.bf16.mxu1 %v7893_v37  ;;  %4207 = vst [vmem:[#allocation2 + $0xa8] sm:$0xff] %v4206_v23 }
 0x107   : > { %6808 = vmatpush3.bf16.msra.mxu0 %v7894_v44  ;;  %v4179_v44 = vrot.slane %v4177_v3, 7 }
 0x108   : > { %6845 = vmatprep.subr.bf16.mxu0 %v7897_v50 }
 0x109   : > { %7329 = vmatpush3.bf16.msra.mxu1 %v7893_v37  ;;  %v4180_v37 = vshll.u32 %v7922_v35, 16  ;;  %v7941_v35 = vld [vmem:[#allocation6 + $0x128] sm:$0xff]  }
 0x10a   : > { %2369 = vmatmul.mubr.bf16.vlgmr.msra.gmra.mrb[64].mxu0 %v1744_v11  ;;  %7338 = vmatprep.subr.bf16.mxu1 %v7898_v59  ;;  %v7926_v11 = vld [vmem:[#allocation6 + $0xc0] sm:$0xff]  }
 0x10b   : > { %6846 = vmatpush3.bf16.msra.mxu0 %v7900_v4  ;;  %2376 = vmatprep.mubr.bf16.mxu0 %v8680_v60  ;;  %v7909_v60 = vld [vmem:[#allocation6 + $0x198] sm:$0xff]   ;;  %v4221_v45 = vrot.slane %v4180_v37, 1  ;;  %v4182_v53 = vor.u32 %v4180_v37, %v4179_v44  ;;  %v4242_v4 = vsel %vm8527_vm10, %v4224_v22, %v8756_v31  ;;  %v8845_v44 = vld [vmem:[#allocation2 + $0x20] sm:$0xff]  ;;  %v7954_v22 = vld [vmem:[#allocation6 + $0x88] sm:$0xff]  }
 0x10c   : > { %7331 = vmatmul.mubr.bf16.vlgmr.msra.gmra.mrb[8].mxu1 %v8703_v32  ;;  %6847 = vmatprep.subr.bf16.mxu0 %v7901_v9  ;;  %v7908_v32 = vld [vmem:[#allocation6 + $0x218] sm:$0xff]   ;;  %4243 = vst [vmem:[#allocation2 + $0xe8] sm:$0xff] %v4242_v4  ;;  %v7925_v9 = vld [vmem:[#allocation6 + $0x140] sm:$0xff]   ;;  %v7958_v4 = vld [vmem:[#allocation6 + $0x10] sm:$0xff]  }
 0x10d   : > { %7339 = vmatpush3.bf16.msra.mxu1 %v7898_v59  ;;  %7334 = vmatprep.mubr.bf16.mxu1 %v8715_v54  ;;  %v4222_v50 = vor.u32 %v4221_v45, %v4177_v3  ;;  %v4209_v59 = vsel %vm8519_vm9, %v4182_v53, %v8726_v47  ;;  %v8836_v3 = vld [vmem:[#allocation2 + $0x28] sm:$0xff]  ;;  %v7948_v45 = vld [vmem:[#allocation6 + $0x178] sm:$0xff]  }
 0x10e   : > { %7340 = vmatprep.subr.bf16.mxu1 %v7902_v15  ;;  %4210 = vst [vmem:[#allocation2 + $0xc0] sm:$0xff] %v4209_v59  ;;  %v7953_v53 = vld [vmem:[#allocation6 + $0x48] sm:$0xff]   ;;  %v7956_v59 = vld [vmem:[#allocation6 + $0x50] sm:$0xff]  }
 0x10f   : > { %6848 = vmatpush3.bf16.msra.mxu0 %v7903_v17  ;;  %v4239_v58 = vsel %vm8527_vm10, %v4222_v50, %v8715_v54  ;;  %v1771_v17 = vrot.slane %v1734_v13, 1  ;;  %v7952_v50 = vld [vmem:[#allocation6] sm:$0xff]  }
 0x110   : > { %6849 = vmatprep.subr.bf16.mxu0 %v7904_v21  ;;  %4240 = vst [vmem:[#allocation2 + $0xd0] sm:$0xff] %v4239_v58  ;;  %v4193_v21 = vrot.slane %v4191_v12, 7  ;;  %v7955_v58 = vld [vmem:[#allocation6 + $0x8] sm:$0xff]  }
 0x111   : > { %7341 = vmatpush3.bf16.msra.mxu1 %v7902_v15  ;;  %v4225_v15 = vrot.slane %v4194_v10, 1 }
 0x112   : > { %2377 = vmatmul.mubr.bf16.gmra.mrb[68].mxu0 %v8709_v8  ;;  %7342 = vmatprep.subr.bf16.mxu1 %v7905_v24  ;;  %v7913_v8 = vld [vmem:[#allocation6 + $0x1e8] sm:$0xff]  }
 0x113   : > { %6850 = vmatpush3.bf16.msra.mxu0 %v7906_v25  ;;  %2384 = vmatprep.mubr.bf16.mxu0 %v8694_v61  ;;  %v4226_v18 = vor.u32 %v4225_v15, %v4191_v12  ;;  %v7964_v12 = vld [vmem:[#allocation6 + $0x20] sm:$0xff]   ;;  %v8871_v15 = vld [vmem:[#allocation2 + $0x68] sm:$0xff] }
 0x114   : > { %6851 = vmatprep.subr.bf16.mxu0 %v7907_v27  ;;  %7335 = vmatmul.mubr.bf16.gmra.mrb[12].mxu1 %v8756_v31  ;;  %v4196_v27 = vor.u32 %v4194_v10, %v4193_v21  ;;  %v7962_v10 = vld [vmem:[#allocation6 + $0x60] sm:$0xff]   ;;  %v7968_v21 = vld [vmem:[#allocation6 + $0x70] sm:$0xff]  }
 0x115   : > { %7343 = vmatpush3.bf16.msra.mxu1 %v7905_v24  ;;  %7354 = vmatprep.mubr.bf16.mxu1 %v8715_v54  ;;  %v403_v54 = vsel %vm8498_vm5, 0, %v402_v5  ;;  %v4245_v23 = vsel %vm8527_vm10, %v4226_v18, %v8767_v43  ;;  %v7932_v24 = vld [vmem:[#allocation6 + $0x110] sm:$0xff]   ;;  %v7959_v5 = vld [vmem:[#allocation6 + $0x58] sm:$0xff]   ;;  %v7967_v18 = vld [vmem:[#allocation6 + $0x28] sm:$0xff]  }
 0x116   : > { %7344 = vmatprep.subr.bf16.mxu1 %v7908_v32  ;;  %404 = vst [vmem:[#allocation2 + $0x118] sm:$0x80] %v403_v54  ;;  %4246 = vst [vmem:[#allocation2 + $0x100] sm:$0xff] %v4245_v23  ;;  %v8864_v54 = vld [vmem:[#allocation2 + $0x70] sm:$0xff] }
 0x117   : > { %6852 = vmatpush3.bf16.msra.mxu0 %v7909_v60  ;;  %v7934_v60 = vld [vmem:[#allocation6 + $0xd0] sm:$0xff]  }
 0x118   : > { %6853 = vmatprep.subr.bf16.mxu0 %v7910_v28  ;;  %v7935_v28 = vld [vmem:[#allocation6 + $0x118] sm:$0xff]  }
 0x119   : > { %7345 = vmatpush3.bf16.msra.mxu1 %v7908_v32  ;;  %v8082_v32 = vld [vmem:[#allocation2 + $0x110] sm:$0xff] }
 0x11a   : > { %2385 = vmatmul.mubr.bf16.gmra.mrb[72].mxu0 %v8726_v47  ;;  %7346 = vmatprep.subr.bf16.mxu1 %v7911_v29 }
 0x11b   : > { %6854 = vmatpush3.bf16.msra.mxu0 %v7912_v33  ;;  %2392 = vmatprep.mubr.bf16.mxu0 %v8720_v2  ;;  %v363_v33 = vld [vmem:[#allocation2 + $0x108] sm:$0x1] }
 0x11c   : > { %6855 = vmatprep.subr.bf16.mxu0 %v7913_v8  ;;  %v7937_v8 = vld [vmem:[#allocation6 + $0xd8] sm:$0xff]  }
 0x11d   : > { %7347 = vmatpush3.bf16.msra.mxu1 %v7911_v29  ;;  %v1794_v25 = vld [vmem:[#allocation2 + $0x118] sm:$0xff] }
 0x11e   : > { %7348 = vmatprep.subr.bf16.mxu1 %v7914_v26  ;;  %4250 = vst [vmem:[#allocation2 + $0x118] sm:$0xff] %v8082_v32  ;;  %v7936_v29 = vld [vmem:[#allocation6 + $0x158] sm:$0xff]  }
 0x11f   : > { %6856 = vmatpush3.bf16.msra.mxu0 %v7915_v55  ;;  %v7938_v55 = vld [vmem:[#allocation6 + $0x120] sm:$0xff]  }
 0x120   : > { %6857 = vmatprep.subr.bf16.mxu0 %v7916_v34  ;;  %v7940_v34 = vld [vmem:[#allocation6 + $0xe0] sm:$0xff]  }
 0x121   : > { %7349 = vmatpush3.bf16.msra.mxu1 %v7914_v26  ;;  %v364_v26 = vsel %vm8494_vm3, 0, %v363_v33  ;;  %v7974_v33 = vld [vmem:[#allocation6 + $0x1c0] sm:$0xff]  }
 0x122   : > { %2393 = vmatmul.mubr.bf16.gmra.mrb[76].mxu0 %v8741_v7  ;;  %7350 = vmatprep.subr.bf16.mxu1 %v7917_v39  ;;  %365 = vst [vmem:[#allocation2 + $0x108] sm:$0x1] %v364_v26  ;;  %v3036_v26 = vld [vmem:[#allocation2] sm:$0xff] }
 0x123   : > { %6858 = vmatpush3.bf16.msra.mxu0 %v7918_v52  ;;  %2703 = vmatprep.mubr.bf16.mxu0 %v8694_v61  ;;  %v4212_v61 = vsel %vm8519_vm9, %v4189_v1, %v8741_v7  ;;  %v7945_v52 = vld [vmem:[#allocation6 + $0x170] sm:$0xff]  }
 0x124   : > { %6859 = vmatprep.subr.bf16.mxu0 %v7919_v48  ;;  %4213 = vst [vmem:[#allocation2 + $0xd8] sm:$0xff] %v4212_v61  ;;  %v7949_v48 = vld [vmem:[#allocation6 + $0xf8] sm:$0xff]   ;;  %v7957_v1 = vld [vmem:[#allocation6 + $0x90] sm:$0xff]  }
 0x125   : > { %7351 = vmatpush3.bf16.msra.mxu1 %v7917_v39  ;;  %v7944_v39 = vld [vmem:[#allocation6 + $0x130] sm:$0xff]  }
 0x126   : > { %7352 = vmatprep.subr.bf16.mxu1 %v7920_v30  ;;  %v8862_v61 = vld [vmem:[#allocation2 + $0x50] sm:$0xff] }
 0x127   : > { %6860 = vmatpush3.bf16.msra.mxu0 %v7921_v57  ;;  %v8852_v57 = vld [vmem:[#allocation2 + $0x40] sm:$0xff] }
 0x128   : > { %6897 = vmatprep.subr.bf16.mxu0 %v7924_v63  ;;  %v8857_v63 = vld [vmem:[#allocation2 + $0x30] sm:$0xff] }
 0x129   : > { %7353 = vmatpush3.bf16.msra.mxu1 %v7920_v30  ;;  %v1758_v37 = vld [vmem:[#allocation2 + $0x108] sm:$0xff]  ;;  %v7951_v30 = vld [vmem:[#allocation6 + $0x80] sm:$0xff]  }
 0x12a   : > { %2704 = vmatmul.mubr.bf16.vlgmr.msra.gmra.mrb[80].mxu0 %v8726_v47  ;;  %7362 = vmatprep.subr.bf16.mxu1 %v7925_v9  ;;  %v1772_v47 = vor.u32 %v1771_v17, %v1731_v19  ;;  %4248 = vst [vmem:[#allocation2 + $0x108] sm:$0xff] %v8082_v32  ;;  %v7970_v32 = vld [vmem:[#allocation6 + $0x30] sm:$0xff]  }
 0x12b   : > { %6898 = vmatpush3.bf16.msra.mxu0 %v7926_v11  ;;  %2711 = vmatprep.mubr.bf16.mxu0 %v8720_v2  ;;  %v7933_v2 = vld [vmem:[#allocation6 + $0x150] sm:$0xff]   ;;  %v8869_v11 = vld [vmem:[#allocation2 + $0x48] sm:$0xff] }
 0x12c   : > { %7355 = vmatmul.mubr.bf16.vlgmr.msra.gmra.mrb[8].mxu1 %v8756_v31  ;;  %6899 = vmatprep.subr.bf16.mxu0 %v7927_v38  ;;  %v4215_v31 = vsel %vm8519_vm9, %v4196_v27, %v8752_v0  ;;  %v7963_v38 = vld [vmem:[#allocation6 + $0xa0] sm:$0xff]  }
 0x12d   : > { %7363 = vmatpush3.bf16.msra.mxu1 %v7925_v9  ;;  %7358 = vmatprep.mubr.bf16.mxu1 %v8767_v43  ;;  %4216 = vst [vmem:[#allocation2 + $0xf0] sm:$0xff] %v4215_v31  ;;  %v1795_v43 = vsel %vm8527_vm10, %v1772_v47, %v1794_v25  ;;  %v7961_v9 = vld [vmem:[#allocation6 + $0x18] sm:$0xff]   ;;  %v8877_v47 = vld [vmem:[#allocation2 + $0x60] sm:$0xff]  ;;  %v7969_v25 = vld [vmem:[#allocation6 + $0xb0] sm:$0xff]  }
 0x12e   : > { %7364 = vmatprep.subr.bf16.mxu1 %v7928_v14  ;;  %v3037_v31 = vld [vmem:[#allocation2 + $0x8] sm:$0xff] }
 0x12f   : > { %6900 = vmatpush3.bf16.msra.mxu0 %v7929_v20 }
 0x130   : > { %6901 = vmatprep.subr.bf16.mxu0 %v7932_v24 }
 0x131   : > { %7365 = vmatpush3.bf16.msra.mxu1 %v7928_v14  ;;  %v7965_v14 = vld [vmem:[#allocation6 + $0x68] sm:$0xff]  }
 0x132   : > { %2712 = vmatmul.mubr.bf16.gmra.mrb[84].mxu0 %v8741_v7  ;;  %7366 = vmatprep.subr.bf16.mxu1 %v7933_v2  ;;  %v1733_v7 = vrot.slane %v1731_v19, 7  ;;  %v7966_v19 = vld [vmem:[#allocation6 + $0xa8] sm:$0xff]  }
 0x133   : > { %6902 = vmatpush3.bf16.msra.mxu0 %v7934_v60  ;;  %2719 = vmatprep.mubr.bf16.mxu0 %v8733_v62  ;;  %v7971_v60 = vld [vmem:[#allocation6 + $0x78] sm:$0xff]  }
 0x134   : > { %7359 = vmatmul.mubr.bf16.gmra.mrb[12].mxu1 %v1795_v43  ;;  %6903 = vmatprep.subr.bf16.mxu0 %v7935_v28  ;;  %v1736_v62 = vor.u32 %v1734_v13, %v1733_v7  ;;  %v3038_v13 = vld [vmem:[#allocation2 + $0x10] sm:$0xff]  ;;  %v7972_v28 = vld [vmem:[#allocation6 + $0xb8] sm:$0xff]  }
 0x135   : > { %7367 = vmatpush3.bf16.msra.mxu1 %v7933_v2  ;;  %7378 = vmatprep.mubr.bf16.mxu1 %v8836_v3  ;;  %v7973_v43 = vld [vmem:[#allocation6 + $0x38] sm:$0xff]  }
 0x136   : > { %7368 = vmatprep.subr.bf16.mxu1 %v7936_v29 }
 0x137   : > { %6904 = vmatpush3.bf16.msra.mxu0 %v7937_v8 }
 0x138   : > { %6905 = vmatprep.subr.bf16.mxu0 %v7938_v55 }
 0x139   : > { %7369 = vmatpush3.bf16.msra.mxu1 %v7936_v29 }
 0x13a   : > { %2720 = vmatmul.mubr.bf16.gmra.mrb[88].mxu0 %v8752_v0  ;;  %7370 = vmatprep.subr.bf16.mxu1 %v7939_v46  ;;  %v1759_v0 = vsel %vm8519_vm9, %v1736_v62, %v1758_v37  ;;  %v7978_v62 = vld [vmem:[#allocation6 + $0x208] sm:$0xff]  }
 0x13b   : > { %6906 = vmatpush3.bf16.msra.mxu0 %v7940_v34  ;;  %2727 = vmatprep.mubr.bf16.mxu0 %v8814_v6  ;;  %v7960_v6 = vld [vmem:[#allocation6 + $0x98] sm:$0xff]   ;;  %v7975_v34 = vld [vmem:[#allocation6 + $0x200] sm:$0xff]   ;;  %v7979_v37 = vld [vmem:[#allocation6 + $0x188] sm:$0xff]  }
 0x13c   : > { %6907 = vmatprep.subr.bf16.mxu0 %v7941_v35  ;;  %v7976_v35 = vld [vmem:[#allocation6 + $0x180] sm:$0xff]  }
 0x13d   : > { %7371 = vmatpush3.bf16.msra.mxu1 %v7939_v46 }
 0x13e   : > { %7372 = vmatprep.subr.bf16.mxu1 %v7942_v36 }
 0x13f   : > { %6908 = vmatpush3.bf16.msra.mxu0 %v7943_v16  ;;  %v7977_v16 = vld [vmem:[#allocation6 + $0x1c8] sm:$0xff]  }
 0x140   : > { %6909 = vmatprep.subr.bf16.mxu0 %v7944_v39 }
 0x141   : > { %7373 = vmatpush3.bf16.msra.mxu1 %v7942_v36 }
 0x142   : > { %2728 = vmatmul.mubr.bf16.gmra.mrb[92].mxu0 %v1759_v0  ;;  %7374 = vmatprep.subr.bf16.mxu1 %v7945_v52 }
 0x143   : > { %6910 = vmatpush3.bf16.msra.mxu0 %v7946_v40  ;;  %3332 = vmatprep.mubr.bf16.mxu0 %v8845_v44 }
 0x144   : > { %6911 = vmatprep.subr.bf16.mxu0 %v7947_v42 }
 0x145   : > { %7375 = vmatpush3.bf16.msra.mxu1 %v7945_v52  ;;  %v7980_v52 = vld [vmem:[#allocation6 + $0x1d0] sm:$0xff]  }
 0x146   : > { %7376 = vmatprep.subr.bf16.mxu1 %v7948_v45 }
 0x147   : > { %6912 = vmatpush3.bf16.msra.mxu0 %v7949_v48 }
 0x148   : > { %6949 = vmatprep.subr.bf16.mxu0 %v7950_v49  ;;  %v7982_v49 = vld [vmem:[#allocation6 + $0x190] sm:$0xff]  }
 0x149   : > { %7377 = vmatpush3.bf16.msra.mxu1 %v7948_v45  ;;  %v7981_v45 = vld [vmem:[#allocation6 + $0x210] sm:$0xff]  }
 0x14a   : > { %3333 = vmatmul.mubr.bf16.vlgmr.msra.gmra.mrb[96].mxu0 %v8848_v41  ;;  %7386 = vmatprep.subr.bf16.mxu1 %v7951_v30 }
 0x14b   : > { %6950 = vmatpush3.bf16.msra.mxu0 %v7952_v50  ;;  %3340 = vmatprep.mubr.bf16.mxu0 %v8850_v56  ;;  %v7985_v50 = vld [vmem:[#allocation6 + $0x198] sm:$0xff]  }
 0x14c   : > { %7379 = vmatmul.mubr.bf16.vlgmr.msra.gmra.mrb[16].mxu1 %v8852_v57  ;;  %6951 = vmatprep.subr.bf16.mxu0 %v7953_v53 }
 0x14d   : > { %7387 = vmatpush3.bf16.msra.mxu1 %v7951_v30  ;;  %7382 = vmatprep.mubr.bf16.mxu1 %v8859_v51 }
 0x14e   : > { %7388 = vmatprep.subr.bf16.mxu1 %v7954_v22 }
 0x14f   : > { %6952 = vmatpush3.bf16.msra.mxu0 %v7955_v58 }
 0x150   : > { %6953 = vmatprep.subr.bf16.mxu0 %v7956_v59 }
 0x151   : > { %7389 = vmatpush3.bf16.msra.mxu1 %v7954_v22  ;;  %v7986_v22 = vld [vmem:[#allocation6 + $0x1e0] sm:$0xff]  }
 0x152   : > { %3341 = vmatmul.mubr.bf16.gmra.mrb[100].mxu0 %v8857_v63  ;;  %7390 = vmatprep.subr.bf16.mxu1 %v7957_v1 }
 0x153   : > { %6954 = vmatpush3.bf16.msra.mxu0 %v7958_v4  ;;  %3348 = vmatprep.mubr.bf16.mxu0 %v8862_v61 }
 0x154   : > { %6955 = vmatprep.subr.bf16.mxu0 %v7959_v5  ;;  %7383 = vmatmul.mubr.bf16.gmra.mrb[20].mxu1 %v8864_v54  ;;  %v7988_v5 = vld [vmem:[#allocation6 + $0x1a0] sm:$0xff]  }
 0x155   : > { %7391 = vmatpush3.bf16.msra.mxu1 %v7957_v1  ;;  %7402 = vmatprep.mubr.bf16.mxu1 %v3038_v13 }
 0x156   : > { %7392 = vmatprep.subr.bf16.mxu1 %v7960_v6 }
 0x157   : > { %6956 = vmatpush3.bf16.msra.mxu0 %v7961_v9  ;;  %v7989_v9 = vld [vmem:[#allocation6 + $0x1e8] sm:$0xff]  }
 0x158   : > { %6957 = vmatprep.subr.bf16.mxu0 %v7962_v10  ;;  %v7990_v10 = vld [vmem:[#allocation6 + $0x228] sm:$0xff]  }
 0x159   : > { %7393 = vmatpush3.bf16.msra.mxu1 %v7960_v6 }
 0x15a   : > { %3349 = vmatmul.mubr.bf16.gmra.mrb[104].mxu0 %v8869_v11  ;;  %7394 = vmatprep.subr.bf16.mxu1 %v7963_v38 }
 0x15b   : > { %6958 = vmatpush3.bf16.msra.mxu0 %v7964_v12  ;;  %3356 = vmatprep.mubr.bf16.mxu0 %v8871_v15  ;;  %v7992_v12 = vld [vmem:[#allocation6 + $0x1f0] sm:$0xff]  }
 0x15c   : > { %6959 = vmatprep.subr.bf16.mxu0 %v7965_v14 }
 0x15d   : > { %v6601_v17 = vpop.f32.mrb[0].mxu0  ;;  %7395 = vmatpush3.bf16.msra.mxu1 %v7963_v38  ;;  %v7991_v38 = vld [vmem:[#allocation6 + $0x1a8] sm:$0xff]  }
 0x15e   : > { %v6602_v20 = vpop.f32.mrb[1].mxu0  ;;  %7396 = vmatprep.subr.bf16.mxu1 %v7966_v19 }
 0x15f   : > { %v8875_v23 = vadd.f32 %v6602_v20, %v6601_v17  ;;  %v6604_v24 = vpop.f32.mrb[2].mxu0  ;;  %6960 = vmatpush3.bf16.msra.mxu0 %v7967_v18  ;;  %v7993_v17 = vld [vmem:[#allocation6 + $0x230] sm:$0xff]  }
 0x160   : > { %v6605_v27 = vpop.f32.mrb[3].mxu0  ;;  %6961 = vmatprep.subr.bf16.mxu0 %v7968_v21  ;;  %v7994_v18 = vld [vmem:[#allocation6 + $0x1b0] sm:$0xff]   ;;  %v7995_v21 = vld [vmem:[#allocation6 + $0x1f8] sm:$0xff]  }
 0x161   : > { %v8879_v2 = vadd.f32 %v6605_v27, %v6604_v24  ;;  %7397 = vmatpush3.bf16.msra.mxu1 %v7966_v19 }
 0x162   : > { %3357 = vmatmul.mubr.bf16.gmra.mrb[108].mxu0 %v8877_v47  ;;  %7398 = vmatprep.subr.bf16.mxu1 %v7969_v25 }
 0x163   : > { %6962 = vmatpush3.bf16.msra.mxu0 %v7970_v32  ;;  %3606 = vmatprep.mubr.bf16.mxu0 %v3037_v31  ;;  %v7996_v32 = vld [vmem:[#allocation6 + $0x238] sm:$0xff]  }
 0x164   : > { %6963 = vmatprep.subr.bf16.mxu0 %v7971_v60  ;;  %v7997_v60 = vld [vmem:[#allocation6 + $0x1b8] sm:$0xff]  }
 0x165   : > { %v6607_v29 = vpop.f32.mrb[4].mxu0  ;;  %7399 = vmatpush3.bf16.msra.mxu1 %v7969_v25 }
 0x166   : > { %v6608_v8 = vpop.f32.mrb[5].mxu0  ;;  %7400 = vmatprep.subr.bf16.mxu1 %v7972_v28 }
 0x167   : > { %v8882_v55 = vadd.f32 %v6608_v8, %v6607_v29  ;;  %v6610_v46 = vpop.f32.mrb[6].mxu0  ;;  %6964 = vmatpush3.bf16.msra.mxu0 %v7973_v43  ;;  %v8000_v8 = vld [vmem:[#allocation6 + $0xc0] sm:$0xff]  }
 0x168   : > { %v6611_v7 = vpop.f32.mrb[7].mxu0  ;;  %7001 = vmatprep.subr.bf16.mxu0 %v7974_v33  ;;  %v7999_v33 = vld [vmem:[#allocation6 + $0x140] sm:$0xff]  }
 0x169   : > { %v8884_v36 = vadd.f32 %v6611_v7, %v6610_v46  ;;  %7401 = vmatpush3.bf16.msra.mxu1 %v7972_v28  ;;  %v7998_v28 = vld [vmem:[#allocation6 + $0x100] sm:$0xff]   ;;  %v8002_v7 = vld [vmem:[#allocation6 + $0x148] sm:$0xff]  }
 0x16a   : > { %3607 = vmatmul.mubr.bf16.vlgmr.msra.gmra.mrb[112].mxu0 %v3036_v26  ;;  %7410 = vmatprep.subr.bf16.mxu1 %v7975_v34 }
 0x16b   : > { %7002 = vmatpush3.bf16.msra.mxu0 %v7976_v35  ;;  %3614 = vmatprep.mubr.bf16.mxu0 %v8845_v44  ;;  %v7983_v44 = vld [vmem:[#allocation6 + $0x1d8] sm:$0xff]   ;;  %v8003_v35 = vld [vmem:[#allocation6 + $0xc8] sm:$0xff]  }
 0x16c   : > { %7403 = vmatmul.mubr.bf16.vlgmr.msra.gmra.mrb[16].mxu1 %v8836_v3  ;;  %7003 = vmatprep.subr.bf16.mxu0 %v7977_v16  ;;  %v7984_v3 = vld [vmem:[#allocation6 + $0x218] sm:$0xff]  }
 0x16d   : > { %v6613_v39 = vpop.f32.mrb[8].mxu0  ;;  %7411 = vmatpush3.bf16.msra.mxu1 %v7975_v34  ;;  %7406 = vmatprep.mubr.bf16.mxu1 %v8852_v57  ;;  %v8001_v34 = vld [vmem:[#allocation6 + $0x108] sm:$0xff]  }
 0x16e   : > { %v6614_v0 = vpop.f32.mrb[9].mxu0  ;;  %7412 = vmatprep.subr.bf16.mxu1 %v7978_v62 }
 0x16f   : > { %v8889_v40 = vadd.f32 %v6614_v0, %v6613_v39  ;;  %v6616_v42 = vpop.f32.mrb[10].mxu0  ;;  %7004 = vmatpush3.bf16.msra.mxu0 %v7979_v37  ;;  %v8005_v39 = vld [vmem:[#allocation6 + $0x150] sm:$0xff]  }
 0x170   : > { %v6617_v48 = vpop.f32.mrb[11].mxu0  ;;  %7005 = vmatprep.subr.bf16.mxu0 %v7980_v52  ;;  %v3715_v52 = vld [vmem:[#allocation2 + $0x88] sm:$0xff]  ;;  %v8006_v0 = vld [vmem:[#allocation6 + $0xd0] sm:$0xff]  }
 0x171   : > { %v8891_v30 = vadd.f32 %v6617_v48, %v6616_v42  ;;  %7413 = vmatpush3.bf16.msra.mxu1 %v7978_v62 }
 0x172   : > { %3615 = vmatmul.mubr.bf16.gmra.mrb[116].mxu0 %v8848_v41  ;;  %7414 = vmatprep.subr.bf16.mxu1 %v7981_v45  ;;  %v7987_v41 = vld [vmem:[#allocation6 + $0x220] sm:$0xff]  }
 0x173   : > { %7006 = vmatpush3.bf16.msra.mxu0 %v7982_v49  ;;  %3622 = vmatprep.mubr.bf16.mxu0 %v8850_v56  ;;  %v8009_v49 = vld [vmem:[#allocation6 + $0xd8] sm:$0xff]  }
 0x174   : > { %7007 = vmatprep.subr.bf16.mxu0 %v7983_v44  ;;  %7407 = vmatmul.mubr.bf16.gmra.mrb[20].mxu1 %v8859_v51  ;;  %v8010_v44 = vld [vmem:[#allocation6 + $0x120] sm:$0xff]  }
 0x175   : > { %v6619_v53 = vpop.f32.mrb[12].mxu0  ;;  %7415 = vmatpush3.bf16.msra.mxu1 %v7981_v45  ;;  %7426 = vmatprep.mubr.bf16.mxu1 %v8852_v57  ;;  %v8008_v45 = vld [vmem:[#allocation6 + $0x158] sm:$0xff]  }
 0x176   : > { %v6620_v58 = vpop.f32.mrb[13].mxu0  ;;  %7416 = vmatprep.subr.bf16.mxu1 %v7984_v3 }
 0x177   : > { %v8897_v59 = vadd.f32 %v6620_v58, %v6619_v53  ;;  %v6622_v1 = vpop.f32.mrb[14].mxu0  ;;  %7008 = vmatpush3.bf16.msra.mxu0 %v7985_v50  ;;  %v8011_v53 = vld [vmem:[#allocation6 + $0x160] sm:$0xff]   ;;  %v8013_v58 = vld [vmem:[#allocation6 + $0x128] sm:$0xff]  }
 0x178   : > { %v6623_v4 = vpop.f32.mrb[15].mxu0  ;;  %7009 = vmatprep.subr.bf16.mxu0 %v7986_v22 }
 0x179   : > { %v8899_v6 = vadd.f32 %v6623_v4, %v6622_v1  ;;  %7417 = vmatpush3.bf16.msra.mxu1 %v7984_v3 }
 0x17a   : > { %3623 = vmatmul.mubr.bf16.gmra.mrb[120].mxu0 %v8857_v63  ;;  %7418 = vmatprep.subr.bf16.mxu1 %v7987_v41 }
 0x17b   : > { %7010 = vmatpush3.bf16.msra.mxu0 %v7988_v5  ;;  %3630 = vmatprep.mubr.bf16.mxu0 %v8862_v61  ;;  %v8014_v5 = vld [vmem:[#allocation6 + $0x168] sm:$0xff]  }
 0x17c   : > { %7011 = vmatprep.subr.bf16.mxu0 %v7989_v9  ;;  %v8015_v9 = vld [vmem:[#allocation6 + $0xe8] sm:$0xff]  }
 0x17d   : > { %v6653_v57 = vpop.f32.mrb[16].mxu0  ;;  %7419 = vmatpush3.bf16.msra.mxu1 %v7987_v41  ;;  %v3714_v41 = vld [vmem:[#allocation2 + $0x80] sm:$0xff] }
 0x17e   : > { %v6654_v13 = vpop.f32.mrb[17].mxu0  ;;  %7420 = vmatprep.subr.bf16.mxu1 %v7990_v10 }
 0x17f   : > { %v6655_v14 = vadd.f32 %v6654_v13, %v6653_v57  ;;  %v6656_v19 = vpop.f32.mrb[18].mxu0  ;;  %7012 = vmatpush3.bf16.msra.mxu0 %v7991_v38  ;;  %v8016_v38 = vld [vmem:[#allocation6 + $0x130] sm:$0xff]   ;;  %v3713_v57 = vld [vmem:[#allocation2 + $0x78] sm:$0xff] }
 0x180   : > { %v6657_v20 = vpop.f32.mrb[19].mxu0  ;;  %7013 = vmatprep.subr.bf16.mxu0 %v7992_v12 }
 0x181   : > { %v8904_v24 = vadd.f32 %v6655_v14, %v8875_v23  ;;  %v6658_v25 = vadd.f32 %v6657_v20, %v6656_v19  ;;  %7421 = vmatpush3.bf16.msra.mxu1 %v7990_v10  ;;  %v8017_v14 = vld [vmem:[#allocation6 + $0x170] sm:$0xff]  }
 0x182   : > { %3631 = vmatmul.mubr.bf16.gmra.mrb[124].mxu0 %v8869_v11  ;;  %7422 = vmatprep.subr.bf16.mxu1 %v7993_v17 }
 0x183   : > { %v8907_v27 = vadd.f32 %v6658_v25, %v8879_v2  ;;  %7014 = vmatpush3.bf16.msra.mxu0 %v7994_v18  ;;  %3940 = vmatprep.mubr.bf16.mxu0 %v8850_v56  ;;  %v8019_v18 = vld [vmem:[#allocation6 + $0x138] sm:$0xff]  }
 0x184   : > { %7015 = vmatprep.subr.bf16.mxu0 %v7995_v21 }
 0x185   : > { %v6659_v31 = vpop.f32.mrb[20].mxu0  ;;  %7423 = vmatpush3.bf16.msra.mxu1 %v7993_v17  ;;  %v8018_v17 = vld [vmem:[#allocation6 + $0xf0] sm:$0xff]  }
 0x186   : > { %v6660_v23 = vpop.f32.mrb[21].mxu0  ;;  %7424 = vmatprep.subr.bf16.mxu1 %v7996_v32 }
 0x187   : > { %v6661_v43 = vadd.f32 %v6660_v23, %v6659_v31  ;;  %v6662_v29 = vpop.f32.mrb[22].mxu0  ;;  %7016 = vmatpush3.bf16.msra.mxu0 %v7997_v60 }
 0x188   : > { %v6663_v2 = vpop.f32.mrb[23].mxu0  ;;  %7053 = vmatprep.subr.bf16.mxu0 %v7998_v28 }
 0x189   : > { %v8912_v26 = vadd.f32 %v6661_v43, %v8882_v55  ;;  %v6664_v46 = vadd.f32 %v6663_v2, %v6662_v29  ;;  %7425 = vmatpush3.bf16.msra.mxu1 %v7996_v32  ;;  %v8004_v55 = vld [vmem:[#allocation6 + $0x110] sm:$0xff]   ;;  %v8020_v43 = vld [vmem:[#allocation6 + $0x178] sm:$0xff]  }
 0x18a   : > { %3941 = vmatmul.mubr.bf16.vlgmr.msra.gmra.mrb[128].mxu0 %v8857_v63  ;;  %7434 = vmatprep.subr.bf16.mxu1 %v7999_v33  ;;  %v8945_v32 = vld [vmem:[#allocation2 + $0xb0] sm:$0xff]  ;;  %v8021_v29 = vld [vmem:[#allocation6 + $0xf8] sm:$0xff]  }
 0x18b   : > { %v8915_v56 = vadd.f32 %v6664_v46, %v8884_v36  ;;  %7054 = vmatpush3.bf16.msra.mxu0 %v8000_v8  ;;  %3948 = vmatprep.mubr.bf16.mxu0 %v8862_v61  ;;  %v8022_v46 = vld [vmem:[#allocation6 + $0x40] sm:$0xff]  }
 0x18c   : > { %7427 = vmatmul.mubr.bf16.vlgmr.msra.gmra.mrb[16].mxu1 %v8859_v51  ;;  %7055 = vmatprep.subr.bf16.mxu0 %v8001_v34  ;;  %v8007_v51 = vld [vmem:[#allocation6 + $0x118] sm:$0xff]   ;;  %v8955_v34 = vld [vmem:[#allocation2 + $0xa8] sm:$0xff] }
 0x18d   : > { %v6665_v16 = vpop.f32.mrb[24].mxu0  ;;  %7435 = vmatpush3.bf16.msra.mxu1 %v7999_v33  ;;  %7430 = vmatprep.mubr.bf16.mxu1 %v8864_v54  ;;  %v8928_v54 = vld [vmem:[#allocation2 + $0xb8] sm:$0xff] }
 0x18e   : > { %v6666_v62 = vpop.f32.mrb[25].mxu0  ;;  %7436 = vmatprep.subr.bf16.mxu1 %v8002_v7 }
 0x18f   : > { %v6667_v37 = vadd.f32 %v6666_v62, %v6665_v16  ;;  %v6668_v36 = vpop.f32.mrb[26].mxu0  ;;  %7056 = vmatpush3.bf16.msra.mxu0 %v8003_v35  ;;  %v8024_v35 = vld [vmem:[#allocation6] sm:$0xff]  }
 0x190   : > { %v6669_v63 = vpop.f32.mrb[27].mxu0  ;;  %7057 = vmatprep.subr.bf16.mxu0 %v8004_v55 }
 0x191   : > { %v8922_v42 = vadd.f32 %v6667_v37, %v8889_v40  ;;  %v6670_v61 = vadd.f32 %v6669_v63, %v6668_v36  ;;  %7437 = vmatpush3.bf16.msra.mxu1 %v8002_v7  ;;  %v8023_v7 = vld [vmem:[#allocation6 + $0x80] sm:$0xff]   ;;  %v8025_v37 = vld [vmem:[#allocation6 + $0x48] sm:$0xff]   ;;  %v8960_v63 = vld [vmem:[#allocation2 + $0xd0] sm:$0xff] }
 0x192   : > { %3949 = vmatmul.mubr.bf16.gmra.mrb[132].mxu0 %v8869_v11  ;;  %7438 = vmatprep.subr.bf16.mxu1 %v8005_v39  ;;  %v8012_v11 = vld [vmem:[#allocation6 + $0xe0] sm:$0xff]  }
 0x193   : > { %v8925_v48 = vadd.f32 %v6670_v61, %v8891_v30  ;;  %7058 = vmatpush3.bf16.msra.mxu0 %v8006_v0  ;;  %3956 = vmatprep.mubr.bf16.mxu0 %v8871_v15 }
 0x194   : > { %7431 = vmatmul.mubr.bf16.gmra.mrb[20].mxu1 %v3715_v52  ;;  %7059 = vmatprep.subr.bf16.mxu0 %v8007_v51 }
 0x195   : > { %v6671_v40 = vpop.f32.mrb[28].mxu0  ;;  %7439 = vmatpush3.bf16.msra.mxu1 %v8005_v39  ;;  %7450 = vmatprep.mubr.bf16.mxu1 %v8928_v54 }
 0x196   : > { %v6672_v3 = vpop.f32.mrb[29].mxu0  ;;  %7440 = vmatprep.subr.bf16.mxu1 %v8008_v45 }
 0x197   : > { %v6673_v50 = vadd.f32 %v6672_v3, %v6671_v40  ;;  %v6674_v30 = vpop.f32.mrb[30].mxu0  ;;  %7060 = vmatpush3.bf16.msra.mxu0 %v8009_v49  ;;  %v8026_v49 = vld [vmem:[#allocation6 + $0x88] sm:$0xff]  }
 0x198   : > { %v6675_v22 = vpop.f32.mrb[31].mxu0  ;;  %7061 = vmatprep.subr.bf16.mxu0 %v8010_v44  ;;  %v8027_v44 = vld [vmem:[#allocation6 + $0x8] sm:$0xff]  }
 0x199   : > { %v8933_v1 = vadd.f32 %v6673_v50, %v8897_v59  ;;  %v6676_v15 = vadd.f32 %v6675_v22, %v6674_v30  ;;  %7441 = vmatpush3.bf16.msra.mxu1 %v8008_v45  ;;  %v8971_v22 = vld [vmem:[#allocation2 + $0xc8] sm:$0xff] }
 0x19a   : > { %3957 = vmatmul.mubr.bf16.gmra.mrb[136].mxu0 %v8877_v47  ;;  %7442 = vmatprep.subr.bf16.mxu1 %v8011_v53  ;;  %v8942_v47 = vld [vmem:[%s9304_s2] ss:$0 sm:$0xff] }
 0x19b   : > { %v8936_v4 = vadd.f32 %v6676_v15, %v8899_v6  ;;  %7062 = vmatpush3.bf16.msra.mxu0 %v8012_v11  ;;  %3964 = vmatprep.mubr.bf16.mxu0 %v3714_v41 }
 0x19c   : > { %7063 = vmatprep.subr.bf16.mxu0 %v8013_v58 }
 0x19d   : > { %v6705_v10 = vpop.f32.mrb[32].mxu0  ;;  %7443 = vmatpush3.bf16.msra.mxu1 %v8011_v53 }
 0x19e   : > { %v6706_v59 = vpop.f32.mrb[33].mxu0  ;;  %7444 = vmatprep.subr.bf16.mxu1 %v8014_v5 }
 0x19f   : > { %v6707_v12 = vadd.f32 %v6706_v59, %v6705_v10  ;;  %v6708_v13 = vpop.f32.mrb[34].mxu0  ;;  %v7284_v19 = vpop.f32.mrb[0].mxu1  ;;  %7064 = vmatpush3.bf16.msra.mxu0 %v8015_v9  ;;  %v8029_v10 = vld [vmem:[#allocation6 + $0x90] sm:$0xff]  }
 0x1a0   : > { %v6709_v6 = vpop.f32.mrb[35].mxu0  ;;  %v1518_v20 = vpop.f32.mrb[1].mxu1  ;;  %7065 = vmatprep.subr.bf16.mxu0 %v8016_v38 }
 0x1a1   : > { %v7530_v21 = vadd.f32 %v8904_v24, %v6707_v12  ;;  %v6710_v25 = vadd.f32 %v6709_v6, %v6708_v13  ;;  %v7285_v60 = vpop.f32.mrb[2].mxu1  ;;  %7445 = vmatpush3.bf16.msra.mxu1 %v8014_v5  ;;  %v8952_v24 = vld [vmem:[%s9305_s3] ss:$0 sm:$0xff]  ;;  %v8028_v5 = vld [vmem:[#allocation6 + $0x50] sm:$0xff]  }
 0x1a2   : > { %v1521_v28 = vpop.f32.mrb[3].mxu1  ;;  %3965 = vmatmul.mubr.bf16.gmra.mrb[140].mxu0 %v3713_v57  ;;  %7446 = vmatprep.subr.bf16.mxu1 %v8017_v14  ;;  %v8030_v13 = vld [vmem:[#allocation6 + $0x10] sm:$0xff]  }
 0x1a3   : > { %v7531_v31 = vadd.f32 %v7530_v21, %v1518_v20  ;;  %v7536_v23 = vadd.f32 %v8907_v27, %v6710_v25  ;;  %7066 = vmatpush3.bf16.msra.mxu0 %v8018_v17  ;;  %4547 = vmatprep.mubr.bf16.mxu0 %v8945_v32  ;;  %v8032_v21 = vld [vmem:[#allocation6 + $0x98] sm:$0xff]  }
 0x1a4   : > { %7067 = vmatprep.subr.bf16.mxu0 %v8019_v18  ;;  %v8033_v25 = vld [vmem:[#allocation6 + $0x18] sm:$0xff]  }
 0x1a5   : > { %v1563_v33 = vmul.f32 %v7531_v31, %v8942_v47  ;;  %v7537_v2 = vadd.f32 %v7536_v23, %v1521_v28  ;;  %v6711_v8 = vpop.f32.mrb[36].mxu0  ;;  %7447 = vmatpush3.bf16.msra.mxu1 %v8017_v14 }
 0x1a6   : > { %v6712_v27 = vpop.f32.mrb[37].mxu0  ;;  %7448 = vmatprep.subr.bf16.mxu1 %v8020_v43 }
 0x1a7   : > { %v1564_v16 = vmul.f32 %v7537_v2, %v8942_v47  ;;  %v6713_v55 = vadd.f32 %v6712_v27, %v6711_v8  ;;  %v6714_v62 = vpop.f32.mrb[38].mxu0  ;;  %v8958_v36 = vpop.f32.mrb[4].mxu1  ;;  %7068 = vmatpush3.bf16.msra.mxu0 %v8021_v29  ;;  %v1577_v52 = vadd.f32 %v8952_v24, %v1563_v33  ;;  %v8034_v29 = vld [vmem:[#allocation6 + $0x60] sm:$0xff]  }
 0x1a8   : > { %v6715_v39 = vpop.f32.mrb[39].mxu0  ;;  %v1534_v51 = vpop.f32.mrb[5].mxu1  ;;  %7105 = vmatprep.subr.bf16.mxu0 %v8022_v46  ;;  %v8991_v33 = vld [vmem:[#allocation2 + $0x100] sm:$0xff] }
 0x1a9   : > { %v1578_v0 = vadd.f32 %v8952_v24, %v1564_v16  ;;  %v7527_v61 = vadd.f32 %v8912_v26, %v6713_v55  ;;  %v6716_v45 = vadd.f32 %v6715_v39, %v6714_v62  ;;  %v8965_v40 = vpop.f32.mrb[6].mxu1  ;;  %7449 = vmatpush3.bf16.msra.mxu1 %v8020_v43  ;;  %v8973_v26 = vld [vmem:[#allocation2 + $0xe8] sm:$0xff]  ;;  %v4253_v46 = vld [vmem:[#allocation2 + $0xa0] sm:$0xff] }
 0x1aa   : > { %v1537_v11 = vpop.f32.mrb[7].mxu1  ;;  %4548 = vmatmul.mubr.bf16.vlgmr.msra.gmra.mrb[144].mxu0 %v8955_v34  ;;  %7458 = vmatprep.subr.bf16.mxu1 %v8023_v7 }
 0x1ab   : > { %v8967_v3 = vpack.c.bf16 %v1578_v0, %v1577_v52  ;;  %v1625_v50 = vadd.f32 %v1578_v0, %v1577_v52  ;;  %v7528_v30 = vadd.f32 %v7527_v61, %v7284_v19  ;;  %v7533_v53 = vadd.f32 %v8915_v56, %v6716_v45  ;;  %7106 = vmatpush3.bf16.msra.mxu0 %v8024_v35  ;;  %v8978_v56 = vld [vmem:[#allocation2 + $0xc0] sm:$0xff]  ;;  %v8031_v19 = vld [vmem:[#allocation6 + $0x58] sm:$0xff]   ;;  %v8037_v52 = vld [vmem:[#allocation6 + $0x68] sm:$0xff]  }
 0x1ac   : > { %7451 = vmatmul.mubr.bf16.vlgmr.msra.gmra.mrb[24].mxu1 %v8960_v63  ;;  %7107 = vmatprep.subr.bf16.mxu0 %v8025_v37  ;;  %v8036_v37 = vld [vmem:[#allocation6 + $0x20] sm:$0xff]  }
 0x1ad   : > { %v1565_v58 = vmul.f32 %v7528_v30, %v8942_v47  ;;  %v7534_v15 = vadd.f32 %v7533_v53, %v7285_v60  ;;  %v6717_v41 = vpop.f32.mrb[40].mxu0  ;;  %7459 = vmatpush3.bf16.msra.mxu1 %v8023_v7  ;;  %4555 = vmatprep.mubr.bf16.mxu0 %v8971_v22  ;;  %v8985_v60 = vld [vmem:[#allocation2 + $0xe0] sm:$0xff]  ;;  %v8995_v7 = vld [vmem:[#allocation2 + $0xd8] sm:$0xff] }
 0x1ae   : > { %v6718_v9 = vpop.f32.mrb[41].mxu0  ;;  %7460 = vmatprep.subr.bf16.mxu1 %v8026_v49  ;;  %7454 = vmatprep.mubr.bf16.mxu1 %v8973_v26 }
 0x1af   : > { %v1579_v38 = vadd.f32 %v8952_v24, %v1565_v58  ;;  %v1566_v59 = vmul.f32 %v7534_v15, %v8942_v47  ;;  %v6719_v57 = vadd.f32 %v6718_v9, %v6717_v41  ;;  %v6720_v12 = vpop.f32.mrb[42].mxu0  ;;  %7108 = vmatpush3.bf16.msra.mxu0 %v8027_v44  ;;  %v9002_v44 = vld [vmem:[#allocation2 + $0xf8] sm:$0xff]  ;;  %v8039_v58 = vld [vmem:[#allocation6 + $0x28] sm:$0xff]   ;;  %v8040_v15 = vld [vmem:[#allocation6 + $0x70] sm:$0xff]  }
 0x1b0   : > { %v6721_v14 = vpop.f32.mrb[43].mxu0  ;;  %7109 = vmatprep.subr.bf16.mxu0 %v8028_v5  ;;  %v8041_v9 = vld [vmem:[#allocation6 + $0xb0] sm:$0xff]  }
 0x1b1   : > { %v1626_v6 = vadd.f32 %v1625_v50, %v1579_v38  ;;  %v1580_v17 = vadd.f32 %v8952_v24, %v1566_v59  ;;  %v7542_v18 = vadd.f32 %v8922_v42, %v6719_v57  ;;  %v6722_v20 = vadd.f32 %v6721_v14, %v6720_v12  ;;  %7461 = vmatpush3.bf16.msra.mxu1 %v8026_v49  ;;  %v8038_v49 = vld [vmem:[#allocation6 + $0xa8] sm:$0xff]   ;;  %v4252_v14 = vld [vmem:[#allocation2 + $0x98] sm:$0xff] }
 0x1b2   : > { %4556 = vmatmul.mubr.bf16.gmra.mrb[148].mxu0 %v8978_v56  ;;  %7462 = vmatprep.subr.bf16.mxu1 %v8029_v10 }
 0x1b3   : > { %v8987_v31 = vpack.c.bf16 %v1580_v17, %v1579_v38  ;;  %v1627_v28 = vadd.f32 %v1626_v6, %v1580_v17  ;;  %v7543_v23 = vadd.f32 %v7542_v18, %v1534_v51  ;;  %v7548_v43 = vadd.f32 %v8925_v48, %v6722_v20  ;;  %7110 = vmatpush3.bf16.msra.mxu0 %v8030_v13  ;;  %v8035_v48 = vld [vmem:[#allocation6 + $0xa0] sm:$0xff]   ;;  %v8043_v13 = vld [vmem:[#allocation6 + $0x78] sm:$0xff]  }
 0x1b4   : > { %7111 = vmatprep.subr.bf16.mxu0 %v8031_v19  ;;  %4563 = vmatprep.mubr.bf16.mxu0 %v8985_v60  ;;  %v8044_v18 = vld [vmem:[#allocation6 + $0xb8] sm:$0xff]  }
 0x1b5   : > { %v1567_v42 = vmul.f32 %v7543_v23, %v8942_v47  ;;  %v7549_v2 = vadd.f32 %v7548_v43, %v1537_v11  ;;  %v6723_v8 = vpop.f32.mrb[44].mxu0  ;;  %7463 = vmatpush3.bf16.msra.mxu1 %v8029_v10  ;;  %v8046_v23 = vld [vmem:[#allocation6 + $0x1c0] sm:$0xff]  }
 0x1b6   : > { %v6724_v27 = vpop.f32.mrb[45].mxu0  ;;  %7464 = vmatprep.subr.bf16.mxu1 %v8032_v21  ;;  %7455 = vmatmul.mubr.bf16.gmra.mrb[28].mxu1 %v8991_v33 }
 0x1b7   : > { %v1581_v35 = vadd.f32 %v8952_v24, %v1567_v42  ;;  %v1568_v16 = vmul.f32 %v7549_v2, %v8942_v47  ;;  %v6725_v55 = vadd.f32 %v6724_v27, %v6723_v8  ;;  %v6726_v62 = vpop.f32.mrb[46].mxu0  ;;  %7112 = vmatpush3.bf16.msra.mxu0 %v8033_v25  ;;  %7474 = vmatprep.mubr.bf16.mxu1 %v4253_v46  ;;  %v8045_v25 = vld [vmem:[#allocation6 + $0x38] sm:$0xff]   ;;  %v8047_v2 = vld [vmem:[#allocation6 + $0x200] sm:$0xff]   ;;  %v4251_v46 = vld [vmem:[#allocation2 + $0x90] sm:$0xff] }
 0x1b8   : > { %v6727_v39 = vpop.f32.mrb[47].mxu0  ;;  %7113 = vmatprep.subr.bf16.mxu0 %v8034_v29  ;;  %v8048_v27 = vld [vmem:[#allocation6 + $0x180] sm:$0xff]  }
 0x1b9   : > { %v1628_v0 = vadd.f32 %v1627_v28, %v1581_v35  ;;  %v1582_v61 = vadd.f32 %v8952_v24, %v1568_v16  ;;  %v7539_v51 = vadd.f32 %v8933_v1, %v6725_v55  ;;  %v6728_v45 = vadd.f32 %v6727_v39, %v6726_v62  ;;  %7465 = vmatpush3.bf16.msra.mxu1 %v8032_v21  ;;  %v8050_v16 = vld [vmem:[#allocation6 + $0x208] sm:$0xff]  }
 0x1ba   : > { %4564 = vmatmul.mubr.bf16.gmra.mrb[152].mxu0 %v8995_v7  ;;  %7466 = vmatprep.subr.bf16.mxu1 %v8035_v48  ;;  %v8051_v55 = vld [vmem:[#allocation6 + $0x188] sm:$0xff]  }
 0x1bb   : > { %v9004_v50 = vpack.c.bf16 %v1582_v61, %v1581_v35  ;;  %v1629_v30 = vadd.f32 %v1628_v0, %v1582_v61  ;;  %v7540_v53 = vadd.f32 %v7539_v51, %v8958_v36  ;;  %v7545_v11 = vadd.f32 %v8936_v4, %v6728_v45  ;;  %7114 = vmatpush3.bf16.msra.mxu0 %v8036_v37  ;;  %v9012_v36 = vld [vmem:[#allocation2 + $0xf0] sm:$0xff]  ;;  %v8049_v35 = vld [vmem:[#allocation6 + $0x1c8] sm:$0xff]  }
 0x1bc   : > { %7115 = vmatprep.subr.bf16.mxu0 %v8037_v52  ;;  %4571 = vmatprep.mubr.bf16.mxu0 %v9002_v44  ;;  %v8042_v4 = vld [vmem:[#allocation6 + $0x30] sm:$0xff]  }
 0x1bd   : > { %v1569_v1 = vmul.f32 %v7540_v53, %v8942_v47  ;;  %v7546_v41 = vadd.f32 %v7545_v11, %v8965_v40  ;;  %v6757_v5 = vpop.f32.mrb[48].mxu0  ;;  %7467 = vmatpush3.bf16.msra.mxu1 %v8035_v48  ;;  %v8052_v37 = vld [vmem:[#allocation6 + $0x1d0] sm:$0xff]   ;;  %v8058_v11 = vld [vmem:[#allocation6 + $0x1e0] sm:$0xff]  }
 0x1be   : > { %v6758_v10 = vpop.f32.mrb[49].mxu0  ;;  %7468 = vmatprep.subr.bf16.mxu1 %v8038_v49  ;;  %v8053_v61 = vld [vmem:[#allocation6 + $0x210] sm:$0xff]  }
 0x1bf   : > { %v1583_v38 = vadd.f32 %v8952_v24, %v1569_v1  ;;  %v1570_v59 = vmul.f32 %v7546_v41, %v8942_v47  ;;  %v9016_v57 = vadd.f32 %v6758_v10, %v6757_v5  ;;  %v6760_v12 = vpop.f32.mrb[50].mxu0  ;;  %7116 = vmatpush3.bf16.msra.mxu0 %v8039_v58  ;;  %v8054_v45 = vld [vmem:[#allocation6 + $0x190] sm:$0xff]   ;;  %v8060_v5 = vld [vmem:[#allocation6 + $0x1a0] sm:$0xff]   ;;  %v8061_v10 = vld [vmem:[#allocation6 + $0x1e8] sm:$0xff]  }
 0x1c0   : > { %v6761_v40 = vpop.f32.mrb[51].mxu0  ;;  %7117 = vmatprep.subr.bf16.mxu0 %v8040_v15 }
 0x1c1   : > { %v1630_v19 = vadd.f32 %v1629_v30, %v1583_v38  ;;  %v1584_v6 = vadd.f32 %v8952_v24, %v1570_v59  ;;  %v9019_v17 = vadd.f32 %v6761_v40, %v6760_v12  ;;  %7469 = vmatpush3.bf16.msra.mxu1 %v8038_v49  ;;  %v8057_v30 = vld [vmem:[#allocation6 + $0x198] sm:$0xff]  }
 0x1c2   : > { %4572 = vmatmul.mubr.bf16.gmra.mrb[156].mxu0 %v9012_v36  ;;  %7470 = vmatprep.subr.bf16.mxu1 %v8041_v9 }
 0x1c3   : > { %v9021_v20 = vpack.c.bf16 %v1584_v6, %v1583_v38  ;;  %v9023_v21 = vadd.f32 %v1630_v19, %v1584_v6  ;;  %7118 = vmatpush3.bf16.msra.mxu0 %v8042_v4  ;;  %4821 = vmatprep.mubr.bf16.mxu0 %v4252_v14  ;;  %v8062_v4 = vld [vmem:[#allocation6 + $0x228] sm:$0xff]   ;;  %v8066_v19 = vld [vmem:[#allocation6 + $0x1b0] sm:$0xff]  }
 0x1c4   : > { %7119 = vmatprep.subr.bf16.mxu0 %v8043_v13  ;;  %v8063_v38 = vld [vmem:[#allocation6 + $0x1a8] sm:$0xff]   ;;  %v8065_v13 = vld [vmem:[#allocation6 + $0x230] sm:$0xff]  }
 0x1c5   : > { %v6763_v28 = vpop.f32.mrb[52].mxu0  ;;  %7471 = vmatpush3.bf16.msra.mxu1 %v8041_v9 }
 0x1c6   : > { %v6764_v43 = vpop.f32.mrb[53].mxu0  ;;  %7472 = vmatprep.subr.bf16.mxu1 %v8044_v18 }
 0x1c7   : > { %v9026_v29 = vadd.f32 %v6764_v43, %v6763_v28  ;;  %v6766_v42 = vpop.f32.mrb[54].mxu0  ;;  %7120 = vmatpush3.bf16.msra.mxu0 %v8045_v25 }
 0x1c8   : > { %v6767_v8 = vpop.f32.mrb[55].mxu0  ;;  %7157 = vmatprep.subr.bf16.mxu0 %v8046_v23  ;;  %v8068_v23 = vld [vmem:[#allocation6 + $0x238] sm:$0xff]  }
 0x1c9   : > { %v9028_v48 = vadd.f32 %v6767_v8, %v6766_v42  ;;  %7473 = vmatpush3.bf16.msra.mxu1 %v8044_v18  ;;  %v8067_v18 = vld [vmem:[#allocation6 + $0x1f8] sm:$0xff]  }
 0x1ca   : > { %4822 = vmatmul.mubr.bf16.vlgmr.msra.gmra.mrb[160].mxu0 %v4251_v46  ;;  %7482 = vmatprep.subr.bf16.mxu1 %v8047_v2  ;;  %v8069_v42 = vld [vmem:[#allocation6 + $0x1b8] sm:$0xff]  }
 0x1cb   : > { %7158 = vmatpush3.bf16.msra.mxu0 %v8048_v27  ;;  %4829 = vmatprep.mubr.bf16.mxu0 %v8945_v32  ;;  %v8055_v32 = vld [vmem:[#allocation6 + $0x1d8] sm:$0xff]  }
 0x1cc   : > { %7475 = vmatmul.mubr.bf16.vlgmr.msra.gmra.mrb[24].mxu1 %v8928_v54  ;;  %7159 = vmatprep.subr.bf16.mxu0 %v8049_v35  ;;  %v8056_v54 = vld [vmem:[#allocation6 + $0x218] sm:$0xff]  }
 0x1cd   : > { %v6769_v62 = vpop.f32.mrb[56].mxu0  ;;  %7483 = vmatpush3.bf16.msra.mxu1 %v8047_v2  ;;  %7478 = vmatprep.mubr.bf16.mxu1 %v8960_v63 }
 0x1ce   : > { %v6770_v39 = vpop.f32.mrb[57].mxu0  ;;  %7484 = vmatprep.subr.bf16.mxu1 %v8050_v16 }
 0x1cf   : > { %v9033_v52 = vadd.f32 %v6770_v39, %v6769_v62  ;;  %v6772_v0 = vpop.f32.mrb[58].mxu0  ;;  %7160 = vmatpush3.bf16.msra.mxu0 %v8051_v55 }
 0x1d0   : > { %v6773_v51 = vpop.f32.mrb[59].mxu0  ;;  %7161 = vmatprep.subr.bf16.mxu0 %v8052_v37 }
 0x1d1   : > { %v9035_v49 = vadd.f32 %v6773_v51, %v6772_v0  ;;  %7485 = vmatpush3.bf16.msra.mxu1 %v8050_v16 }
 0x1d2   : > { %4830 = vmatmul.mubr.bf16.gmra.mrb[164].mxu0 %v8955_v34  ;;  %7486 = vmatprep.subr.bf16.mxu1 %v8053_v61  ;;  %v8059_v34 = vld [vmem:[#allocation6 + $0x220] sm:$0xff]  }
 0x1d3   : > { %7162 = vmatpush3.bf16.msra.mxu0 %v8054_v45  ;;  %4837 = vmatprep.mubr.bf16.mxu0 %v8971_v22 }
 0x1d4   : > { %7163 = vmatprep.subr.bf16.mxu0 %v8055_v32  ;;  %7479 = vmatmul.mubr.bf16.gmra.mrb[28].mxu1 %v8973_v26 }
 0x1d5   : > { %v6775_v53 = vpop.f32.mrb[60].mxu0  ;;  %7487 = vmatpush3.bf16.msra.mxu1 %v8053_v61  ;;  %7498 = vmatprep.mubr.bf16.mxu1 %v8960_v63  ;;  %v8064_v63 = vld [vmem:[#allocation6 + $0x1f0] sm:$0xff]  }
 0x1d6   : > { %v6776_v58 = vpop.f32.mrb[61].mxu0  ;;  %7488 = vmatprep.subr.bf16.mxu1 %v8056_v54 }
 0x1d7   : > { %v9041_v15 = vadd.f32 %v6776_v58, %v6775_v53  ;;  %v6778_v1 = vpop.f32.mrb[62].mxu0  ;;  %7164 = vmatpush3.bf16.msra.mxu0 %v8057_v30 }
 0x1d8   : > { %v6779_v41 = vpop.f32.mrb[63].mxu0  ;;  %7165 = vmatprep.subr.bf16.mxu0 %v8058_v11 }
 0x1d9   : > { %v9043_v9 = vadd.f32 %v6779_v41, %v6778_v1  ;;  %7489 = vmatpush3.bf16.msra.mxu1 %v8056_v54 }
 0x1da   : > { %4838 = vmatmul.mubr.bf16.gmra.mrb[168].mxu0 %v8978_v56  ;;  %7490 = vmatprep.subr.bf16.mxu1 %v8059_v34 }
 0x1db   : > { %7166 = vmatpush3.bf16.msra.mxu0 %v8060_v5  ;;  %4845 = vmatprep.mubr.bf16.mxu0 %v8985_v60 }
 0x1dc   : > { %7167 = vmatprep.subr.bf16.mxu0 %v8061_v10 }
 0x1dd   : > { %7491 = vmatpush3.bf16.msra.mxu1 %v8059_v34  ;;  %v6809_v59 = vpop.f32.mrb[64].mxu0 }
 0x1de   : > { %v6810_v12 = vpop.f32.mrb[65].mxu0  ;;  %7492 = vmatprep.subr.bf16.mxu1 %v8062_v4 }
 0x1df   : > { %v6811_v40 = vadd.f32 %v6810_v12, %v6809_v59  ;;  %v6812_v14 = vpop.f32.mrb[66].mxu0  ;;  %7168 = vmatpush3.bf16.msra.mxu0 %v8063_v38 }
 0x1e0   : > { %v6813_v6 = vpop.f32.mrb[67].mxu0  ;;  %7169 = vmatprep.subr.bf16.mxu0 %v8064_v63 }
 0x1e1   : > { %v7553_v25 = vadd.f32 %v6811_v40, %v9016_v57  ;;  %7493 = vmatpush3.bf16.msra.mxu1 %v8062_v4  ;;  %v6814_v28 = vadd.f32 %v6813_v6, %v6812_v14 }
 0x1e2   : > { %4846 = vmatmul.mubr.bf16.gmra.mrb[172].mxu0 %v8995_v7  ;;  %7494 = vmatprep.subr.bf16.mxu1 %v8065_v13 }
 0x1e3   : > { %v7559_v43 = vadd.f32 %v6814_v28, %v9019_v17  ;;  %7170 = vmatpush3.bf16.msra.mxu0 %v8066_v19  ;;  %5155 = vmatprep.mubr.bf16.mxu0 %v8971_v22 }
 0x1e4   : > { %7171 = vmatprep.subr.bf16.mxu0 %v8067_v18 }
 0x1e5   : > { %7495 = vmatpush3.bf16.msra.mxu1 %v8065_v13  ;;  %v6815_v2 = vpop.f32.mrb[68].mxu0 }
 0x1e6   : > { %v6816_v8 = vpop.f32.mrb[69].mxu0  ;;  %7496 = vmatprep.subr.bf16.mxu1 %v8068_v23 }
 0x1e7   : > { %v6817_v46 = vadd.f32 %v6816_v8, %v6815_v2  ;;  %v6818_v27 = vpop.f32.mrb[70].mxu0  ;;  %7172 = vmatpush3.bf16.msra.mxu0 %v8069_v42 }
 0x1e8   : > { %v6819_v57 = vpop.f32.mrb[71].mxu0 }
 0x1e9   : > { %v7550_v35 = vadd.f32 %v6817_v46, %v9026_v29  ;;  %7497 = vmatpush3.bf16.msra.mxu1 %v8068_v23  ;;  %v6820_v16 = vadd.f32 %v6819_v57, %v6818_v27 }
 0x1ea   : > { %5156 = vmatmul.mubr.bf16.vlgmr.msra.gmra.mrb[176].mxu0 %v8978_v56 }
 0x1eb   : > { %v7556_v17 = vadd.f32 %v6820_v16, %v9028_v48  ;;  %5163 = vmatprep.mubr.bf16.mxu0 %v8985_v60  ;;  %v8083_v60 = vld [vmem:[#allocation2 + $0x110] sm:$0xff] }
 0x1ec   : > { %7499 = vmatmul.mubr.bf16.vlgmr.msra.gmra.mrb[24].mxu1 %v8973_v26 }
 0x1ed   : > { %v6821_v22 = vpop.f32.mrb[72].mxu0  ;;  %7502 = vmatprep.mubr.bf16.mxu1 %v8991_v33 }
 0x1ee   : > { %v6822_v55 = vpop.f32.mrb[73].mxu0 }
 0x1ef   : > { %v6823_v62 = vadd.f32 %v6822_v55, %v6821_v22  ;;  %v6824_v37 = vpop.f32.mrb[74].mxu0 }
 0x1f0   : > { %v6825_v39 = vpop.f32.mrb[75].mxu0 }
 0x1f1   : > { %v7565_v0 = vadd.f32 %v6823_v62, %v9033_v52  ;;  %v6826_v29 = vadd.f32 %v6825_v39, %v6824_v37 }
 0x1f2   : > { %5164 = vmatmul.mubr.bf16.gmra.mrb[180].mxu0 %v8995_v7 }
 0x1f3   : > { %v9060_v56 = vadd.f32 %v6826_v29, %v9035_v49  ;;  %5171 = vmatprep.mubr.bf16.mxu0 %v9002_v44 }
 0x1f4   : > { %7503 = vmatmul.mubr.bf16.gmra.mrb[28].mxu1 %v8083_v60 }
 0x1f5   : > { %v6827_v26 = vpop.f32.mrb[76].mxu0 }
 0x1f6   : > { %v6828_v48 = vpop.f32.mrb[77].mxu0 }
 0x1f7   : > { %v6829_v61 = vadd.f32 %v6828_v48, %v6827_v26  ;;  %v6830_v33 = vpop.f32.mrb[78].mxu0 }
 0x1f8   : > { %v6831_v51 = vpop.f32.mrb[79].mxu0 }
 0x1f9   : > { %v9064_v45 = vadd.f32 %v6829_v61, %v9041_v15  ;;  %v6832_v32 = vadd.f32 %v6831_v51, %v6830_v33 }
 0x1fa   : > { %5172 = vmatmul.mubr.bf16.gmra.mrb[184].mxu0 %v9012_v36 }
 0x1fb   : > { %v9068_v7 = vadd.f32 %v6832_v32, %v9043_v9  ;;  %5179 = vmatprep.mubr.bf16.mxu0 %v8083_v60 }
 0x1fd   : > { %v6861_v52 = vpop.f32.mrb[80].mxu0 }
 0x1fe   : > { %v6862_v49 = vpop.f32.mrb[81].mxu0 }
 0x1ff   : > { %v7356_v44 = vpop.f32.mrb[8].mxu1  ;;  %v6863_v54 = vadd.f32 %v6862_v49, %v6861_v52  ;;  %v6864_v30 = vpop.f32.mrb[82].mxu0 }
 0x200   : > { %v2770_v53 = vpop.f32.mrb[9].mxu1  ;;  %v6865_v11 = vpop.f32.mrb[83].mxu0 }
 0x201   : > { %v7554_v58 = vadd.f32 %v7553_v25, %v6863_v54  ;;  %v7357_v1 = vpop.f32.mrb[10].mxu1  ;;  %v6866_v34 = vadd.f32 %v6865_v11, %v6864_v30 }
 0x202   : > { %v2773_v41 = vpop.f32.mrb[11].mxu1  ;;  %5180 = vmatmul.mubr.bf16.gmra.mrb[188].mxu0 %v8083_v60 }
 0x203   : > { %v7555_v15 = vadd.f32 %v7554_v58, %v2770_v53  ;;  %v7560_v5 = vadd.f32 %v7559_v43, %v6866_v34 }
 0x205   : > { %v2809_v36 = vmul.f32 %v7555_v15, %v8942_v47  ;;  %v7561_v10 = vadd.f32 %v7560_v5, %v2773_v41  ;;  %v6867_v9 = vpop.f32.mrb[84].mxu0 }
 0x206   : > { %v6868_v4 = vpop.f32.mrb[85].mxu0 }
 0x207   : > { %v2810_v38 = vmul.f32 %v7561_v10, %v8942_v47  ;;  %v7360_v63 = vpop.f32.mrb[12].mxu1  ;;  %v6869_v59 = vadd.f32 %v6868_v4, %v6867_v9  ;;  %v6870_v12 = vpop.f32.mrb[86].mxu0  ;;  %v2817_v14 = vadd.f32 %v8952_v24, %v2809_v36 }
 0x208   : > { %v2786_v13 = vpop.f32.mrb[13].mxu1  ;;  %v6871_v40 = vpop.f32.mrb[87].mxu0 }
 0x209   : > { %v2818_v19 = vadd.f32 %v8952_v24, %v2810_v38  ;;  %v7551_v6 = vadd.f32 %v7550_v35, %v6869_v59  ;;  %v7361_v18 = vpop.f32.mrb[14].mxu1  ;;  %v6872_v25 = vadd.f32 %v6871_v40, %v6870_v12 }
 0x20a   : > { %v2789_v28 = vpop.f32.mrb[15].mxu1 }
 0x20b   : > { %v9074_v23 = vpack.c.bf16 %v2818_v19, %v2817_v14  ;;  %v2865_v43 = vadd.f32 %v2818_v19, %v2817_v14  ;;  %v7552_v42 = vadd.f32 %v7551_v6, %v7356_v44  ;;  %v7557_v2 = vadd.f32 %v7556_v17, %v6872_v25 }
 0x20d   : > { %v2811_v8 = vmul.f32 %v7552_v42, %v8942_v47  ;;  %v7558_v46 = vadd.f32 %v7557_v2, %v7357_v1  ;;  %v6873_v27 = vpop.f32.mrb[88].mxu0 }
 0x20e   : > { %v6874_v57 = vpop.f32.mrb[89].mxu0 }
 0x20f   : > { %v2819_v16 = vadd.f32 %v8952_v24, %v2811_v8  ;;  %v2812_v22 = vmul.f32 %v7558_v46, %v8942_v47  ;;  %v6875_v55 = vadd.f32 %v6874_v57, %v6873_v27  ;;  %v6876_v62 = vpop.f32.mrb[90].mxu0 }
 0x210   : > { %v6877_v35 = vpop.f32.mrb[91].mxu0 }
 0x211   : > { %v2866_v37 = vadd.f32 %v2865_v43, %v2819_v16  ;;  %v2820_v39 = vadd.f32 %v8952_v24, %v2812_v22  ;;  %v7566_v29 = vadd.f32 %v7565_v0, %v6875_v55  ;;  %v6878_v60 = vadd.f32 %v6877_v35, %v6876_v62 }
 0x213   : > { %v9080_v26 = vpack.c.bf16 %v2820_v39, %v2819_v16  ;;  %v2867_v17 = vadd.f32 %v2866_v37, %v2820_v39  ;;  %v7567_v48 = vadd.f32 %v7566_v29, %v2786_v13  ;;  %v7572_v61 = vadd.f32 %v9060_v56, %v6878_v60 }
 0x214   : > { %v1632_v56 = vrot.slane %v9023_v21, 4 }
 0x215   : > { %v2813_v33 = vmul.f32 %v7567_v48, %v8942_v47  ;;  %v7573_v51 = vadd.f32 %v7572_v61, %v2789_v28  ;;  %v6879_v32 = vpop.f32.mrb[92].mxu0 }
 0x216   : > { %v6880_v52 = vpop.f32.mrb[93].mxu0  ;;  %v1633_v38 = vadd.f32 %v1632_v56, %v9023_v21 }
 0x217   : > { %v2821_v49 = vadd.f32 %v8952_v24, %v2813_v33  ;;  %v2814_v44 = vmul.f32 %v7573_v51, %v8942_v47  ;;  %v6881_v54 = vadd.f32 %v6880_v52, %v6879_v32  ;;  %v6882_v30 = vpop.f32.mrb[94].mxu0 }
 0x218   : > { %v6883_v53 = vpop.f32.mrb[95].mxu0  ;;  %v1634_v6 = vrot.slane %v1633_v38, 2 }
 0x219   : > { %v2868_v0 = vadd.f32 %v2867_v17, %v2821_v49  ;;  %v2822_v11 = vadd.f32 %v8952_v24, %v2814_v44  ;;  %v7563_v58 = vadd.f32 %v9064_v45, %v6881_v54  ;;  %v6884_v1 = vadd.f32 %v6883_v53, %v6882_v30 }
 0x21a   : > { %v1635_v42 = vadd.f32 %v1634_v6, %v1633_v38 }
 0x21b   : > { %v9089_v34 = vpack.c.bf16 %v2822_v11, %v2821_v49  ;;  %v2869_v41 = vadd.f32 %v2868_v0, %v2822_v11  ;;  %v7564_v15 = vadd.f32 %v7563_v58, %v7360_v63  ;;  %v7569_v5 = vadd.f32 %v9068_v7, %v6884_v1 }
 0x21c   : > { %v1636_v57 = vrot.slane %v1635_v42, 1 }
 0x21d   : > { %v2815_v36 = vmul.f32 %v7564_v15, %v8942_v47  ;;  %v7570_v10 = vadd.f32 %v7569_v5, %v7361_v18  ;;  %v6913_v9 = vpop.f32.mrb[96].mxu0 }
 0x21e   : > { %v6914_v4 = vpop.f32.mrb[97].mxu0  ;;  %v1637_v62 = vadd.f32 %v1636_v57, %v1635_v42 }
 0x21f   : > { %v2823_v59 = vadd.f32 %v8952_v24, %v2815_v36  ;;  %v2816_v45 = vmul.f32 %v7570_v10, %v8942_v47  ;;  %v6915_v12 = vadd.f32 %v6914_v4, %v6913_v9  ;;  %v6916_v13 = vpop.f32.mrb[98].mxu0 }
 0x220   : > { %v6917_v40 = vpop.f32.mrb[99].mxu0 }
 0x221   : > { %v2870_v14 = vadd.f32 %v2869_v41, %v2823_v59  ;;  %v2824_v19 = vadd.f32 %v8952_v24, %v2816_v45  ;;  %v6918_v63 = vadd.f32 %v6917_v40, %v6916_v13 }
 0x223   : > { %v9097_v7 = vpack.c.bf16 %v2824_v19, %v2823_v59  ;;  %v2871_v25 = vadd.f32 %v2870_v14, %v2824_v19 }
 0x225   : > { %v2872_v18 = vrot.slane %v2871_v25, 4  ;;  %v6919_v28 = vpop.f32.mrb[100].mxu0 }
 0x226   : > { %v6920_v43 = vpop.f32.mrb[101].mxu0 }
 0x227   : > { %v2873_v21 = vadd.f32 %v2872_v18, %v2871_v25  ;;  %v6921_v2 = vadd.f32 %v6920_v43, %v6919_v28  ;;  %v6922_v8 = vpop.f32.mrb[102].mxu0  ;;  %v8070_v28 = vld [vmem:[#allocation8] sm:$0xff]  }
 0x228   : > { %v6923_v46 = vpop.f32.mrb[103].mxu0 }
 0x229   : > { %v2874_v47 = vrot.slane %v2873_v21, 2  ;;  %v6924_v27 = vadd.f32 %v6923_v46, %v6922_v8  ;;  %v8071_v8 = vld [vmem:[#allocation8 + $0x8] sm:$0xff]  }
 0x22b   : > { %v2875_v16 = vadd.f32 %v2874_v47, %v2873_v21  ;;  %v8250_v21 = vmov 0.0  }
 0x22c   : > { %7506 = vmatprep.subr.bf16.mxu0 %v8250_v21  ;;  %7522 = vmatprep.mubr.msk.bf16.mxu0 %vm8251_vm11, %v8250_v21 }
 0x22d   : > { %v2876_v22 = vrot.slane %v2875_v16, 1  ;;  %v6925_v55 = vpop.f32.mrb[104].mxu0  ;;  %7507 = vmatpush3.bf16.msra.mxu0 %v8070_v28 }
 0x22e   : > { %v6926_v24 = vpop.f32.mrb[105].mxu0  ;;  %7508 = vmatprep.subr.bf16.mxu0 %v8250_v21 }
 0x22f   : > { %v2877_v35 = vadd.f32 %v2876_v22, %v2875_v16  ;;  %v6927_v37 = vadd.f32 %v6926_v24, %v6925_v55  ;;  %v6928_v39 = vpop.f32.mrb[106].mxu0  ;;  %v8072_v24 = vld [vmem:[#allocation8 + $0x10] sm:$0xff]  }
 0x230   : > { %v6929_v29 = vpop.f32.mrb[107].mxu0 }
 0x231   : > { %v6930_v60 = vadd.f32 %v6929_v29, %v6928_v39  ;;  %v9099_v17 = vadd.f32 %v2877_v35, %v1637_v62  ;;  %7509 = vmatpush3.bf16.msra.mxu0 %v8071_v8 }
 0x232   : > { %7510 = vmatprep.subr.bf16.mxu0 %v8250_v21 }
 0x235   : > { %v6931_v48 = vpop.f32.mrb[108].mxu0  ;;  %7511 = vmatpush3.bf16.msra.mxu0 %v8072_v24 }
 0x236   : > { %v6932_v61 = vpop.f32.mrb[109].mxu0  ;;  %7512 = vmatprep.subr.bf16.mxu0 %v8250_v21 }
 0x237   : > { %v6933_v33 = vadd.f32 %v6932_v61, %v6931_v48  ;;  %v6934_v51 = vpop.f32.mrb[110].mxu0  ;;  %v8073_v48 = vld [vmem:[#allocation8 + $0x18] sm:$0xff]   ;;  %v9118_v61 = vld [vmem:[%s9304_s2] ss:$0 sm:$0xff] }
 0x238   : > { %v6935_v32 = vpop.f32.mrb[111].mxu0 }
 0x239   : > { %v6936_v52 = vadd.f32 %v6935_v32, %v6934_v51  ;;  %7513 = vmatpush3.bf16.msra.mxu0 %v8073_v48 }
 0x23a   : > { %7514 = vmatprep.subr.bf16.mxu0 %v8250_v21 }
 0x23d   : > { %v6965_v49 = vpop.f32.mrb[112].mxu0 }
 0x23e   : > { %v6966_v44 = vpop.f32.mrb[113].mxu0 }
 0x23f   : > { %v6967_v54 = vadd.f32 %v6966_v44, %v6965_v49  ;;  %v6968_v30 = vpop.f32.mrb[114].mxu0 }
 0x240   : > { %v6969_v53 = vpop.f32.mrb[115].mxu0 }
 0x241   : > { %v7577_v0 = vadd.f32 %v6967_v54, %v6915_v12  ;;  %v6970_v11 = vadd.f32 %v6969_v53, %v6968_v30 }
 0x243   : > { %v7583_v58 = vadd.f32 %v6970_v11, %v6918_v63  ;;  %v8074_v11 = vld [vmem:[#allocation8 + $0x20] sm:$0xff]  }
 0x244   : > { %7515 = vmatpush3.bf16.msra.mxu0 %v8074_v11 }
 0x245   : > { %v6971_v1 = vpop.f32.mrb[116].mxu0  ;;  %7516 = vmatprep.subr.bf16.mxu0 %v8250_v21 }
 0x246   : > { %v6972_v56 = vpop.f32.mrb[117].mxu0 }
 0x247   : > { %v6973_v41 = vadd.f32 %v6972_v56, %v6971_v1  ;;  %v6974_v15 = vpop.f32.mrb[118].mxu0 }
 0x248   : > { %v6975_v5 = vpop.f32.mrb[119].mxu0 }
 0x249   : > { %v7574_v36 = vadd.f32 %v6973_v41, %v6921_v2  ;;  %v6976_v10 = vadd.f32 %v6975_v5, %v6974_v15 }
 0x24b   : > { %v9101_v9 = vadd.f32 %v6976_v10, %v6924_v27 }
 0x24d   : > { %v6977_v4 = vpop.f32.mrb[120].mxu0 }
 0x24e   : > { %v6978_v38 = vpop.f32.mrb[121].mxu0 }
 0x24f   : > { %v6979_v59 = vadd.f32 %v6978_v38, %v6977_v4  ;;  %v6980_v45 = vpop.f32.mrb[122].mxu0 }
 0x250   : > { %v6981_v13 = vpop.f32.mrb[123].mxu0 }
 0x251   : > { %v9103_v40 = vadd.f32 %v6979_v59, %v6927_v37  ;;  %v6982_v14 = vadd.f32 %v6981_v13, %v6980_v45  ;;  %v8075_v13 = vld [vmem:[#allocation8 + $0x28] sm:$0xff]  }
 0x252   : > { %7517 = vmatpush3.bf16.msra.mxu0 %v8075_v13 }
 0x253   : > { %v9105_v12 = vadd.f32 %v6982_v14, %v6930_v60  ;;  %7518 = vmatprep.subr.bf16.mxu0 %v8250_v21 }
 0x255   : > { %v6983_v19 = vpop.f32.mrb[124].mxu0 }
 0x256   : > { %v6984_v63 = vpop.f32.mrb[125].mxu0 }
 0x257   : > { %v6985_v6 = vadd.f32 %v6984_v63, %v6983_v19  ;;  %v6986_v25 = vpop.f32.mrb[126].mxu0 }
 0x258   : > { %v6987_v18 = vpop.f32.mrb[127].mxu0 }
 0x259   : > { %v9107_v43 = vadd.f32 %v6985_v6, %v6933_v33  ;;  %v6988_v42 = vadd.f32 %v6987_v18, %v6986_v25 }
 0x25b   : > { %v9110_v2 = vadd.f32 %v6988_v42, %v6936_v52 }
 0x25d   : > { %v7017_v46 = vpop.f32.mrb[128].mxu0 }
 0x25e   : > { %v7018_v47 = vpop.f32.mrb[129].mxu0 }
 0x25f   : > { %v7428_v27 = vpop.f32.mrb[16].mxu1  ;;  %v7019_v57 = vadd.f32 %v7018_v47, %v7017_v46  ;;  %v7020_v16 = vpop.f32.mrb[130].mxu0 }
 0x260   : > { %v4007_v22 = vpop.f32.mrb[17].mxu1  ;;  %v7021_v55 = vpop.f32.mrb[131].mxu0 }
 0x261   : > { %v7578_v62 = vadd.f32 %v7577_v0, %v7019_v57  ;;  %v7429_v35 = vpop.f32.mrb[18].mxu1  ;;  %v7022_v37 = vadd.f32 %v7021_v55, %v7020_v16  ;;  %v8077_v57 = vld [vmem:[#allocation8 + $0x38] sm:$0xff]  }
 0x262   : > { %v4010_v39 = vpop.f32.mrb[19].mxu1 }
 0x263   : > { %v7579_v29 = vadd.f32 %v7578_v62, %v4007_v22  ;;  %v7584_v60 = vadd.f32 %v7583_v58, %v7022_v37  ;;  %v9126_v58 = vld [vmem:[%s9305_s3] ss:$0 sm:$0xff] }
 0x265   : > { %v4046_v33 = vmul.f32 %v9118_v61, %v7579_v29  ;;  %v7585_v51 = vadd.f32 %v7584_v60, %v4010_v39  ;;  %v7023_v32 = vpop.f32.mrb[132].mxu0 }
 0x266   : > { %v7024_v52 = vpop.f32.mrb[133].mxu0 }
 0x267   : > { %v4047_v49 = vmul.f32 %v9118_v61, %v7585_v51  ;;  %v7432_v44 = vpop.f32.mrb[20].mxu1  ;;  %v7025_v54 = vadd.f32 %v7024_v52, %v7023_v32  ;;  %v7026_v30 = vpop.f32.mrb[134].mxu0  ;;  %v4054_v1 = vadd.f32 %v9126_v58, %v4046_v33 }
 0x268   : > { %v4023_v53 = vpop.f32.mrb[21].mxu1  ;;  %v7027_v0 = vpop.f32.mrb[135].mxu0 }
 0x269   : > { %v4055_v56 = vadd.f32 %v9126_v58, %v4047_v49  ;;  %v7575_v41 = vadd.f32 %v7574_v36, %v7025_v54  ;;  %v7433_v15 = vpop.f32.mrb[22].mxu1  ;;  %v7028_v5 = vadd.f32 %v7027_v0, %v7026_v30  ;;  %v8076_v36 = vld [vmem:[#allocation8 + $0x30] sm:$0xff]  }
 0x26a   : > { %v4026_v10 = vpop.f32.mrb[23].mxu1  ;;  %7519 = vmatpush3.bf16.msra.mxu0 %v8076_v36 }
 0x26b   : > { %v9130_v4 = vpack.c.bf16 %v4055_v56, %v4054_v1  ;;  %v4102_v38 = vadd.f32 %v4055_v56, %v4054_v1  ;;  %v7576_v59 = vadd.f32 %v7575_v41, %v7428_v27  ;;  %v7581_v45 = vadd.f32 %v9101_v9, %v7028_v5  ;;  %7520 = vmatprep.subr.bf16.mxu0 %v8250_v21 }
 0x26d   : > { %v4048_v14 = vmul.f32 %v9118_v61, %v7576_v59  ;;  %v7582_v19 = vadd.f32 %v7581_v45, %v7429_v35  ;;  %v7029_v63 = vpop.f32.mrb[136].mxu0 }
 0x26e   : > { %v7030_v6 = vpop.f32.mrb[137].mxu0  ;;  %7521 = vmatpush3.bf16.msra.mxu0 %v8077_v57 }
 0x26f   : > { %v4056_v25 = vadd.f32 %v9126_v58, %v4048_v14  ;;  %v4049_v18 = vmul.f32 %v9118_v61, %v7582_v19  ;;  %v7031_v28 = vadd.f32 %v7030_v6, %v7029_v63  ;;  %v7032_v42 = vpop.f32.mrb[138].mxu0 }
 0x270   : > { %v7033_v9 = vpop.f32.mrb[139].mxu0 }
 0x271   : > { %v4103_v8 = vadd.f32 %v4102_v38, %v4056_v25  ;;  %v4057_v46 = vadd.f32 %v9126_v58, %v4049_v18  ;;  %v7590_v47 = vadd.f32 %v9103_v40, %v7031_v28  ;;  %v7034_v27 = vadd.f32 %v7033_v9, %v7032_v42 }
 0x273   : > { %v9141_v16 = vpack.c.bf16 %v4057_v46, %v4056_v25  ;;  %v4104_v22 = vadd.f32 %v4103_v8, %v4057_v46  ;;  %v7591_v55 = vadd.f32 %v7590_v47, %v4023_v53  ;;  %v7596_v24 = vadd.f32 %v9105_v12, %v7034_v27 }
 0x275   : > { %v4050_v62 = vmul.f32 %v9118_v61, %v7591_v55  ;;  %v7597_v35 = vadd.f32 %v7596_v24, %v4026_v10  ;;  %v7035_v37 = vpop.f32.mrb[140].mxu0 }
 0x276   : > { %v7036_v39 = vpop.f32.mrb[141].mxu0 }
 0x277   : > { %v4058_v29 = vadd.f32 %v9126_v58, %v4050_v62  ;;  %v4051_v40 = vmul.f32 %v9118_v61, %v7597_v35  ;;  %v7037_v60 = vadd.f32 %v7036_v39, %v7035_v37  ;;  %v7038_v48 = vpop.f32.mrb[142].mxu0 }
 0x278   : > { %v7039_v33 = vpop.f32.mrb[143].mxu0 }
 0x279   : > { %v4105_v51 = vadd.f32 %v4104_v22, %v4058_v29  ;;  %v4059_v32 = vadd.f32 %v9126_v58, %v4051_v40  ;;  %v7587_v12 = vadd.f32 %v9107_v43, %v7037_v60  ;;  %v7040_v52 = vadd.f32 %v7039_v33, %v7038_v48 }
 0x27b   : > { %v9150_v21 = vpack.c.bf16 %v4059_v32, %v4058_v29  ;;  %v4106_v49 = vadd.f32 %v4105_v51, %v4059_v32  ;;  %v7588_v54 = vadd.f32 %v7587_v12, %v7432_v44  ;;  %v7593_v30 = vadd.f32 %v9110_v2, %v7040_v52 }
 0x27d   : > { %v4052_v53 = vmul.f32 %v9118_v61, %v7588_v54  ;;  %v7594_v0 = vadd.f32 %v7593_v30, %v7433_v15  ;;  %v7069_v11 = vpop.f32.mrb[144].mxu0 }
 0x27e   : > { %v7070_v1 = vpop.f32.mrb[145].mxu0 }
 0x27f   : > { %v4060_v56 = vadd.f32 %v9126_v58, %v4052_v53  ;;  %v4053_v41 = vmul.f32 %v9118_v61, %v7594_v0  ;;  %v7071_v5 = vadd.f32 %v7070_v1, %v7069_v11  ;;  %v7072_v10 = vpop.f32.mrb[146].mxu0 }
 0x280   : > { %v7073_v38 = vpop.f32.mrb[147].mxu0 }
 0x281   : > { %v4107_v43 = vadd.f32 %v4106_v49, %v4060_v56  ;;  %v4061_v59 = vadd.f32 %v9126_v58, %v4053_v41  ;;  %v7074_v45 = vadd.f32 %v7073_v38, %v7072_v10 }
 0x283   : > { %v9157_v13 = vpack.c.bf16 %v4061_v59, %v4060_v56  ;;  %v4108_v44 = vadd.f32 %v4107_v43, %v4061_v59 }
 0x285   : > { %v4109_v2 = vrot.slane %v4108_v44, 4  ;;  %v7075_v14 = vpop.f32.mrb[148].mxu0 }
 0x286   : > { %v7076_v19 = vpop.f32.mrb[149].mxu0 }
 0x287   : > { %v4110_v15 = vadd.f32 %v4109_v2, %v4108_v44  ;;  %v7077_v63 = vadd.f32 %v7076_v19, %v7075_v14  ;;  %v7078_v6 = vpop.f32.mrb[150].mxu0 }
 0x288   : > { %v7079_v36 = vpop.f32.mrb[151].mxu0 }
 0x289   : > { %v4111_v25 = vrot.slane %v4110_v15, 2  ;;  %v7080_v18 = vadd.f32 %v7079_v36, %v7078_v6 }
 0x28b   : > { %v4112_v28 = vadd.f32 %v4111_v25, %v4110_v15 }
 0x28d   : > { %v4113_v42 = vrot.slane %v4112_v28, 1  ;;  %v7081_v9 = vpop.f32.mrb[152].mxu0 }
 0x28e   : > { %v7082_v8 = vpop.f32.mrb[153].mxu0 }
 0x28f   : > { %v4114_v46 = vadd.f32 %v4113_v42, %v4112_v28  ;;  %v7083_v47 = vadd.f32 %v7082_v8, %v7081_v9  ;;  %v7084_v27 = vpop.f32.mrb[154].mxu0 }
 0x290   : > { %v7085_v57 = vpop.f32.mrb[155].mxu0 }
 0x291   : > { %v7086_v22 = vadd.f32 %v7085_v57, %v7084_v27  ;;  %v9160_v55 = vadd.f32 %v4114_v46, %v9099_v17 }
 0x295   : > { %v7087_v24 = vpop.f32.mrb[156].mxu0 }
 0x296   : > { %v7088_v62 = vpop.f32.mrb[157].mxu0 }
 0x297   : > { %v7089_v35 = vadd.f32 %v7088_v62, %v7087_v24  ;;  %v7090_v37 = vpop.f32.mrb[158].mxu0 }
 0x298   : > { %v7091_v39 = vpop.f32.mrb[159].mxu0 }
 0x299   : > { %v7092_v29 = vadd.f32 %v7091_v39, %v7090_v37 }
 0x29d   : > { %v7121_v40 = vpop.f32.mrb[160].mxu0 }
 0x29e   : > { %v7122_v60 = vpop.f32.mrb[161].mxu0 }
 0x29f   : > { %v7123_v48 = vadd.f32 %v7122_v60, %v7121_v40  ;;  %v7124_v33 = vpop.f32.mrb[162].mxu0 }
 0x2a0   : > { %v7125_v51 = vpop.f32.mrb[163].mxu0 }
 0x2a1   : > { %v7601_v32 = vadd.f32 %v7123_v48, %v7071_v5  ;;  %v7126_v12 = vadd.f32 %v7125_v51, %v7124_v33 }
 0x2a3   : > { %v7607_v52 = vadd.f32 %v7126_v12, %v7074_v45 }
 0x2a5   : > { %v7127_v49 = vpop.f32.mrb[164].mxu0 }
 0x2a6   : > { %v7128_v54 = vpop.f32.mrb[165].mxu0 }
 0x2a7   : > { %v7129_v30 = vadd.f32 %v7128_v54, %v7127_v49  ;;  %v7130_v53 = vpop.f32.mrb[166].mxu0 }
 0x2a8   : > { %v7131_v17 = vpop.f32.mrb[167].mxu0 }
 0x2a9   : > { %v7598_v0 = vadd.f32 %v7129_v30, %v7077_v63  ;;  %v7132_v11 = vadd.f32 %v7131_v17, %v7130_v53 }
 0x2ab   : > { %v7604_v1 = vadd.f32 %v7132_v11, %v7080_v18 }
 0x2ad   : > { %v7133_v56 = vpop.f32.mrb[168].mxu0 }
 0x2ae   : > { %v7134_v41 = vpop.f32.mrb[169].mxu0 }
 0x2af   : > { %v7135_v10 = vadd.f32 %v7134_v41, %v7133_v56  ;;  %v7136_v38 = vpop.f32.mrb[170].mxu0 }
 0x2b0   : > { %v7137_v43 = vpop.f32.mrb[171].mxu0 }
 0x2b1   : > { %v7613_v59 = vadd.f32 %v7135_v10, %v7083_v47  ;;  %v7138_v44 = vadd.f32 %v7137_v43, %v7136_v38 }
 0x2b3   : > { %v7619_v2 = vadd.f32 %v7138_v44, %v7086_v22 }
 0x2b5   : > { %v7139_v14 = vpop.f32.mrb[172].mxu0 }
 0x2b6   : > { %v7140_v5 = vpop.f32.mrb[173].mxu0 }
 0x2b7   : > { %v7141_v19 = vadd.f32 %v7140_v5, %v7139_v14  ;;  %v7142_v45 = vpop.f32.mrb[174].mxu0 }
 0x2b8   : > { %v7143_v15 = vpop.f32.mrb[175].mxu0 }
 0x2b9   : > { %v9162_v6 = vadd.f32 %v7141_v19, %v7089_v35  ;;  %v7144_v36 = vadd.f32 %v7143_v15, %v7142_v45 }
 0x2bb   : > { %v9164_v25 = vadd.f32 %v7144_v36, %v7092_v29 }
 0x2bd   : > { %v7173_v63 = vpop.f32.mrb[176].mxu0 }
 0x2be   : > { %v7174_v18 = vpop.f32.mrb[177].mxu0 }
 0x2bf   : > { %v7500_v28 = vpop.f32.mrb[24].mxu1  ;;  %v7175_v42 = vadd.f32 %v7174_v18, %v7173_v63  ;;  %v7176_v9 = vpop.f32.mrb[178].mxu0 }
 0x2c0   : > { %v5222_v8 = vpop.f32.mrb[25].mxu1  ;;  %v7177_v46 = vpop.f32.mrb[179].mxu0 }
 0x2c1   : > { %v7602_v47 = vadd.f32 %v7601_v32, %v7175_v42  ;;  %v7501_v27 = vpop.f32.mrb[26].mxu1  ;;  %v7178_v57 = vadd.f32 %v7177_v46, %v7176_v9 }
 0x2c2   : > { %v5225_v22 = vpop.f32.mrb[27].mxu1 }
 0x2c3   : > { %v7603_v24 = vadd.f32 %v7602_v47, %v5222_v8  ;;  %v7608_v62 = vadd.f32 %v7607_v52, %v7178_v57 }
 0x2c5   : > { %v5261_v37 = vmul.f32 %v9118_v61, %v7603_v24  ;;  %v7609_v35 = vadd.f32 %v7608_v62, %v5225_v22  ;;  %v7179_v39 = vpop.f32.mrb[180].mxu0 }
 0x2c6   : > { %v7180_v40 = vpop.f32.mrb[181].mxu0 }
 0x2c7   : > { %v5262_v29 = vmul.f32 %v9118_v61, %v7609_v35  ;;  %v7504_v60 = vpop.f32.mrb[28].mxu1  ;;  %v7181_v48 = vadd.f32 %v7180_v40, %v7179_v39  ;;  %v7182_v33 = vpop.f32.mrb[182].mxu0  ;;  %v5269_v49 = vadd.f32 %v9126_v58, %v5261_v37 }
 0x2c8   : > { %v5238_v51 = vpop.f32.mrb[29].mxu1  ;;  %v7183_v12 = vpop.f32.mrb[183].mxu0 }
 0x2c9   : > { %v5270_v32 = vadd.f32 %v9126_v58, %v5262_v29  ;;  %v7599_v54 = vadd.f32 %v7598_v0, %v7181_v48  ;;  %v7505_v30 = vpop.f32.mrb[30].mxu1  ;;  %v7184_v53 = vadd.f32 %v7183_v12, %v7182_v33 }
 0x2ca   : > { %v5241_v52 = vpop.f32.mrb[31].mxu1 }
 0x2cb   : > { %v9170_v17 = vpack.c.bf16 %v5270_v32, %v5269_v49  ;;  %v5317_v11 = vadd.f32 %v5270_v32, %v5269_v49  ;;  %v7600_v56 = vadd.f32 %v7599_v54, %v7500_v28  ;;  %v7605_v41 = vadd.f32 %v7604_v1, %v7184_v53 }
 0x2cd   : > { %v5263_v10 = vmul.f32 %v9118_v61, %v7600_v56  ;;  %v7606_v38 = vadd.f32 %v7605_v41, %v7501_v27  ;;  %v7185_v43 = vpop.f32.mrb[184].mxu0 }
 0x2ce   : > { %v7186_v44 = vpop.f32.mrb[185].mxu0 }
 0x2cf   : > { %v5271_v14 = vadd.f32 %v9126_v58, %v5263_v10  ;;  %v5264_v5 = vmul.f32 %v9118_v61, %v7606_v38  ;;  %v7187_v19 = vadd.f32 %v7186_v44, %v7185_v43  ;;  %v7188_v45 = vpop.f32.mrb[186].mxu0 }
 0x2d0   : > { %v7189_v0 = vpop.f32.mrb[187].mxu0 }
 0x2d1   : > { %v5318_v15 = vadd.f32 %v5317_v11, %v5271_v14  ;;  %v5272_v36 = vadd.f32 %v9126_v58, %v5264_v5  ;;  %v7614_v63 = vadd.f32 %v7613_v59, %v7187_v19  ;;  %v7190_v18 = vadd.f32 %v7189_v0, %v7188_v45 }
 0x2d3   : > { %v9176_v42 = vpack.c.bf16 %v5272_v36, %v5271_v14  ;;  %v5319_v1 = vadd.f32 %v5318_v15, %v5272_v36  ;;  %v7615_v28 = vadd.f32 %v7614_v63, %v5238_v51  ;;  %v7620_v9 = vadd.f32 %v7619_v2, %v7190_v18 }
 0x2d4   : > { %v5463_v63 = vlaneseq }
 0x2d5   : > { %v5265_v8 = vmul.f32 %v9118_v61, %v7615_v28  ;;  %v7621_v46 = vadd.f32 %v7620_v9, %v5241_v52  ;;  %v7191_v47 = vpop.f32.mrb[188].mxu0  ;;  %v6399_v28 = vunpack.c.h.bf16 %v8967_v3  ;;  %v6402_v9 = vunpack.c.l.bf16 %v8987_v31 }
 0x2d6   : > { %v7192_v27 = vpop.f32.mrb[189].mxu0  ;;  %v5464_v18 = vshrl.u32 %v5463_v63, 7 }
 0x2d7   : > { %v5273_v57 = vadd.f32 %v9126_v58, %v5265_v8  ;;  %v5266_v22 = vmul.f32 %v9118_v61, %v7621_v46  ;;  %v7193_v24 = vadd.f32 %v7192_v27, %v7191_v47  ;;  %v7194_v62 = vpop.f32.mrb[190].mxu0  ;;  %v6403_v8 = vunpack.c.h.bf16 %v8987_v31 }
 0x2d8   : > { %v7195_v37 = vpop.f32.mrb[191].mxu0  ;;  %v6406_v46 = vunpack.c.l.bf16 %v9004_v50  ;;  %v6407_v47 = vunpack.c.h.bf16 %v9004_v50  ;;  %v6410_v27 = vunpack.c.l.bf16 %v9021_v20  ;;  %v6443_v31 = vunpack.c.h.bf16 %v9089_v34 }
 0x2d9   : > { %v5320_v35 = vadd.f32 %v5319_v1, %v5273_v57  ;;  %v5274_v59 = vadd.f32 %v9126_v58, %v5266_v22  ;;  %v7611_v39 = vadd.f32 %v9162_v6, %v7193_v24  ;;  %v7196_v40 = vadd.f32 %v7195_v37, %v7194_v62 }
 0x2da   : > { %v6398_v1 = vunpack.c.l.bf16 %v8967_v3  ;;  %v6434_v22 = vunpack.c.l.bf16 %v9074_v23  ;;  %v6435_v24 = vunpack.c.h.bf16 %v9074_v23  ;;  %v6438_v62 = vunpack.c.l.bf16 %v9080_v26 }
 0x2db   : > { %v9183_v29 = vpack.c.bf16 %v5274_v59, %v5273_v57  ;;  %v5321_v2 = vadd.f32 %v5320_v35, %v5274_v59  ;;  %v7612_v48 = vadd.f32 %v7611_v39, %v7504_v60  ;;  %v7617_v33 = vadd.f32 %v9164_v25, %v7196_v40 }
 0x2dc   : > { %v6411_v57 = vunpack.c.h.bf16 %v9021_v20  ;;  %v6439_v3 = vunpack.c.h.bf16 %v9080_v26  ;;  %v6442_v37 = vunpack.c.l.bf16 %v9089_v34  ;;  %v5465_v35 = vsub.s32 0, %v5464_v18 }
 0x2dd   : > { %v5267_v51 = vmul.f32 %v9118_v61, %v7612_v48  ;;  %v7618_v12 = vadd.f32 %v7617_v33, %v7505_v30  ;;  %v6446_v59 = vunpack.c.l.bf16 %v9097_v7  ;;  %v6447_v50 = vunpack.c.h.bf16 %v9097_v7 }
 0x2de   : > { %v6470_v39 = vunpack.c.l.bf16 %v9130_v4  ;;  %v6471_v20 = vunpack.c.h.bf16 %v9130_v4  ;;  %v6474_v40 = vunpack.c.l.bf16 %v9141_v16  ;;  %v6475_v23 = vunpack.c.h.bf16 %v9141_v16 }
 0x2df   : > { %v5275_v49 = vadd.f32 %v9126_v58, %v5267_v51  ;;  %v5268_v32 = vmul.f32 %v9118_v61, %v7618_v12  ;;  %v5437_v61 = vld [vmem:[%s9307_s5] sm:$0x1]  ;;  %v6479_v48 = vunpack.c.h.bf16 %v9150_v21  ;;  %v6482_v33 = vunpack.c.l.bf16 %v9157_v13 }
 0x2e0   : > { %v6483_v34 = vunpack.c.h.bf16 %v9157_v13  ;;  %v6506_v51 = vunpack.c.l.bf16 %v9170_v17  ;;  %v6507_v7 = vunpack.c.h.bf16 %v9170_v17  ;;  %v6510_v12 = vunpack.c.l.bf16 %v9176_v42 }
 0x2e1   : > { %v5322_v54 = vadd.f32 %v5321_v2, %v5275_v49  ;;  %v5276_v53 = vadd.f32 %v9126_v58, %v5268_v32  ;;  %v5439_v58 = vld [vmem:[%s9308_s6] sm:$0x1]  ;;  %v6478_v2 = vunpack.c.l.bf16 %v9150_v21  ;;  %v6511_v4 = vunpack.c.h.bf16 %v9176_v42 }
 0x2e2   : > { %v6514_v16 = vunpack.c.l.bf16 %v9183_v29  ;;  %v6515_v32 = vunpack.c.h.bf16 %v9183_v29 }
 0x2e3   : > { %v9190_v52 = vpack.c.bf16 %v5276_v53, %v5275_v49  ;;  %v5323_v6 = vadd.f32 %v5322_v54, %v5276_v53 }
 0x2e5   : > { %v5324_v11 = vrot.slane %v5323_v6, 4  ;;  %v6518_v54 = vunpack.c.l.bf16 %v9190_v52  ;;  %v6519_v21 = vunpack.c.h.bf16 %v9190_v52 }
 0x2e7   : > { %v5325_v56 = vadd.f32 %v5324_v11, %v5323_v6 }
 0x2e9   : > { %v5326_v41 = vrot.slane %v5325_v56, 2 }
 0x2eb   : > { %v5327_v10 = vadd.f32 %v5326_v41, %v5325_v56 }
 0x2ed   : > { %v5328_v60 = vrot.slane %v5327_v10, 1 }
 0x2ef   : > { %v5329_v38 = vadd.f32 %v5328_v60, %v5327_v10 }
 0x2f1   : > { %v5330_v25 = vadd.f32 %v5329_v38, %v9160_v55 }
 0x2f3   : > { %v5331_v43 = vmul.f32 0.00390625, %v5330_v25 }
 0x2f5   : > { %v5332_v30 = vpack.c.bf16 %v5331_v43, %v5331_v43 }
 0x2f7   : > { %7523 = vmatmul.mubr.bf16.vlgmr.msra.gmra.mrb[192].mxu0 %v5332_v30 }
 0x3ca   : > { %v5431_v44 = vpop.f32.mrb[192].mxu0 }
 0x3cb   : > { %v5438_v14 = vmul.f32 %v5437_v61, %v5431_v44  ;;  %v7524_v5 = vpop.f32.mrb[193].mxu0 }
 0x3cc   : > { %v5434_v19 = vpop.f32.mrb[194].mxu0 }
 0x3cd   : > { %v5440_v45 = vadd.f32 %v5439_v58, %v5438_v14  ;;  %v7525_v0 = vpop.f32.mrb[195].mxu0 }
 0x3cf   : > { %v6212_v15 = vmul.f32 -1.442695, %v5440_v45 }
 0x3d1   : > { %8078 = vpow2.f32 %v6212_v15 }
 0x3db   : > { %v8079_v55 = vpop.eup %8078 }
 0x3dc   : > { %v5444_v36 = vadd.f32 1.0, %v8079_v55 }
 0x3de   : > { %8080 = vrcp.f32 %v5444_v36 }
 0x3e8   : > { %v8081_v26 = vpop.eup %8080 }
 0x3e9   : > { %v5466_v49 = vrot.slane %v8081_v26, %v5465_v35 }
 0x3eb   : > { %v5467_v53 = vmul.f32 %v6398_v1, %v5466_v49  ;;  %v5468_v6 = vmul.f32 %v6399_v28, %v5466_v49  ;;  %v5469_v13 = vmul.f32 %v6402_v9, %v5466_v49  ;;  %v5470_v11 = vmul.f32 %v6403_v8, %v5466_v49 }
 0x3ec   : > { %v5471_v56 = vmul.f32 %v6406_v46, %v5466_v49  ;;  %v5472_v41 = vmul.f32 %v6407_v47, %v5466_v49  ;;  %v5473_v17 = vmul.f32 %v6410_v27, %v5466_v49  ;;  %v5474_v10 = vmul.f32 %v6411_v57, %v5466_v49 }
 0x3ed   : > { %v5531_v60 = vmul.f32 %v6434_v22, %v5466_v49  ;;  %v5532_v38 = vmul.f32 %v6435_v24, %v5466_v49  ;;  %v5533_v42 = vmul.f32 %v6438_v62, %v5466_v49  ;;  %v5534_v25 = vmul.f32 %v6439_v3, %v5466_v49 }
 0x3ee   : > { %v5535_v43 = vmul.f32 %v6442_v37, %v5466_v49  ;;  %v5536_v30 = vmul.f32 %v6443_v31, %v5466_v49  ;;  %v5537_v61 = vmul.f32 %v6446_v59, %v5466_v49  ;;  %v5538_v29 = vmul.f32 %v6447_v50, %v5466_v49 }
 0x3ef   : > { %v5595_v44 = vmul.f32 %v6470_v39, %v5466_v49  ;;  %v5596_v58 = vmul.f32 %v6471_v20, %v5466_v49  ;;  %v5597_v52 = vmul.f32 %v6474_v40, %v5466_v49  ;;  %v5598_v14 = vmul.f32 %v6475_v23, %v5466_v49 }
 0x3f0   : > { %v5599_v5 = vmul.f32 %v6478_v2, %v5466_v49  ;;  %v5600_v19 = vmul.f32 %v6479_v48, %v5466_v49  ;;  %v5601_v45 = vmul.f32 %v6482_v33, %v5466_v49  ;;  %v5602_v0 = vmul.f32 %v6483_v34, %v5466_v49 }
 0x3f1   : > { %v5659_v15 = vmul.f32 %v6506_v51, %v5466_v49  ;;  %v5660_v55 = vmul.f32 %v6507_v7, %v5466_v49  ;;  %v5661_v36 = vmul.f32 %v6510_v12, %v5466_v49  ;;  %v5662_v63 = vmul.f32 %v6511_v4, %v5466_v49 }
 0x3f2   : > { %v5663_v18 = vmul.f32 %v6514_v16, %v5466_v49  ;;  %v5664_v1 = vmul.f32 %v6515_v32, %v5466_v49  ;;  %v5665_v28 = vmul.f32 %v6518_v54, %v5466_v49  ;;  %v5666_v9 = vmul.f32 %v6519_v21, %v5466_v49 }
 0x3f3   : > { %v6415_v8 = vpack.c.bf16 %v5468_v6, %v5467_v53  ;;  %v6420_v46 = vpack.c.bf16 %v5470_v11, %v5469_v13  ;;  %v6425_v47 = vpack.c.bf16 %v5472_v41, %v5471_v56  ;;  %v6430_v27 = vpack.c.bf16 %v5474_v10, %v5473_v17 }
 0x3f4   : > { %v6451_v57 = vpack.c.bf16 %v5532_v38, %v5531_v60  ;;  %v6456_v22 = vpack.c.bf16 %v5534_v25, %v5533_v42  ;;  %v6461_v24 = vpack.c.bf16 %v5536_v30, %v5535_v43  ;;  %v6466_v62 = vpack.c.bf16 %v5538_v29, %v5537_v61 }
 0x3f5   : > { %v6487_v3 = vpack.c.bf16 %v5596_v58, %v5595_v44  ;;  %v6492_v37 = vpack.c.bf16 %v5598_v14, %v5597_v52  ;;  %v6497_v35 = vpack.c.bf16 %v5600_v19, %v5599_v5  ;;  %v6502_v31 = vpack.c.bf16 %v5602_v0, %v5601_v45  ;;  %6416 = vst [vmem:[%s9234_s9] sm:$0xff] %v6415_v8  }
 0x3f6   : > { %6558 = vst [vmem:[%s9234_s9 + $0x8] sm:$0xff] %v6420_v46   ;;  %6559 = vst [vmem:[%s9234_s9 + $0x10] sm:$0xff] %v6425_v47   ;;  %v6523_v59 = vpack.c.bf16 %v5660_v55, %v5659_v15  ;;  %v6528_v50 = vpack.c.bf16 %v5662_v63, %v5661_v36  ;;  %v6533_v39 = vpack.c.bf16 %v5664_v1, %v5663_v18 }
 0x3f7   : > { %6560 = vst [vmem:[%s9234_s9 + $0x18] sm:$0xff] %v6430_v27   ;;  %v6538_v20 = vpack.c.bf16 %v5666_v9, %v5665_v28  ;;  %6565 = vst [vmem:[%s9234_s9 + $0x20] sm:$0xff] %v6451_v57  }
 0x3f8   : > { %6566 = vst [vmem:[%s9234_s9 + $0x28] sm:$0xff] %v6456_v22   ;;  %6567 = vst [vmem:[%s9234_s9 + $0x30] sm:$0xff] %v6461_v24  }
 0x3f9   : > { %6568 = vst [vmem:[%s9234_s9 + $0x38] sm:$0xff] %v6466_v62   ;;  %6573 = vst [vmem:[%s9234_s9 + $0x40] sm:$0xff] %v6487_v3  }
 0x3fa   : > { %6574 = vst [vmem:[%s9234_s9 + $0x48] sm:$0xff] %v6492_v37   ;;  %6575 = vst [vmem:[%s9234_s9 + $0x50] sm:$0xff] %v6497_v35  }
 0x3fb   : > { %6576 = vst [vmem:[%s9234_s9 + $0x58] sm:$0xff] %v6502_v31   ;;  %6581 = vst [vmem:[%s9234_s9 + $0x60] sm:$0xff] %v6523_v59  }
 0x3fc   : > { %6582 = vst [vmem:[%s9234_s9 + $0x68] sm:$0xff] %v6528_v50   ;;  %6583 = vst [vmem:[%s9234_s9 + $0x70] sm:$0xff] %v6533_v39  }
 0x3fd   : > { %6584 = vst [vmem:[%s9234_s9 + $0x78] sm:$0xff] %v6538_v20  }
 0x3fe   : > { %8185 = shalt.err (!%p8182_p1)
}
 0x3ff   : > { %s8186_s23 = scalar_lea.hbm %s9244_s11, 2048  ;;  %s8190_s30 = scalar_lea.hbm %s9309_s7, 4096 }
 0x400   : > { %p8187_p13 = scmp.ne.s32.totalorder %s9244_s11, %s8186_s23  ;;  %p8191_p4 = scmp.lt.u32.totalorder %s9244_s11, %s9309_s7 }
 0x401   : > { %p8192_p5 = scmp.lt.u32.totalorder %s8190_s30, %s8186_s23  ;;  %p8194_p11 = scmp.lt.u32.totalorder %s8186_s23, %s9244_s11 }
 0x402   : > { %p8188_p6 = pnand %p8187_p13, %p9333_p0 }
 0x403   : > { %p8193_p8 = por %p8192_p5, %p8191_p4 }
 0x404   : > { %p8189_p10 = pneg %p8188_p6 }
 0x405   : > { %p8195_p2 = por %p8194_p11, %p8193_p8 }
 0x407   : > { %p8196_p3 = pnand %p8195_p2, %p8189_p10 }
 0x409   : > { %8199 = shalt.err (!%p8196_p3)
}
 0x40a   : > { %s8253_s22 = smov 64   ;;  %s8254_s15 = smov 4  }
 0x40b   : > { %7696 = dma.vmem_to_hbm [thread:$0]  (%p9333_p0), %s9246_s29, 2048, %s9244_s11, %s5708_s10, %s8253_s22, %s8253_s22, %s8254_s15  }
 0x40c PF: > { %s5736_s19 = sand.u32 1, %s8230_s24   ;;  %p9334_p7 = scmp.ne.s32.totalorder %s9315_s8, 0 }
 0x40d   : > { %p9335_p9 = scmp.ge.s32.totalorder %s8242_s27, 2  ;;  %s5737_s14 = scalar_lea.sflag [#allocation5], %s5736_s19 }
 0x40f   : > { %p7710_p12 = pnand %p9335_p9, %p9334_p7 }
 0x411   : > { %8225 = dma.done.wait (!%p7710_p12), %s5737_s14, 2048  }
 0x412   : > { %8227 = vsyncadd (!%p7710_p12), %s5737_s14, 4294965248  ;;  %p21_p1 = scmp.ge.s32.totalorder %s8411_s12, 4   ;;  %s9336_s24 = smov %s8234_s25 }
 0x413   : > { %s9337_s25 = smov %s8238_s26  ;;  %s9338_s26 = smov %s8427_s17 }
 0x414   : > { %s9339_s27 = smov %s8411_s12  ;;  %23 = sbr.rel (!%p21_p1) target bundleno = 6 (0x6), region = 110 }
 0x41b   :  { %5742 = vsyncpa [#allocation4], 1 }
 0x41c   :  { %5744 = vsyncpa [#allocation4 + $0x1], 1 }
 0x41d   :  { %5745 = vsyncpa [#allocation7], 1 }
 0x41e   :  { %5746 = vsyncpa [#allocation5], 1 }
 0x41f   :  { %5748 = vsyncpa [#allocation5 + $0x1], 1 }

</bundles_post_ra>
